<compile_context>
chip_gen: v5e
topology: v5e:2x2
jax: 0.10.0
libtpu: 0.0.40
codegen_flags: <defaults>
</compile_context>

<pallas_src>
import functools

import jax
import jax.numpy as jnp
from jax.experimental import pallas as pl
from jax.experimental.pallas import tpu as pltpu

EPS = 1e-12                  # torch fn.normalize default eps
_BIG = 3.0e38                # "+inf" stand-in for the k-th-smallest selection
_ROW_TILE_CAP = 512          # row-parallel kernels (pca / routing / mlp)
_KNN_ROW_TILE_CAP = 256      # kNN kernels keep ~6 live (tn, n) f32 temporaries
Z_DTYPE = jnp.bfloat16       # gathered-neighbor storage dtype (set float32 for bit-exact f32)


def _row_tile(n, cap=_ROW_TILE_CAP):
    return n if n <= cap else cap


def _knn_row_tile(n):
    if n <= _KNN_ROW_TILE_CAP:
        return n
    # bound the ~6 simultaneous (tn, n) f32 intermediates to ~12 MiB (v7x-safe).
    # TODO(synk): for very large n an inner column-chunked fori_loop (accumulating y
    # and rowsum in VMEM scratch) would keep tn large; tile scale-down used instead.
    budget_rows = (12 * 1024 * 1024) // (6 * 4 * n)
    tn = (max(budget_rows, 128) // 128) * 128
    return int(min(_KNN_ROW_TILE_CAP, tn))


@functools.lru_cache(maxsize=None)
def _vmem_limit_bytes():
    default = 48 * 1024 * 1024
    get_info = getattr(pltpu, "get_tpu_info", None)
    if get_info is None:
        return default
    try:
        cap = getattr(get_info(), "vmem_capacity_bytes", None)
    except Exception:
        return default
    if not cap:
        return default
    # leave ~3/8 of physical VMEM for spills / stack / neighboring fusions:
    # v7x (64 MiB phys) -> 40 MiB, v5e/v6e (128 MiB) -> 80 MiB.
    return int(min(cap * 5 // 8, 96 * 1024 * 1024))


def _cparams(*sems):
    return pltpu.CompilerParams(dimension_semantics=tuple(sems),
                                vmem_limit_bytes=_vmem_limit_bytes())


# ----------------------------------------------------------------------------
# Kernel 1: SparseInputLinear (dense mm) + ReLU, row-tiled
# ----------------------------------------------------------------------------
def _linear_relu_kernel(x_ref, w_ref, b_ref, o_ref):
    y = jnp.dot(x_ref[...], w_ref[...], preferred_element_type=jnp.float32)
    o_ref[...] = jnp.maximum(y + b_ref[...], 0.0)


def pca_relu(x, w, b):
    # TODO(synk): for very large nfeat (sparse-input graphs) add a K-tiled "arbitrary"
    # grid axis with a f32 VMEM accumulator; not needed at these feature widths.
    n, nfeat = x.shape
    dout = w.shape[1]
    tn = _row_tile(n)
    return pl.pallas_call(
        _linear_relu_kernel,
        grid=(pl.cdiv(n, tn),),
        out_shape=jax.ShapeDtypeStruct((n, dout), jnp.float32),
        in_specs=[
            pl.BlockSpec((tn, nfeat), lambda i: (i, 0)),
            pl.BlockSpec((nfeat, dout), lambda i: (0, 0)),
            pl.BlockSpec((1, dout), lambda i: (0, 0)),
        ],
        out_specs=pl.BlockSpec((tn, dout), lambda i: (i, 0)),
        compiler_params=_cparams("parallel"),
    )(x, w, b.reshape(1, -1))


# ----------------------------------------------------------------------------
# Kernel 2: RoutingLayer iterations (lane-dense reformulation)
#
# All per-slot / per-capsule segment reductions and broadcasts are expressed as
# matmuls with small constant 0/1 matrices so every tensor keeps >=32..512 lanes:
#   T  (d, m*d)   : tile u over the m neighbor slots
#   S  (m*d, m*k) : per (slot, capsule) dd-segment sum        (p = (z*u_rep) @ S)
#   G  (m*k, m*k) : capsule-group sum broadcast (softmax denom)
#   E  (m*k, m*d) : expand softmax weights back to dd lanes   (E = S^T)
#   R  (m*d, d)   : sum over the m neighbor slots             (R = T^T)
#   Sd (d, k), Ed (k, d): per-capsule sum / broadcast for the L2 normalisation
# ----------------------------------------------------------------------------
def _routing_constants(ncaps, nhidden, m):
    d = ncaps * nhidden
    seg = (jnp.arange(d)[:, None] // nhidden
           == jnp.arange(ncaps)[None, :]).astype(jnp.float32)           # (d, k)
    eye_m = jnp.eye(m, dtype=jnp.float32)
    t_mat = jnp.tile(jnp.eye(d, dtype=jnp.float32), (1, m))             # (d, m*d)
    s_mat = jnp.kron(eye_m, seg)                                        # (m*d, m*k)
    g_mat = jnp.kron(eye_m, jnp.ones((ncaps, ncaps), jnp.float32))      # (m*k, m*k)
    return (t_mat, s_mat, g_mat, s_mat.T, t_mat.T, seg, seg.T)


def _routing_kernel(z_ref, xn_ref, t_ref, s_ref, g_ref, e_ref, r_ref,
                    sd_ref, ed_ref, o_ref, *, max_iter, ncaps, apply_relu):
    z = z_ref[...]            # (tn, m*d) gathered per-capsule-normalized neighbors (bf16)
    xn = xn_ref[...]          # (tn, d)   per-capsule-normalized self features
    t_mat = t_ref[...]
    s_mat = s_ref[...]
    g_mat = g_ref[...]
    e_mat = e_ref[...]
    r_mat = r_ref[...]
    sd_mat = sd_ref[...]
    ed_mat = ed_ref[...]

    inv_k = 1.0 / float(ncaps)
    u = xn
    for it in range(max_iter):
        if it == 0:
            # p == 0  ->  softmax over capsules is uniform 1/k
            u = xn + inv_k * jnp.dot(z, r_mat, preferred_element_type=jnp.float32)
        else:
            u_rep = jnp.dot(u, t_mat, preferred_element_type=jnp.float32)      # (tn, m*d)
            p = jnp.dot(z * u_rep, s_mat, preferred_element_type=jnp.float32)  # (tn, m*k)
            # |p| <= ~1 (both operands per-capsule L2-normalized) -> exp without max-sub is safe
            ep = jnp.exp(p)
            gsum = jnp.dot(ep, g_mat, preferred_element_type=jnp.float32)      # group sums
            w = ep * pl.reciprocal(gsum, approx=True)                          # softmax over capsules
            w_exp = jnp.dot(w, e_mat, preferred_element_type=jnp.float32)      # (tn, m*d)
            u = xn + jnp.dot(z * w_exp, r_mat, preferred_element_type=jnp.float32)
        if it < max_iter - 1:
            ss = jnp.dot(u * u, sd_mat, preferred_element_type=jnp.float32)    # (tn, k)
            bc = jnp.dot(ss, ed_mat, preferred_element_type=jnp.float32)       # (tn, d)
            u = u * jax.lax.rsqrt(jnp.maximum(bc, EPS * EPS))
    if apply_relu:
        u = jnp.maximum(u, 0.0)
    o_ref[...] = u


def routing_layer(h, nb, consts, *, ncaps, nhidden, max_iter, apply_relu):
    n, d = h.shape
    m = nb.shape[1]
    md, mk = m * d, m * ncaps

    # per-capsule L2 normalization of the layer input (single fused XLA pass)
    hr = h.reshape(n, ncaps, nhidden)
    ss = jnp.sum(hr * hr, axis=2, keepdims=True)
    xn = (hr * jax.lax.rsqrt(jnp.maximum(ss, EPS * EPS))).reshape(n, d)

    # neighbor gather with the zero-padding row (index n); streamed as bf16.
    # TODO(synk): in-kernel gather from a VMEM-resident xn via scalar-prefetched nb would
    # avoid materializing (n, m*d) in HBM; dynamic row-gather has no robust Mosaic lowering.
    z_full = jnp.concatenate([xn, jnp.zeros((1, d), jnp.float32)], axis=0)
    z = z_full[nb.reshape(-1)].reshape(n, md).astype(Z_DTYPE)

    t_mat, s_mat, g_mat, e_mat, r_mat, sd_mat, ed_mat = consts
    tn = _row_tile(n)
    full = lambda i: (0, 0)
    # TODO(synk): pipeline_mode=pl.Buffered(1) on the constant matrices would reclaim
    # their second pipeline buffer (~0.8 MB); left at the default for lowering safety.
    return pl.pallas_call(
        functools.partial(_routing_kernel, max_iter=max_iter, ncaps=ncaps,
                          apply_relu=apply_relu),
        grid=(pl.cdiv(n, tn),),
        out_shape=jax.ShapeDtypeStruct((n, d), jnp.float32),
        in_specs=[
            pl.BlockSpec((tn, md), lambda i: (i, 0)),
            pl.BlockSpec((tn, d), lambda i: (i, 0)),
            pl.BlockSpec((d, md), full),
            pl.BlockSpec((md, mk), full),
            pl.BlockSpec((mk, mk), full),
            pl.BlockSpec((mk, md), full),
            pl.BlockSpec((md, d), full),
            pl.BlockSpec((d, ncaps), full),
            pl.BlockSpec((ncaps, d), full),
        ],
        out_specs=pl.BlockSpec((tn, d), lambda i: (i, 0)),
        compiler_params=_cparams("parallel"),
    )(z, xn, t_mat, s_mat, g_mat, e_mat, r_mat, sd_mat, ed_mat)


# ----------------------------------------------------------------------------
# Kernels 3+4 (fused, lane-dense): per-capsule kNN graph + row-normalized GCN agg.
#
# Inputs per capsule:
#   xr_aug (n, dd+1)   row-major features with a ones COLUMN appended (tile blocks)
#   xc_aug (dd+1, n)   column-major features with a ones ROW appended (resident operand)
#   sq     (n,)        hoisted squared norms, passed as (n,1) and (1,n) views.
# Because of the appended ones, gram_aug = X X^T + 1, and the GCN aggregation matmul
# y_ext = xc_aug @ adj^T delivers the row-sums in its last row for free.
# Pass A: k-th smallest squared distance per row (exact order statistic, k passes).
# Pass B: rebuild the distance block, threshold (row + column -> symmetrize),
#         aggregate lane-dense as (dd, tn) and row-normalize via EUP reciprocal.
# The (tn, n) distance matrix never touches HBM.
# ----------------------------------------------------------------------------
def _kth_dist_kernel(xt_ref, xc_ref, sqt_ref, sqa_ref, dk_ref, *, k_nn, tile_n):
    xt = xt_ref[0]                 # (tn, dd+1), last column = 1
    xc = xc_ref[0]                 # (dd+1, n),  last row    = 1
    sq_t = sqt_ref[0]              # (tn, 1)
    sq_a = sqa_ref[0]              # (1, n)
    gram_aug = jnp.dot(xt, xc, preferred_element_type=jnp.float32)   # true gram + 1
    d2 = jnp.maximum(sq_t + sq_a + 2.0 - 2.0 * gram_aug, 0.0)        # squared distances
    tn, n = d2.shape
    row = jax.lax.broadcasted_iota(jnp.int32, (tn, n), 0) + pl.program_id(1) * tile_n
    col = jax.lax.broadcasted_iota(jnp.int32, (tn, n), 1)
    d2 = jnp.where(row == col, 0.0, d2)                              # fill_diagonal_(0.0)

    # exact k-th order statistic (counting duplicates) via k min+mask passes
    work = d2
    removed = jnp.zeros((tn, 1), jnp.float32)
    dk2 = jnp.zeros((tn, 1), jnp.float32)
    for _ in range(k_nn):
        cur = jnp.min(work, axis=1, keepdims=True)
        cnt = jnp.sum((work <= cur).astype(jnp.float32), axis=1, keepdims=True)
        active = removed < float(k_nn)
        dk2 = jnp.where(active, cur, dk2)
        removed = removed + jnp.where(active, cnt, 0.0)
        work = jnp.where(work <= cur, _BIG, work)
    dk_ref[0] = dk2                # pad rows of a partial last tile are discarded on writeback


def _knn_gcn_kernel(xt_ref, xc_ref, sqt_ref, sqa_ref, dkr_ref, dkc_ref, o_ref,
                    *, tile_n, apply_relu, dd):
    xt = xt_ref[0]                 # (tn, dd+1)
    xc = xc_ref[0]                 # (dd+1, n)
    sq_t = sqt_ref[0]              # (tn, 1)
    sq_a = sqa_ref[0]              # (1, n)
    dk_r = dkr_ref[0]              # (tn, 1)  row-wise k-th smallest squared distance
    dk_c = dkc_ref[0]              # (1, n)   column-wise k-th smallest squared distance
    gram_aug = jnp.dot(xt, xc, preferred_element_type=jnp.float32)
    d2 = jnp.maximum(sq_t + sq_a + 2.0 - 2.0 * gram_aug, 0.0)
    tn, n = d2.shape
    row = jax.lax.broadcasted_iota(jnp.int32, (tn, n), 0) + pl.program_id(1) * tile_n
    col = jax.lax.broadcasted_iota(jnp.int32, (tn, n), 1)
    diag = row == col
    d2 = jnp.where(diag, 0.0, d2)

    a_row = jnp.where(d2 <= dk_r, 1.0, 0.0)     # (D - dk_i <= 0), squared space (sqrt monotone)
    a_col = jnp.where(d2 <= dk_c, 1.0, 0.0)     # == adj.T entries (D is symmetric)
    a_row = jnp.where(diag, 0.0, a_row)         # fill_diagonal_(0.0)
    a_col = jnp.where(diag, 0.0, a_col)
    adj = 0.5 * (a_row + a_col)                 # (adj + adj.T) / 2
    adj = jnp.where(diag, 1.0, adj)             # fill_diagonal_(1.0)

    # (dd+1, tn) lane-dense aggregation; last row = row-sums (from the ones row of xc).
    y_ext = jax.lax.dot_general(xc, adj, (((1,), (1,)), ((), ())),
                                preferred_element_type=jnp.float32)
    inv_deg = pl.reciprocal(y_ext[dd:dd + 1, :], approx=True)   # rowsum >= 1 (diag entry)
    y = y_ext[:dd, :] * inv_deg                                 # row-normalize after the matmul
    if apply_relu:
        y = jnp.maximum(y, 0.0)
    o_ref[0] = y


def capsule_gcn(x_caps, k_nn, *, apply_relu):
    # x_caps: (ncaps, n, dd).  Returns (ncaps, dd, n) lane-dense per-capsule outputs.
    ncaps, n, dd = x_caps.shape
    assert k_nn < n
    tn = _knn_row_tile(n)
    grid = (ncaps, pl.cdiv(n, tn))

    ones_col = jnp.ones((ncaps, n, 1), jnp.float32)
    xr_aug = jnp.concatenate([x_caps, ones_col], axis=2)            # (ncaps, n, dd+1)
    xc_aug = jnp.transpose(xr_aug, (0, 2, 1))                       # (ncaps, dd+1, n)
    sq = jnp.sum(x_caps * x_caps, axis=2)                           # hoisted squared norms
    sq_col = sq[:, :, None]                                         # (ncaps, n, 1)
    sq_row = sq[:, None, :]                                         # (ncaps, 1, n)

    dk2 = pl.pallas_call(
        functools.partial(_kth_dist_kernel, k_nn=k_nn, tile_n=tn),
        grid=grid,
        out_shape=jax.ShapeDtypeStruct((ncaps, n, 1), jnp.float32),
        in_specs=[
            pl.BlockSpec((1, tn, dd + 1), lambda c, t: (c, t, 0)),
            pl.BlockSpec((1, dd + 1, n), lambda c, t: (c, 0, 0)),
            pl.BlockSpec((1, tn, 1), lambda c, t: (c, t, 0)),
            pl.BlockSpec((1, 1, n), lambda c, t: (c, 0, 0)),
        ],
        out_specs=pl.BlockSpec((1, tn, 1), lambda c, t: (c, t, 0)),
        compiler_params=_cparams("parallel", "parallel"),
    )(xr_aug, xc_aug, sq_col, sq_row)
    dk2_col = dk2.reshape(ncaps, 1, n)          # tiny; column view for symmetrization

    return pl.pallas_call(
        functools.partial(_knn_gcn_kernel, tile_n=tn, apply_relu=apply_relu, dd=dd),
        grid=grid,
        out_shape=jax.ShapeDtypeStruct((ncaps, dd, n), jnp.float32),
        in_specs=[
            pl.BlockSpec((1, tn, dd + 1), lambda c, t: (c, t, 0)),
            pl.BlockSpec((1, dd + 1, n), lambda c, t: (c, 0, 0)),
            pl.BlockSpec((1, tn, 1), lambda c, t: (c, t, 0)),
            pl.BlockSpec((1, 1, n), lambda c, t: (c, 0, 0)),
            pl.BlockSpec((1, tn, 1), lambda c, t: (c, t, 0)),
            pl.BlockSpec((1, 1, n), lambda c, t: (c, 0, 0)),
        ],
        out_specs=pl.BlockSpec((1, dd, tn), lambda c, t: (c, 0, t)),
        compiler_params=_cparams("parallel", "parallel"),
    )(xr_aug, xc_aug, sq_col, sq_row, dk2, dk2_col)


# ----------------------------------------------------------------------------
# Kernel 5: classifier head + log_softmax, row-tiled
# ----------------------------------------------------------------------------
def _mlp_logsoftmax_kernel(x_ref, w_ref, b_ref, o_ref):
    logits = jnp.dot(x_ref[...], w_ref[...],
                     preferred_element_type=jnp.float32) + b_ref[...]
    mx = jnp.max(logits, axis=1, keepdims=True)
    s = logits - mx
    lse = jnp.log(jnp.sum(jnp.exp(s), axis=1, keepdims=True))
    o_ref[...] = s - lse


def mlp_log_softmax(h, w, b):
    n, d = h.shape
    nclass = w.shape[1]
    tn = _row_tile(n)
    return pl.pallas_call(
        _mlp_logsoftmax_kernel,
        grid=(pl.cdiv(n, tn),),
        out_shape=jax.ShapeDtypeStruct((n, nclass), jnp.float32),
        in_specs=[
            pl.BlockSpec((tn, d), lambda i: (i, 0)),
            pl.BlockSpec((d, nclass), lambda i: (0, 0)),
            pl.BlockSpec((1, nclass), lambda i: (0, 0)),
        ],
        out_specs=pl.BlockSpec((tn, nclass), lambda i: (i, 0)),
        compiler_params=_cparams("parallel"),
    )(h, w, b.reshape(1, -1))


# ----------------------------------------------------------------------------
# Full CapsuleNet forward
# ----------------------------------------------------------------------------
def capsule_net_forward(x, nb, params, *, ncaps, nhidden, nlayer, routit, k_nn):
    n = x.shape[0]
    rep_dim = ncaps * nhidden
    m = nb.shape[1]

    h = pca_relu(x, params["pca_w"], params["pca_b"])        # relu(pca(x))
    consts = _routing_constants(ncaps, nhidden, m)

    hidden_xs = []
    for idx_l in range(nlayer):
        last = idx_l == nlayer - 1
        u = routing_layer(h, nb, consts, ncaps=ncaps, nhidden=nhidden,
                          max_iter=routit, apply_relu=not last)   # (n, rep_dim)
        if last:
            hidden_xs.append(u)                                   # pre-relu routing output
            x_caps = jnp.transpose(u.reshape(n, ncaps, nhidden), (1, 0, 2))  # (ncaps, n, dd)
            out_caps = capsule_gcn(x_caps, k_nn, apply_relu=True)            # (ncaps, dd, n)
            h = jnp.transpose(out_caps, (2, 0, 1)).reshape(n, rep_dim)
        else:
            h = u                                                 # relu folded in kernel
        # TODO(synk): dropout implemented in eval mode (identity); training-mode RNG mask omitted.

    logp = mlp_log_softmax(h, params["mlp_w"], params["mlp_b"])
    return logp, h, hidden_xs


if __name__ == "__main__":
    n, m = 16, 8                 # nodes, neighbors per node
    nfeat, nclass = 32, 7
    ncaps, nhidden = 4, 16       # rep_dim = 64
    nlayer, routit, k_nn = 2, 3, 4
    rep_dim = ncaps * nhidden

    key = jax.random.PRNGKey(0)
    k1, k2, k3, k4, k5, k6 = jax.random.split(key, 6)

    x = jax.random.normal(k1, (n, nfeat), dtype=jnp.float32)
    # neighbor indices in [0, n]; value n selects the zero-padding row
    nb = jax.random.randint(k2, (n, m), 0, n + 1, dtype=jnp.int32)

    stdv = 1.0 / (rep_dim ** 0.5)
    params = {
        "pca_w": jax.random.uniform(k3, (nfeat, rep_dim), jnp.float32, -stdv, stdv),
        "pca_b": jax.random.uniform(k4, (rep_dim,), jnp.float32, -stdv, stdv),
        "mlp_w": jax.random.uniform(k5, (rep_dim, nclass), jnp.float32, -stdv, stdv),
        "mlp_b": jax.random.uniform(k6, (nclass,), jnp.float32, -stdv, stdv),
    }

    fwd = jax.jit(functools.partial(
        capsule_net_forward,
        ncaps=ncaps, nhidden=nhidden, nlayer=nlayer, routit=routit, k_nn=k_nn))

    logp, x_out, hidden_xs = fwd(x, nb, params)
    jax.block_until_ready((logp, x_out, hidden_xs))

    assert logp.shape == (n, nclass)
    assert x_out.shape == (n, rep_dim)
    assert hidden_xs[0].shape == (n, rep_dim)
    assert bool(jnp.all(jnp.isfinite(logp)))
    assert bool(jnp.all(jnp.isfinite(x_out)))
    print("KERNEL_OK")
</pallas_src>

<mosaic_0001>
module attributes {stable_mosaic.version = 11 : i64} {
  func.func @_linear_relu_kernel(%arg0: i32, %arg1: memref<16x32xf32, #tpu.memory_space<vmem>>, %arg2: memref<32x64xf32, #tpu.memory_space<vmem>>, %arg3: memref<1x64xf32, #tpu.memory_space<vmem>>, %arg4: memref<16x64xf32, #tpu.memory_space<vmem>>) attributes {dimension_semantics = [#tpu.dimension_semantics<parallel>], iteration_bounds = array<i64: 1>, scalar_prefetch = 0 : i64, scratch_operands = 0 : i64, tpu.core_type = #tpu.core_type<tc>, window_params = [{transform_indices = @transform_0, window_bounds = array<i64: 16, 32>}, {pipeline_mode = #tpu.pipeline_mode<synchronous>, transform_indices = @transform_1, window_bounds = array<i64: 32, 64>}, {pipeline_mode = #tpu.pipeline_mode<synchronous>, transform_indices = @transform_2, window_bounds = array<i64: 1, 64>}, {transform_indices = @transform_3, window_bounds = array<i64: 16, 64>}]} {
    %c0 = arith.constant 0 : index
    %c0_0 = arith.constant 0 : index
    %0 = vector.load %arg1[%c0, %c0_0] : memref<16x32xf32, #tpu.memory_space<vmem>>, vector<16x32xf32>
    %c0_1 = arith.constant 0 : index
    %c0_2 = arith.constant 0 : index
    %1 = vector.load %arg2[%c0_1, %c0_2] : memref<32x64xf32, #tpu.memory_space<vmem>>, vector<32x64xf32>
    %cst = arith.constant dense<0.000000e+00> : vector<16x64xf32>
    %2 = tpu.matmul %0, %1, %cst {dimension_numbers = #tpu.dot_dimension_numbers<[1], [0], [0], [1], [0, 0, 1, 1], [], []>} : vector<16x32xf32>, vector<32x64xf32>, vector<16x64xf32> -> vector<16x64xf32>
    %c0_3 = arith.constant 0 : index
    %c0_4 = arith.constant 0 : index
    %3 = vector.load %arg3[%c0_3, %c0_4] : memref<1x64xf32, #tpu.memory_space<vmem>>, vector<1x64xf32>
    %4 = vector.broadcast %3 : vector<1x64xf32> to vector<16x64xf32>
    %5 = arith.addf %2, %4 : vector<16x64xf32>
    %cst_5 = arith.constant 0.000000e+00 : f32
    %6 = vector.broadcast %cst_5 : f32 to vector<16x64xf32>
    %7 = arith.maximumf %5, %6 : vector<16x64xf32>
    %c0_6 = arith.constant 0 : index
    %c0_7 = arith.constant 0 : index
    %8 = vector.load %arg4[%c0_6, %c0_7] : memref<16x64xf32, #tpu.memory_space<vmem>>, vector<16x64xf32>
    tpu.vector_store %arg4[%c0_6, %c0_7], %7 {strides = array<i32>} : memref<16x64xf32, #tpu.memory_space<vmem>>, vector<16x64xf32>,
    return
  }
  func.func @transform_0(%arg0: i32) -> (i32, i32) {
    %c0_i32 = arith.constant 0 : i32
    %c0_i32_0 = arith.constant 0 : i32
    return %arg0, %c0_i32 : i32, i32
  }
  func.func @transform_1(%arg0: i32) -> (i32, i32) {
    %c0_i32 = arith.constant 0 : i32
    %c0_i32_0 = arith.constant 0 : i32
    %c0_i32_1 = arith.constant 0 : i32
    return %c0_i32, %c0_i32_0 : i32, i32
  }
  func.func @transform_2(%arg0: i32) -> (i32, i32) {
    %c0_i32 = arith.constant 0 : i32
    %c0_i32_0 = arith.constant 0 : i32
    %c0_i32_1 = arith.constant 0 : i32
    return %c0_i32, %c0_i32_0 : i32, i32
  }
  func.func @transform_3(%arg0: i32) -> (i32, i32) {
    %c0_i32 = arith.constant 0 : i32
    %c0_i32_0 = arith.constant 0 : i32
    return %arg0, %c0_i32 : i32, i32
  }
}

module attributes {stable_mosaic.version = 11 : i64} {
  func.func @_routing_kernel(%arg0: i32, %arg1: memref<16x512xbf16, #tpu.memory_space<vmem>>, %arg2: memref<16x64xf32, #tpu.memory_space<vmem>>, %arg3: memref<64x512xf32, #tpu.memory_space<vmem>>, %arg4: memref<512x32xf32, #tpu.memory_space<vmem>>, %arg5: memref<32x32xf32, #tpu.memory_space<vmem>>, %arg6: memref<32x512xf32, #tpu.memory_space<vmem>>, %arg7: memref<512x64xf32, #tpu.memory_space<vmem>>, %arg8: memref<64x4xf32, #tpu.memory_space<vmem>>, %arg9: memref<4x64xf32, #tpu.memory_space<vmem>>, %arg10: memref<16x64xf32, #tpu.memory_space<vmem>>) attributes {dimension_semantics = [#tpu.dimension_semantics<parallel>], iteration_bounds = array<i64: 1>, scalar_prefetch = 0 : i64, scratch_operands = 0 : i64, tpu.core_type = #tpu.core_type<tc>, window_params = [{transform_indices = @transform_0, window_bounds = array<i64: 16, 512>}, {transform_indices = @transform_1, window_bounds = array<i64: 16, 64>}, {pipeline_mode = #tpu.pipeline_mode<synchronous>, transform_indices = @transform_2, window_bounds = array<i64: 64, 512>}, {pipeline_mode = #tpu.pipeline_mode<synchronous>, transform_indices = @transform_3, window_bounds = array<i64: 512, 32>}, {pipeline_mode = #tpu.pipeline_mode<synchronous>, transform_indices = @transform_4, window_bounds = array<i64: 32, 32>}, {pipeline_mode = #tpu.pipeline_mode<synchronous>, transform_indices = @transform_5, window_bounds = array<i64: 32, 512>}, {pipeline_mode = #tpu.pipeline_mode<synchronous>, transform_indices = @transform_6, window_bounds = array<i64: 512, 64>}, {pipeline_mode = #tpu.pipeline_mode<synchronous>, transform_indices = @transform_7, window_bounds = array<i64: 64, 4>}, {pipeline_mode = #tpu.pipeline_mode<synchronous>, transform_indices = @transform_8, window_bounds = array<i64: 4, 64>}, {transform_indices = @transform_9, window_bounds = array<i64: 16, 64>}]} {
    %c0 = arith.constant 0 : index
    %c0_0 = arith.constant 0 : index
    %0 = vector.load %arg1[%c0, %c0_0] : memref<16x512xbf16, #tpu.memory_space<vmem>>, vector<16x512xbf16>
    %c0_1 = arith.constant 0 : index
    %c0_2 = arith.constant 0 : index
    %1 = vector.load %arg2[%c0_1, %c0_2] : memref<16x64xf32, #tpu.memory_space<vmem>>, vector<16x64xf32>
    %c0_3 = arith.constant 0 : index
    %c0_4 = arith.constant 0 : index
    %2 = vector.load %arg3[%c0_3, %c0_4] : memref<64x512xf32, #tpu.memory_space<vmem>>, vector<64x512xf32>
    %c0_5 = arith.constant 0 : index
    %c0_6 = arith.constant 0 : index
    %3 = vector.load %arg4[%c0_5, %c0_6] : memref<512x32xf32, #tpu.memory_space<vmem>>, vector<512x32xf32>
    %c0_7 = arith.constant 0 : index
    %c0_8 = arith.constant 0 : index
    %4 = vector.load %arg5[%c0_7, %c0_8] : memref<32x32xf32, #tpu.memory_space<vmem>>, vector<32x32xf32>
    %c0_9 = arith.constant 0 : index
    %c0_10 = arith.constant 0 : index
    %5 = vector.load %arg6[%c0_9, %c0_10] : memref<32x512xf32, #tpu.memory_space<vmem>>, vector<32x512xf32>
    %c0_11 = arith.constant 0 : index
    %c0_12 = arith.constant 0 : index
    %6 = vector.load %arg7[%c0_11, %c0_12] : memref<512x64xf32, #tpu.memory_space<vmem>>, vector<512x64xf32>
    %c0_13 = arith.constant 0 : index
    %c0_14 = arith.constant 0 : index
    %7 = vector.load %arg8[%c0_13, %c0_14] : memref<64x4xf32, #tpu.memory_space<vmem>>, vector<64x4xf32>
    %c0_15 = arith.constant 0 : index
    %c0_16 = arith.constant 0 : index
    %8 = vector.load %arg9[%c0_15, %c0_16] : memref<4x64xf32, #tpu.memory_space<vmem>>, vector<4x64xf32>
    %cst = arith.constant dense<0.000000e+00> : vector<16x64xf32>
    %9 = tpu.matmul %0, %6, %cst {dimension_numbers = #tpu.dot_dimension_numbers<[1], [0], [0], [1], [0, 0, 1, 1], [], []>} : vector<16x512xbf16>, vector<512x64xf32>, vector<16x64xf32> -> vector<16x64xf32>
    %cst_17 = arith.constant 2.500000e-01 : f32
    %10 = vector.broadcast %cst_17 : f32 to vector<16x64xf32>
    %11 = arith.mulf %10, %9 : vector<16x64xf32>
    %12 = arith.addf %1, %11 : vector<16x64xf32>
    %13 = arith.mulf %12, %12 : vector<16x64xf32>
    %cst_18 = arith.constant dense<0.000000e+00> : vector<16x4xf32>
    %14 = tpu.matmul %13, %7, %cst_18 {dimension_numbers = #tpu.dot_dimension_numbers<[1], [0], [0], [1], [0, 0, 1, 1], [], []>} : vector<16x64xf32>, vector<64x4xf32>, vector<16x4xf32> -> vector<16x4xf32>
    %cst_19 = arith.constant dense<0.000000e+00> : vector<16x64xf32>
    %15 = tpu.matmul %14, %8, %cst_19 {dimension_numbers = #tpu.dot_dimension_numbers<[1], [0], [0], [1], [0, 0, 1, 1], [], []>} : vector<16x4xf32>, vector<4x64xf32>, vector<16x64xf32> -> vector<16x64xf32>
    %cst_20 = arith.constant 1.000000e-24 : f32
    %16 = vector.broadcast %cst_20 : f32 to vector<16x64xf32>
    %17 = arith.maximumf %15, %16 : vector<16x64xf32>
    %18 = math.rsqrt %17 : vector<16x64xf32>
    %19 = arith.mulf %12, %18 : vector<16x64xf32>
    %cst_21 = arith.constant dense<0.000000e+00> : vector<16x512xf32>
    %20 = tpu.matmul %19, %2, %cst_21 {dimension_numbers = #tpu.dot_dimension_numbers<[1], [0], [0], [1], [0, 0, 1, 1], [], []>} : vector<16x64xf32>, vector<64x512xf32>, vector<16x512xf32> -> vector<16x512xf32>
    %21 = arith.extf %0 : vector<16x512xbf16> to vector<16x512xf32>
    %22 = arith.mulf %21, %20 : vector<16x512xf32>
    %cst_22 = arith.constant dense<0.000000e+00> : vector<16x32xf32>
    %23 = tpu.matmul %22, %3, %cst_22 {dimension_numbers = #tpu.dot_dimension_numbers<[1], [0], [0], [1], [0, 0, 1, 1], [], []>} : vector<16x512xf32>, vector<512x32xf32>, vector<16x32xf32> -> vector<16x32xf32>
    %24 = math.exp %23 : vector<16x32xf32>
    %cst_23 = arith.constant dense<0.000000e+00> : vector<16x32xf32>
    %25 = tpu.matmul %24, %4, %cst_23 {dimension_numbers = #tpu.dot_dimension_numbers<[1], [0], [0], [1], [0, 0, 1, 1], [], []>} : vector<16x32xf32>, vector<32x32xf32>, vector<16x32xf32> -> vector<16x32xf32>
    %26 = tpu.reciprocal %25 {approx = true} : vector<16x32xf32> -> vector<16x32xf32>
    %27 = arith.mulf %24, %26 : vector<16x32xf32>
    %cst_24 = arith.constant dense<0.000000e+00> : vector<16x512xf32>
    %28 = tpu.matmul %27, %5, %cst_24 {dimension_numbers = #tpu.dot_dimension_numbers<[1], [0], [0], [1], [0, 0, 1, 1], [], []>} : vector<16x32xf32>, vector<32x512xf32>, vector<16x512xf32> -> vector<16x512xf32>
    %29 = arith.extf %0 : vector<16x512xbf16> to vector<16x512xf32>
    %30 = arith.mulf %29, %28 : vector<16x512xf32>
    %cst_25 = arith.constant dense<0.000000e+00> : vector<16x64xf32>
    %31 = tpu.matmul %30, %6, %cst_25 {dimension_numbers = #tpu.dot_dimension_numbers<[1], [0], [0], [1], [0, 0, 1, 1], [], []>} : vector<16x512xf32>, vector<512x64xf32>, vector<16x64xf32> -> vector<16x64xf32>
    %32 = arith.addf %1, %31 : vector<16x64xf32>
    %33 = arith.mulf %32, %32 : vector<16x64xf32>
    %cst_26 = arith.constant dense<0.000000e+00> : vector<16x4xf32>
    %34 = tpu.matmul %33, %7, %cst_26 {dimension_numbers = #tpu.dot_dimension_numbers<[1], [0], [0], [1], [0, 0, 1, 1], [], []>} : vector<16x64xf32>, vector<64x4xf32>, vector<16x4xf32> -> vector<16x4xf32>
    %cst_27 = arith.constant dense<0.000000e+00> : vector<16x64xf32>
    %35 = tpu.matmul %34, %8, %cst_27 {dimension_numbers = #tpu.dot_dimension_numbers<[1], [0], [0], [1], [0, 0, 1, 1], [], []>} : vector<16x4xf32>, vector<4x64xf32>, vector<16x64xf32> -> vector<16x64xf32>
    %cst_28 = arith.constant 1.000000e-24 : f32
    %36 = vector.broadcast %cst_28 : f32 to vector<16x64xf32>
    %37 = arith.maximumf %35, %36 : vector<16x64xf32>
    %38 = math.rsqrt %37 : vector<16x64xf32>
    %39 = arith.mulf %32, %38 : vector<16x64xf32>
    %cst_29 = arith.constant dense<0.000000e+00> : vector<16x512xf32>
    %40 = tpu.matmul %39, %2, %cst_29 {dimension_numbers = #tpu.dot_dimension_numbers<[1], [0], [0], [1], [0, 0, 1, 1], [], []>} : vector<16x64xf32>, vector<64x512xf32>, vector<16x512xf32> -> vector<16x512xf32>
    %41 = arith.extf %0 : vector<16x512xbf16> to vector<16x512xf32>
    %42 = arith.mulf %41, %40 : vector<16x512xf32>
    %cst_30 = arith.constant dense<0.000000e+00> : vector<16x32xf32>
    %43 = tpu.matmul %42, %3, %cst_30 {dimension_numbers = #tpu.dot_dimension_numbers<[1], [0], [0], [1], [0, 0, 1, 1], [], []>} : vector<16x512xf32>, vector<512x32xf32>, vector<16x32xf32> -> vector<16x32xf32>
    %44 = math.exp %43 : vector<16x32xf32>
    %cst_31 = arith.constant dense<0.000000e+00> : vector<16x32xf32>
    %45 = tpu.matmul %44, %4, %cst_31 {dimension_numbers = #tpu.dot_dimension_numbers<[1], [0], [0], [1], [0, 0, 1, 1], [], []>} : vector<16x32xf32>, vector<32x32xf32>, vector<16x32xf32> -> vector<16x32xf32>
    %46 = tpu.reciprocal %45 {approx = true} : vector<16x32xf32> -> vector<16x32xf32>
    %47 = arith.mulf %44, %46 : vector<16x32xf32>
    %cst_32 = arith.constant dense<0.000000e+00> : vector<16x512xf32>
    %48 = tpu.matmul %47, %5, %cst_32 {dimension_numbers = #tpu.dot_dimension_numbers<[1], [0], [0], [1], [0, 0, 1, 1], [], []>} : vector<16x32xf32>, vector<32x512xf32>, vector<16x512xf32> -> vector<16x512xf32>
    %49 = arith.extf %0 : vector<16x512xbf16> to vector<16x512xf32>
    %50 = arith.mulf %49, %48 : vector<16x512xf32>
    %cst_33 = arith.constant dense<0.000000e+00> : vector<16x64xf32>
    %51 = tpu.matmul %50, %6, %cst_33 {dimension_numbers = #tpu.dot_dimension_numbers<[1], [0], [0], [1], [0, 0, 1, 1], [], []>} : vector<16x512xf32>, vector<512x64xf32>, vector<16x64xf32> -> vector<16x64xf32>
    %52 = arith.addf %1, %51 : vector<16x64xf32>
    %cst_34 = arith.constant 0.000000e+00 : f32
    %53 = vector.broadcast %cst_34 : f32 to vector<16x64xf32>
    %54 = arith.maximumf %52, %53 : vector<16x64xf32>
    %c0_35 = arith.constant 0 : index
    %c0_36 = arith.constant 0 : index
    %55 = vector.load %arg10[%c0_35, %c0_36] : memref<16x64xf32, #tpu.memory_space<vmem>>, vector<16x64xf32>
    tpu.vector_store %arg10[%c0_35, %c0_36], %54 {strides = array<i32>} : memref<16x64xf32, #tpu.memory_space<vmem>>, vector<16x64xf32>,
    return
  }
  func.func @transform_0(%arg0: i32) -> (i32, i32) {
    %c0_i32 = arith.constant 0 : i32
    %c0_i32_0 = arith.constant 0 : i32
    return %arg0, %c0_i32 : i32, i32
  }
  func.func @transform_1(%arg0: i32) -> (i32, i32) {
    %c0_i32 = arith.constant 0 : i32
    %c0_i32_0 = arith.constant 0 : i32
    return %arg0, %c0_i32 : i32, i32
  }
  func.func @transform_2(%arg0: i32) -> (i32, i32) {
    %c0_i32 = arith.constant 0 : i32
    %c0_i32_0 = arith.constant 0 : i32
    %c0_i32_1 = arith.constant 0 : i32
    return %c0_i32, %c0_i32_0 : i32, i32
  }
  func.func @transform_3(%arg0: i32) -> (i32, i32) {
    %c0_i32 = arith.constant 0 : i32
    %c0_i32_0 = arith.constant 0 : i32
    %c0_i32_1 = arith.constant 0 : i32
    return %c0_i32, %c0_i32_0 : i32, i32
  }
  func.func @transform_4(%arg0: i32) -> (i32, i32) {
    %c0_i32 = arith.constant 0 : i32
    %c0_i32_0 = arith.constant 0 : i32
    %c0_i32_1 = arith.constant 0 : i32
    return %c0_i32, %c0_i32_0 : i32, i32
  }
  func.func @transform_5(%arg0: i32) -> (i32, i32) {
    %c0_i32 = arith.constant 0 : i32
    %c0_i32_0 = arith.constant 0 : i32
    %c0_i32_1 = arith.constant 0 : i32
    return %c0_i32, %c0_i32_0 : i32, i32
  }
  func.func @transform_6(%arg0: i32) -> (i32, i32) {
    %c0_i32 = arith.constant 0 : i32
    %c0_i32_0 = arith.constant 0 : i32
    %c0_i32_1 = arith.constant 0 : i32
    return %c0_i32, %c0_i32_0 : i32, i32
  }
  func.func @transform_7(%arg0: i32) -> (i32, i32) {
    %c0_i32 = arith.constant 0 : i32
    %c0_i32_0 = arith.constant 0 : i32
    %c0_i32_1 = arith.constant 0 : i32
    return %c0_i32, %c0_i32_0 : i32, i32
  }
  func.func @transform_8(%arg0: i32) -> (i32, i32) {
    %c0_i32 = arith.constant 0 : i32
    %c0_i32_0 = arith.constant 0 : i32
    %c0_i32_1 = arith.constant 0 : i32
    return %c0_i32, %c0_i32_0 : i32, i32
  }
  func.func @transform_9(%arg0: i32) -> (i32, i32) {
    %c0_i32 = arith.constant 0 : i32
    %c0_i32_0 = arith.constant 0 : i32
    return %arg0, %c0_i32 : i32, i32
  }
}

module attributes {stable_mosaic.version = 11 : i64} {
  func.func @_routing_kernel(%arg0: i32, %arg1: memref<16x512xbf16, #tpu.memory_space<vmem>>, %arg2: memref<16x64xf32, #tpu.memory_space<vmem>>, %arg3: memref<64x512xf32, #tpu.memory_space<vmem>>, %arg4: memref<512x32xf32, #tpu.memory_space<vmem>>, %arg5: memref<32x32xf32, #tpu.memory_space<vmem>>, %arg6: memref<32x512xf32, #tpu.memory_space<vmem>>, %arg7: memref<512x64xf32, #tpu.memory_space<vmem>>, %arg8: memref<64x4xf32, #tpu.memory_space<vmem>>, %arg9: memref<4x64xf32, #tpu.memory_space<vmem>>, %arg10: memref<16x64xf32, #tpu.memory_space<vmem>>) attributes {dimension_semantics = [#tpu.dimension_semantics<parallel>], iteration_bounds = array<i64: 1>, scalar_prefetch = 0 : i64, scratch_operands = 0 : i64, tpu.core_type = #tpu.core_type<tc>, window_params = [{transform_indices = @transform_0, window_bounds = array<i64: 16, 512>}, {transform_indices = @transform_1, window_bounds = array<i64: 16, 64>}, {pipeline_mode = #tpu.pipeline_mode<synchronous>, transform_indices = @transform_2, window_bounds = array<i64: 64, 512>}, {pipeline_mode = #tpu.pipeline_mode<synchronous>, transform_indices = @transform_3, window_bounds = array<i64: 512, 32>}, {pipeline_mode = #tpu.pipeline_mode<synchronous>, transform_indices = @transform_4, window_bounds = array<i64: 32, 32>}, {pipeline_mode = #tpu.pipeline_mode<synchronous>, transform_indices = @transform_5, window_bounds = array<i64: 32, 512>}, {pipeline_mode = #tpu.pipeline_mode<synchronous>, transform_indices = @transform_6, window_bounds = array<i64: 512, 64>}, {pipeline_mode = #tpu.pipeline_mode<synchronous>, transform_indices = @transform_7, window_bounds = array<i64: 64, 4>}, {pipeline_mode = #tpu.pipeline_mode<synchronous>, transform_indices = @transform_8, window_bounds = array<i64: 4, 64>}, {transform_indices = @transform_9, window_bounds = array<i64: 16, 64>}]} {
    %c0 = arith.constant 0 : index
    %c0_0 = arith.constant 0 : index
    %0 = vector.load %arg1[%c0, %c0_0] : memref<16x512xbf16, #tpu.memory_space<vmem>>, vector<16x512xbf16>
    %c0_1 = arith.constant 0 : index
    %c0_2 = arith.constant 0 : index
    %1 = vector.load %arg2[%c0_1, %c0_2] : memref<16x64xf32, #tpu.memory_space<vmem>>, vector<16x64xf32>
    %c0_3 = arith.constant 0 : index
    %c0_4 = arith.constant 0 : index
    %2 = vector.load %arg3[%c0_3, %c0_4] : memref<64x512xf32, #tpu.memory_space<vmem>>, vector<64x512xf32>
    %c0_5 = arith.constant 0 : index
    %c0_6 = arith.constant 0 : index
    %3 = vector.load %arg4[%c0_5, %c0_6] : memref<512x32xf32, #tpu.memory_space<vmem>>, vector<512x32xf32>
    %c0_7 = arith.constant 0 : index
    %c0_8 = arith.constant 0 : index
    %4 = vector.load %arg5[%c0_7, %c0_8] : memref<32x32xf32, #tpu.memory_space<vmem>>, vector<32x32xf32>
    %c0_9 = arith.constant 0 : index
    %c0_10 = arith.constant 0 : index
    %5 = vector.load %arg6[%c0_9, %c0_10] : memref<32x512xf32, #tpu.memory_space<vmem>>, vector<32x512xf32>
    %c0_11 = arith.constant 0 : index
    %c0_12 = arith.constant 0 : index
    %6 = vector.load %arg7[%c0_11, %c0_12] : memref<512x64xf32, #tpu.memory_space<vmem>>, vector<512x64xf32>
    %c0_13 = arith.constant 0 : index
    %c0_14 = arith.constant 0 : index
    %7 = vector.load %arg8[%c0_13, %c0_14] : memref<64x4xf32, #tpu.memory_space<vmem>>, vector<64x4xf32>
    %c0_15 = arith.constant 0 : index
    %c0_16 = arith.constant 0 : index
    %8 = vector.load %arg9[%c0_15, %c0_16] : memref<4x64xf32, #tpu.memory_space<vmem>>, vector<4x64xf32>
    %cst = arith.constant dense<0.000000e+00> : vector<16x64xf32>
    %9 = tpu.matmul %0, %6, %cst {dimension_numbers = #tpu.dot_dimension_numbers<[1], [0], [0], [1], [0, 0, 1, 1], [], []>} : vector<16x512xbf16>, vector<512x64xf32>, vector<16x64xf32> -> vector<16x64xf32>
    %cst_17 = arith.constant 2.500000e-01 : f32
    %10 = vector.broadcast %cst_17 : f32 to vector<16x64xf32>
    %11 = arith.mulf %10, %9 : vector<16x64xf32>
    %12 = arith.addf %1, %11 : vector<16x64xf32>
    %13 = arith.mulf %12, %12 : vector<16x64xf32>
    %cst_18 = arith.constant dense<0.000000e+00> : vector<16x4xf32>
    %14 = tpu.matmul %13, %7, %cst_18 {dimension_numbers = #tpu.dot_dimension_numbers<[1], [0], [0], [1], [0, 0, 1, 1], [], []>} : vector<16x64xf32>, vector<64x4xf32>, vector<16x4xf32> -> vector<16x4xf32>
    %cst_19 = arith.constant dense<0.000000e+00> : vector<16x64xf32>
    %15 = tpu.matmul %14, %8, %cst_19 {dimension_numbers = #tpu.dot_dimension_numbers<[1], [0], [0], [1], [0, 0, 1, 1], [], []>} : vector<16x4xf32>, vector<4x64xf32>, vector<16x64xf32> -> vector<16x64xf32>
    %cst_20 = arith.constant 1.000000e-24 : f32
    %16 = vector.broadcast %cst_20 : f32 to vector<16x64xf32>
    %17 = arith.maximumf %15, %16 : vector<16x64xf32>
    %18 = math.rsqrt %17 : vector<16x64xf32>
    %19 = arith.mulf %12, %18 : vector<16x64xf32>
    %cst_21 = arith.constant dense<0.000000e+00> : vector<16x512xf32>
    %20 = tpu.matmul %19, %2, %cst_21 {dimension_numbers = #tpu.dot_dimension_numbers<[1], [0], [0], [1], [0, 0, 1, 1], [], []>} : vector<16x64xf32>, vector<64x512xf32>, vector<16x512xf32> -> vector<16x512xf32>
    %21 = arith.extf %0 : vector<16x512xbf16> to vector<16x512xf32>
    %22 = arith.mulf %21, %20 : vector<16x512xf32>
    %cst_22 = arith.constant dense<0.000000e+00> : vector<16x32xf32>
    %23 = tpu.matmul %22, %3, %cst_22 {dimension_numbers = #tpu.dot_dimension_numbers<[1], [0], [0], [1], [0, 0, 1, 1], [], []>} : vector<16x512xf32>, vector<512x32xf32>, vector<16x32xf32> -> vector<16x32xf32>
    %24 = math.exp %23 : vector<16x32xf32>
    %cst_23 = arith.constant dense<0.000000e+00> : vector<16x32xf32>
    %25 = tpu.matmul %24, %4, %cst_23 {dimension_numbers = #tpu.dot_dimension_numbers<[1], [0], [0], [1], [0, 0, 1, 1], [], []>} : vector<16x32xf32>, vector<32x32xf32>, vector<16x32xf32> -> vector<16x32xf32>
    %26 = tpu.reciprocal %25 {approx = true} : vector<16x32xf32> -> vector<16x32xf32>
    %27 = arith.mulf %24, %26 : vector<16x32xf32>
    %cst_24 = arith.constant dense<0.000000e+00> : vector<16x512xf32>
    %28 = tpu.matmul %27, %5, %cst_24 {dimension_numbers = #tpu.dot_dimension_numbers<[1], [0], [0], [1], [0, 0, 1, 1], [], []>} : vector<16x32xf32>, vector<32x512xf32>, vector<16x512xf32> -> vector<16x512xf32>
    %29 = arith.extf %0 : vector<16x512xbf16> to vector<16x512xf32>
    %30 = arith.mulf %29, %28 : vector<16x512xf32>
    %cst_25 = arith.constant dense<0.000000e+00> : vector<16x64xf32>
    %31 = tpu.matmul %30, %6, %cst_25 {dimension_numbers = #tpu.dot_dimension_numbers<[1], [0], [0], [1], [0, 0, 1, 1], [], []>} : vector<16x512xf32>, vector<512x64xf32>, vector<16x64xf32> -> vector<16x64xf32>
    %32 = arith.addf %1, %31 : vector<16x64xf32>
    %33 = arith.mulf %32, %32 : vector<16x64xf32>
    %cst_26 = arith.constant dense<0.000000e+00> : vector<16x4xf32>
    %34 = tpu.matmul %33, %7, %cst_26 {dimension_numbers = #tpu.dot_dimension_numbers<[1], [0], [0], [1], [0, 0, 1, 1], [], []>} : vector<16x64xf32>, vector<64x4xf32>, vector<16x4xf32> -> vector<16x4xf32>
    %cst_27 = arith.constant dense<0.000000e+00> : vector<16x64xf32>
    %35 = tpu.matmul %34, %8, %cst_27 {dimension_numbers = #tpu.dot_dimension_numbers<[1], [0], [0], [1], [0, 0, 1, 1], [], []>} : vector<16x4xf32>, vector<4x64xf32>, vector<16x64xf32> -> vector<16x64xf32>
    %cst_28 = arith.constant 1.000000e-24 : f32
    %36 = vector.broadcast %cst_28 : f32 to vector<16x64xf32>
    %37 = arith.maximumf %35, %36 : vector<16x64xf32>
    %38 = math.rsqrt %37 : vector<16x64xf32>
    %39 = arith.mulf %32, %38 : vector<16x64xf32>
    %cst_29 = arith.constant dense<0.000000e+00> : vector<16x512xf32>
    %40 = tpu.matmul %39, %2, %cst_29 {dimension_numbers = #tpu.dot_dimension_numbers<[1], [0], [0], [1], [0, 0, 1, 1], [], []>} : vector<16x64xf32>, vector<64x512xf32>, vector<16x512xf32> -> vector<16x512xf32>
    %41 = arith.extf %0 : vector<16x512xbf16> to vector<16x512xf32>
    %42 = arith.mulf %41, %40 : vector<16x512xf32>
    %cst_30 = arith.constant dense<0.000000e+00> : vector<16x32xf32>
    %43 = tpu.matmul %42, %3, %cst_30 {dimension_numbers = #tpu.dot_dimension_numbers<[1], [0], [0], [1], [0, 0, 1, 1], [], []>} : vector<16x512xf32>, vector<512x32xf32>, vector<16x32xf32> -> vector<16x32xf32>
    %44 = math.exp %43 : vector<16x32xf32>
    %cst_31 = arith.constant dense<0.000000e+00> : vector<16x32xf32>
    %45 = tpu.matmul %44, %4, %cst_31 {dimension_numbers = #tpu.dot_dimension_numbers<[1], [0], [0], [1], [0, 0, 1, 1], [], []>} : vector<16x32xf32>, vector<32x32xf32>, vector<16x32xf32> -> vector<16x32xf32>
    %46 = tpu.reciprocal %45 {approx = true} : vector<16x32xf32> -> vector<16x32xf32>
    %47 = arith.mulf %44, %46 : vector<16x32xf32>
    %cst_32 = arith.constant dense<0.000000e+00> : vector<16x512xf32>
    %48 = tpu.matmul %47, %5, %cst_32 {dimension_numbers = #tpu.dot_dimension_numbers<[1], [0], [0], [1], [0, 0, 1, 1], [], []>} : vector<16x32xf32>, vector<32x512xf32>, vector<16x512xf32> -> vector<16x512xf32>
    %49 = arith.extf %0 : vector<16x512xbf16> to vector<16x512xf32>
    %50 = arith.mulf %49, %48 : vector<16x512xf32>
    %cst_33 = arith.constant dense<0.000000e+00> : vector<16x64xf32>
    %51 = tpu.matmul %50, %6, %cst_33 {dimension_numbers = #tpu.dot_dimension_numbers<[1], [0], [0], [1], [0, 0, 1, 1], [], []>} : vector<16x512xf32>, vector<512x64xf32>, vector<16x64xf32> -> vector<16x64xf32>
    %52 = arith.addf %1, %51 : vector<16x64xf32>
    %c0_34 = arith.constant 0 : index
    %c0_35 = arith.constant 0 : index
    %53 = vector.load %arg10[%c0_34, %c0_35] : memref<16x64xf32, #tpu.memory_space<vmem>>, vector<16x64xf32>
    tpu.vector_store %arg10[%c0_34, %c0_35], %52 {strides = array<i32>} : memref<16x64xf32, #tpu.memory_space<vmem>>, vector<16x64xf32>,
    return
  }
  func.func @transform_0(%arg0: i32) -> (i32, i32) {
    %c0_i32 = arith.constant 0 : i32
    %c0_i32_0 = arith.constant 0 : i32
    return %arg0, %c0_i32 : i32, i32
  }
  func.func @transform_1(%arg0: i32) -> (i32, i32) {
    %c0_i32 = arith.constant 0 : i32
    %c0_i32_0 = arith.constant 0 : i32
    return %arg0, %c0_i32 : i32, i32
  }
  func.func @transform_2(%arg0: i32) -> (i32, i32) {
    %c0_i32 = arith.constant 0 : i32
    %c0_i32_0 = arith.constant 0 : i32
    %c0_i32_1 = arith.constant 0 : i32
    return %c0_i32, %c0_i32_0 : i32, i32
  }
  func.func @transform_3(%arg0: i32) -> (i32, i32) {
    %c0_i32 = arith.constant 0 : i32
    %c0_i32_0 = arith.constant 0 : i32
    %c0_i32_1 = arith.constant 0 : i32
    return %c0_i32, %c0_i32_0 : i32, i32
  }
  func.func @transform_4(%arg0: i32) -> (i32, i32) {
    %c0_i32 = arith.constant 0 : i32
    %c0_i32_0 = arith.constant 0 : i32
    %c0_i32_1 = arith.constant 0 : i32
    return %c0_i32, %c0_i32_0 : i32, i32
  }
  func.func @transform_5(%arg0: i32) -> (i32, i32) {
    %c0_i32 = arith.constant 0 : i32
    %c0_i32_0 = arith.constant 0 : i32
    %c0_i32_1 = arith.constant 0 : i32
    return %c0_i32, %c0_i32_0 : i32, i32
  }
  func.func @transform_6(%arg0: i32) -> (i32, i32) {
    %c0_i32 = arith.constant 0 : i32
    %c0_i32_0 = arith.constant 0 : i32
    %c0_i32_1 = arith.constant 0 : i32
    return %c0_i32, %c0_i32_0 : i32, i32
  }
  func.func @transform_7(%arg0: i32) -> (i32, i32) {
    %c0_i32 = arith.constant 0 : i32
    %c0_i32_0 = arith.constant 0 : i32
    %c0_i32_1 = arith.constant 0 : i32
    return %c0_i32, %c0_i32_0 : i32, i32
  }
  func.func @transform_8(%arg0: i32) -> (i32, i32) {
    %c0_i32 = arith.constant 0 : i32
    %c0_i32_0 = arith.constant 0 : i32
    %c0_i32_1 = arith.constant 0 : i32
    return %c0_i32, %c0_i32_0 : i32, i32
  }
  func.func @transform_9(%arg0: i32) -> (i32, i32) {
    %c0_i32 = arith.constant 0 : i32
    %c0_i32_0 = arith.constant 0 : i32
    return %arg0, %c0_i32 : i32, i32
  }
}

module attributes {stable_mosaic.version = 11 : i64} {
  func.func @_knn_gcn_kernel(%arg0: i32, %arg1: i32, %arg2: memref<1x16x17xf32, #tpu.memory_space<vmem>>, %arg3: memref<1x17x16xf32, #tpu.memory_space<vmem>>, %arg4: memref<1x16x1xf32, #tpu.memory_space<vmem>>, %arg5: memref<1x1x16xf32, #tpu.memory_space<vmem>>, %arg6: memref<1x16x1xf32, #tpu.memory_space<vmem>>, %arg7: memref<1x1x16xf32, #tpu.memory_space<vmem>>, %arg8: memref<1x16x16xf32, #tpu.memory_space<vmem>>) attributes {dimension_semantics = [#tpu.dimension_semantics<parallel>, #tpu.dimension_semantics<parallel>], iteration_bounds = array<i64: 4, 1>, scalar_prefetch = 0 : i64, scratch_operands = 0 : i64, tpu.core_type = #tpu.core_type<tc>, window_params = [{transform_indices = @transform_0, window_bounds = array<i64: 1, 16, 17>}, {transform_indices = @transform_1, window_bounds = array<i64: 1, 17, 16>}, {transform_indices = @transform_2, window_bounds = array<i64: 1, 16, 1>}, {transform_indices = @transform_3, window_bounds = array<i64: 1, 1, 16>}, {transform_indices = @transform_4, window_bounds = array<i64: 1, 16, 1>}, {transform_indices = @transform_5, window_bounds = array<i64: 1, 1, 16>}, {transform_indices = @transform_6, window_bounds = array<i64: 1, 16, 16>}]} {
    %c0 = arith.constant 0 : index
    %c0_0 = arith.constant 0 : index
    %c0_1 = arith.constant 0 : index
    %0 = vector.load %arg2[%c0, %c0_0, %c0_1] : memref<1x16x17xf32, #tpu.memory_space<vmem>>, vector<1x16x17xf32>
    %1 = vector.shape_cast %0 : vector<1x16x17xf32> to vector<16x17xf32>
    %c0_2 = arith.constant 0 : index
    %c0_3 = arith.constant 0 : index
    %c0_4 = arith.constant 0 : index
    %2 = vector.load %arg3[%c0_2, %c0_3, %c0_4] : memref<1x17x16xf32, #tpu.memory_space<vmem>>, vector<1x17x16xf32>
    %3 = vector.shape_cast %2 : vector<1x17x16xf32> to vector<17x16xf32>
    %c0_5 = arith.constant 0 : index
    %c0_6 = arith.constant 0 : index
    %c0_7 = arith.constant 0 : index
    %4 = vector.load %arg4[%c0_5, %c0_6, %c0_7] : memref<1x16x1xf32, #tpu.memory_space<vmem>>, vector<1x16x1xf32>
    %5 = vector.shape_cast %4 : vector<1x16x1xf32> to vector<16x1xf32>
    %c0_8 = arith.constant 0 : index
    %c0_9 = arith.constant 0 : index
    %c0_10 = arith.constant 0 : index
    %6 = vector.load %arg5[%c0_8, %c0_9, %c0_10] : memref<1x1x16xf32, #tpu.memory_space<vmem>>, vector<1x1x16xf32>
    %7 = vector.shape_cast %6 : vector<1x1x16xf32> to vector<1x16xf32>
    %c0_11 = arith.constant 0 : index
    %c0_12 = arith.constant 0 : index
    %c0_13 = arith.constant 0 : index
    %8 = vector.load %arg6[%c0_11, %c0_12, %c0_13] : memref<1x16x1xf32, #tpu.memory_space<vmem>>, vector<1x16x1xf32>
    %9 = vector.shape_cast %8 : vector<1x16x1xf32> to vector<16x1xf32>
    %c0_14 = arith.constant 0 : index
    %c0_15 = arith.constant 0 : index
    %c0_16 = arith.constant 0 : index
    %10 = vector.load %arg7[%c0_14, %c0_15, %c0_16] : memref<1x1x16xf32, #tpu.memory_space<vmem>>, vector<1x1x16xf32>
    %11 = vector.shape_cast %10 : vector<1x1x16xf32> to vector<1x16xf32>
    %cst = arith.constant dense<0.000000e+00> : vector<16x16xf32>
    %12 = tpu.matmul %1, %3, %cst {dimension_numbers = #tpu.dot_dimension_numbers<[1], [0], [0], [1], [0, 0, 1, 1], [], []>} : vector<16x17xf32>, vector<17x16xf32>, vector<16x16xf32> -> vector<16x16xf32>
    %13 = vector.broadcast %5 : vector<16x1xf32> to vector<16x16xf32>
    %14 = vector.broadcast %7 : vector<1x16xf32> to vector<16x16xf32>
    %15 = arith.addf %13, %14 : vector<16x16xf32>
    %cst_17 = arith.constant 2.000000e+00 : f32
    %16 = vector.broadcast %cst_17 : f32 to vector<16x16xf32>
    %17 = arith.addf %15, %16 : vector<16x16xf32>
    %cst_18 = arith.constant 2.000000e+00 : f32
    %18 = vector.broadcast %cst_18 : f32 to vector<16x16xf32>
    %19 = arith.mulf %18, %12 : vector<16x16xf32>
    %20 = arith.subf %17, %19 : vector<16x16xf32>
    %cst_19 = arith.constant 0.000000e+00 : f32
    %21 = vector.broadcast %cst_19 : f32 to vector<16x16xf32>
    %22 = arith.maximumf %20, %21 : vector<16x16xf32>
    %23 = tpu.iota {dimensions = array<i32: 0>} : vector<16x16xi32>
    %c16_i32 = arith.constant 16 : i32
    %24 = arith.muli %arg1, %c16_i32 : i32
    %25 = vector.broadcast %24 : i32 to vector<16x16xi32>
    %26 = arith.addi %23, %25 : vector<16x16xi32>
    %27 = tpu.iota {dimensions = array<i32: 1>} : vector<16x16xi32>
    %28 = arith.cmpi eq, %26, %27 : vector<16x16xi32>
    %cst_20 = arith.constant 0.000000e+00 : f32
    %29 = vector.broadcast %cst_20 : f32 to vector<16x16xf32>
    %30 = arith.select %28, %29, %22 : vector<16x16xi1>, vector<16x16xf32>
    %31 = vector.broadcast %9 : vector<16x1xf32> to vector<16x16xf32>
    %32 = arith.cmpf ole, %30, %31 : vector<16x16xf32>
    %cst_21 = arith.constant 1.000000e+00 : f32
    %cst_22 = arith.constant 0.000000e+00 : f32
    %33 = vector.broadcast %cst_21 : f32 to vector<16x16xf32>
    %34 = vector.broadcast %cst_22 : f32 to vector<16x16xf32>
    %35 = arith.select %32, %33, %34 : vector<16x16xi1>, vector<16x16xf32>
    %36 = vector.broadcast %11 : vector<1x16xf32> to vector<16x16xf32>
    %37 = arith.cmpf ole, %30, %36 : vector<16x16xf32>
    %cst_23 = arith.constant 1.000000e+00 : f32
    %cst_24 = arith.constant 0.000000e+00 : f32
    %38 = vector.broadcast %cst_23 : f32 to vector<16x16xf32>
    %39 = vector.broadcast %cst_24 : f32 to vector<16x16xf32>
    %40 = arith.select %37, %38, %39 : vector<16x16xi1>, vector<16x16xf32>
    %cst_25 = arith.constant 0.000000e+00 : f32
    %41 = vector.broadcast %cst_25 : f32 to vector<16x16xf32>
    %42 = arith.select %28, %41, %35 : vector<16x16xi1>, vector<16x16xf32>
    %cst_26 = arith.constant 0.000000e+00 : f32
    %43 = vector.broadcast %cst_26 : f32 to vector<16x16xf32>
    %44 = arith.select %28, %43, %40 : vector<16x16xi1>, vector<16x16xf32>
    %45 = arith.addf %42, %44 : vector<16x16xf32>
    %cst_27 = arith.constant 5.000000e-01 : f32
    %46 = vector.broadcast %cst_27 : f32 to vector<16x16xf32>
    %47 = arith.mulf %46, %45 : vector<16x16xf32>
    %cst_28 = arith.constant 1.000000e+00 : f32
    %48 = vector.broadcast %cst_28 : f32 to vector<16x16xf32>
    %49 = arith.select %28, %48, %47 : vector<16x16xi1>, vector<16x16xf32>
    %cst_29 = arith.constant dense<0.000000e+00> : vector<17x16xf32>
    %50 = tpu.matmul %3, %49, %cst_29 {dimension_numbers = #tpu.dot_dimension_numbers<[1], [1], [0], [0], [0, 0, 1, 0], [], []>} : vector<17x16xf32>, vector<16x16xf32>, vector<17x16xf32> -> vector<17x16xf32>
    %51 = vector.extract_strided_slice %50 {offsets = [16, 0], sizes = [1, 16], strides = [1, 1]} : vector<17x16xf32> to vector<1x16xf32>
    %52 = tpu.reciprocal %51 {approx = true} : vector<1x16xf32> -> vector<1x16xf32>
    %53 = vector.extract_strided_slice %50 {offsets = [0, 0], sizes = [16, 16], strides = [1, 1]} : vector<17x16xf32> to vector<16x16xf32>
    %54 = vector.broadcast %52 : vector<1x16xf32> to vector<16x16xf32>
    %55 = arith.mulf %53, %54 : vector<16x16xf32>
    %cst_30 = arith.constant 0.000000e+00 : f32
    %56 = vector.broadcast %cst_30 : f32 to vector<16x16xf32>
    %57 = arith.maximumf %55, %56 : vector<16x16xf32>
    %c0_31 = arith.constant 0 : index
    %c0_32 = arith.constant 0 : index
    %c0_33 = arith.constant 0 : index
    %58 = vector.load %arg8[%c0_31, %c0_32, %c0_33] : memref<1x16x16xf32, #tpu.memory_space<vmem>>, vector<1x16x16xf32>
    %59 = vector.shape_cast %58 : vector<1x16x16xf32> to vector<16x16xf32>
    %60 = vector.shape_cast %57 : vector<16x16xf32> to vector<1x16x16xf32>
    tpu.vector_store %arg8[%c0_31, %c0_32, %c0_33], %60 {strides = array<i32>} : memref<1x16x16xf32, #tpu.memory_space<vmem>>, vector<1x16x16xf32>,
    return
  }
  func.func @transform_0(%arg0: i32, %arg1: i32) -> (i32, i32, i32) {
    %c0_i32 = arith.constant 0 : i32
    %c0_i32_0 = arith.constant 0 : i32
    return %arg0, %arg1, %c0_i32 : i32, i32, i32
  }
  func.func @transform_1(%arg0: i32, %arg1: i32) -> (i32, i32, i32) {
    %c0_i32 = arith.constant 0 : i32
    %c0_i32_0 = arith.constant 0 : i32
    %c0_i32_1 = arith.constant 0 : i32
    return %arg0, %c0_i32, %c0_i32_0 : i32, i32, i32
  }
  func.func @transform_2(%arg0: i32, %arg1: i32) -> (i32, i32, i32) {
    %c0_i32 = arith.constant 0 : i32
    %c0_i32_0 = arith.constant 0 : i32
    return %arg0, %arg1, %c0_i32 : i32, i32, i32
  }
  func.func @transform_3(%arg0: i32, %arg1: i32) -> (i32, i32, i32) {
    %c0_i32 = arith.constant 0 : i32
    %c0_i32_0 = arith.constant 0 : i32
    %c0_i32_1 = arith.constant 0 : i32
    return %arg0, %c0_i32, %c0_i32_0 : i32, i32, i32
  }
  func.func @transform_4(%arg0: i32, %arg1: i32) -> (i32, i32, i32) {
    %c0_i32 = arith.constant 0 : i32
    %c0_i32_0 = arith.constant 0 : i32
    return %arg0, %arg1, %c0_i32 : i32, i32, i32
  }
  func.func @transform_5(%arg0: i32, %arg1: i32) -> (i32, i32, i32) {
    %c0_i32 = arith.constant 0 : i32
    %c0_i32_0 = arith.constant 0 : i32
    %c0_i32_1 = arith.constant 0 : i32
    return %arg0, %c0_i32, %c0_i32_0 : i32, i32, i32
  }
  func.func @transform_6(%arg0: i32, %arg1: i32) -> (i32, i32, i32) {
    %c0_i32 = arith.constant 0 : i32
    %c0_i32_0 = arith.constant 0 : i32
    return %arg0, %c0_i32, %arg1 : i32, i32, i32
  }
}

module attributes {stable_mosaic.version = 11 : i64} {
  func.func @_kth_dist_kernel(%arg0: i32, %arg1: i32, %arg2: memref<1x16x17xf32, #tpu.memory_space<vmem>>, %arg3: memref<1x17x16xf32, #tpu.memory_space<vmem>>, %arg4: memref<1x16x1xf32, #tpu.memory_space<vmem>>, %arg5: memref<1x1x16xf32, #tpu.memory_space<vmem>>, %arg6: memref<1x16x1xf32, #tpu.memory_space<vmem>>) attributes {dimension_semantics = [#tpu.dimension_semantics<parallel>, #tpu.dimension_semantics<parallel>], iteration_bounds = array<i64: 4, 1>, scalar_prefetch = 0 : i64, scratch_operands = 0 : i64, tpu.core_type = #tpu.core_type<tc>, window_params = [{transform_indices = @transform_0, window_bounds = array<i64: 1, 16, 17>}, {transform_indices = @transform_1, window_bounds = array<i64: 1, 17, 16>}, {transform_indices = @transform_2, window_bounds = array<i64: 1, 16, 1>}, {transform_indices = @transform_3, window_bounds = array<i64: 1, 1, 16>}, {transform_indices = @transform_4, window_bounds = array<i64: 1, 16, 1>}]} {
    %c0 = arith.constant 0 : index
    %c0_0 = arith.constant 0 : index
    %c0_1 = arith.constant 0 : index
    %0 = vector.load %arg2[%c0, %c0_0, %c0_1] : memref<1x16x17xf32, #tpu.memory_space<vmem>>, vector<1x16x17xf32>
    %1 = vector.shape_cast %0 : vector<1x16x17xf32> to vector<16x17xf32>
    %c0_2 = arith.constant 0 : index
    %c0_3 = arith.constant 0 : index
    %c0_4 = arith.constant 0 : index
    %2 = vector.load %arg3[%c0_2, %c0_3, %c0_4] : memref<1x17x16xf32, #tpu.memory_space<vmem>>, vector<1x17x16xf32>
    %3 = vector.shape_cast %2 : vector<1x17x16xf32> to vector<17x16xf32>
    %c0_5 = arith.constant 0 : index
    %c0_6 = arith.constant 0 : index
    %c0_7 = arith.constant 0 : index
    %4 = vector.load %arg4[%c0_5, %c0_6, %c0_7] : memref<1x16x1xf32, #tpu.memory_space<vmem>>, vector<1x16x1xf32>
    %5 = vector.shape_cast %4 : vector<1x16x1xf32> to vector<16x1xf32>
    %c0_8 = arith.constant 0 : index
    %c0_9 = arith.constant 0 : index
    %c0_10 = arith.constant 0 : index
    %6 = vector.load %arg5[%c0_8, %c0_9, %c0_10] : memref<1x1x16xf32, #tpu.memory_space<vmem>>, vector<1x1x16xf32>
    %7 = vector.shape_cast %6 : vector<1x1x16xf32> to vector<1x16xf32>
    %cst = arith.constant dense<0.000000e+00> : vector<16x16xf32>
    %8 = tpu.matmul %1, %3, %cst {dimension_numbers = #tpu.dot_dimension_numbers<[1], [0], [0], [1], [0, 0, 1, 1], [], []>} : vector<16x17xf32>, vector<17x16xf32>, vector<16x16xf32> -> vector<16x16xf32>
    %9 = vector.broadcast %5 : vector<16x1xf32> to vector<16x16xf32>
    %10 = vector.broadcast %7 : vector<1x16xf32> to vector<16x16xf32>
    %11 = arith.addf %9, %10 : vector<16x16xf32>
    %cst_11 = arith.constant 2.000000e+00 : f32
    %12 = vector.broadcast %cst_11 : f32 to vector<16x16xf32>
    %13 = arith.addf %11, %12 : vector<16x16xf32>
    %cst_12 = arith.constant 2.000000e+00 : f32
    %14 = vector.broadcast %cst_12 : f32 to vector<16x16xf32>
    %15 = arith.mulf %14, %8 : vector<16x16xf32>
    %16 = arith.subf %13, %15 : vector<16x16xf32>
    %cst_13 = arith.constant 0.000000e+00 : f32
    %17 = vector.broadcast %cst_13 : f32 to vector<16x16xf32>
    %18 = arith.maximumf %16, %17 : vector<16x16xf32>
    %19 = tpu.iota {dimensions = array<i32: 0>} : vector<16x16xi32>
    %c16_i32 = arith.constant 16 : i32
    %20 = arith.muli %arg1, %c16_i32 : i32
    %21 = vector.broadcast %20 : i32 to vector<16x16xi32>
    %22 = arith.addi %19, %21 : vector<16x16xi32>
    %23 = tpu.iota {dimensions = array<i32: 1>} : vector<16x16xi32>
    %24 = arith.cmpi eq, %22, %23 : vector<16x16xi32>
    %cst_14 = arith.constant 0.000000e+00 : f32
    %25 = vector.broadcast %cst_14 : f32 to vector<16x16xf32>
    %26 = arith.select %24, %25, %18 : vector<16x16xi1>, vector<16x16xf32>
    %cst_15 = arith.constant 0.000000e+00 : f32
    %27 = vector.broadcast %cst_15 : f32 to vector<16x1xf32>
    %cst_16 = arith.constant 0.000000e+00 : f32
    %28 = vector.broadcast %cst_16 : f32 to vector<16x1xf32>
    %cst_17 = arith.constant dense<0x7F800000> : vector<16xf32>
    %29 = vector.multi_reduction <minimumf>, %26, %cst_17 [1] : vector<16x16xf32> to vector<16xf32>
    %30 = vector.shape_cast %29 : vector<16xf32> to vector<16x1xf32>
    %31 = vector.broadcast %30 : vector<16x1xf32> to vector<16x16xf32>
    %32 = arith.cmpf ole, %26, %31 : vector<16x16xf32>
    %33 = arith.extui %32 : vector<16x16xi1> to vector<16x16xi32>
    %34 = arith.sitofp %33 : vector<16x16xi32> to vector<16x16xf32>
    %cst_18 = arith.constant dense<0.000000e+00> : vector<16xf32>
    %35 = vector.multi_reduction <add>, %34, %cst_18 [1] : vector<16x16xf32> to vector<16xf32>
    %36 = vector.shape_cast %35 : vector<16xf32> to vector<16x1xf32>
    %cst_19 = arith.constant 4.000000e+00 : f32
    %37 = vector.broadcast %cst_19 : f32 to vector<16x1xf32>
    %38 = arith.cmpf olt, %27, %37 : vector<16x1xf32>
    %39 = arith.select %38, %30, %28 : vector<16x1xi1>, vector<16x1xf32>
    %cst_20 = arith.constant 0.000000e+00 : f32
    %40 = vector.broadcast %cst_20 : f32 to vector<16x1xf32>
    %41 = arith.select %38, %36, %40 : vector<16x1xi1>, vector<16x1xf32>
    %42 = arith.addf %27, %41 : vector<16x1xf32>
    %43 = vector.broadcast %30 : vector<16x1xf32> to vector<16x16xf32>
    %44 = arith.cmpf ole, %26, %43 : vector<16x16xf32>
    %cst_21 = arith.constant 3.000000e+38 : f32
    %45 = vector.broadcast %cst_21 : f32 to vector<16x16xf32>
    %46 = arith.select %44, %45, %26 : vector<16x16xi1>, vector<16x16xf32>
    %cst_22 = arith.constant dense<0x7F800000> : vector<16xf32>
    %47 = vector.multi_reduction <minimumf>, %46, %cst_22 [1] : vector<16x16xf32> to vector<16xf32>
    %48 = vector.shape_cast %47 : vector<16xf32> to vector<16x1xf32>
    %49 = vector.broadcast %48 : vector<16x1xf32> to vector<16x16xf32>
    %50 = arith.cmpf ole, %46, %49 : vector<16x16xf32>
    %51 = arith.extui %50 : vector<16x16xi1> to vector<16x16xi32>
    %52 = arith.sitofp %51 : vector<16x16xi32> to vector<16x16xf32>
    %cst_23 = arith.constant dense<0.000000e+00> : vector<16xf32>
    %53 = vector.multi_reduction <add>, %52, %cst_23 [1] : vector<16x16xf32> to vector<16xf32>
    %54 = vector.shape_cast %53 : vector<16xf32> to vector<16x1xf32>
    %cst_24 = arith.constant 4.000000e+00 : f32
    %55 = vector.broadcast %cst_24 : f32 to vector<16x1xf32>
    %56 = arith.cmpf olt, %42, %55 : vector<16x1xf32>
    %57 = arith.select %56, %48, %39 : vector<16x1xi1>, vector<16x1xf32>
    %cst_25 = arith.constant 0.000000e+00 : f32
    %58 = vector.broadcast %cst_25 : f32 to vector<16x1xf32>
    %59 = arith.select %56, %54, %58 : vector<16x1xi1>, vector<16x1xf32>
    %60 = arith.addf %42, %59 : vector<16x1xf32>
    %61 = vector.broadcast %48 : vector<16x1xf32> to vector<16x16xf32>
    %62 = arith.cmpf ole, %46, %61 : vector<16x16xf32>
    %cst_26 = arith.constant 3.000000e+38 : f32
    %63 = vector.broadcast %cst_26 : f32 to vector<16x16xf32>
    %64 = arith.select %62, %63, %46 : vector<16x16xi1>, vector<16x16xf32>
    %cst_27 = arith.constant dense<0x7F800000> : vector<16xf32>
    %65 = vector.multi_reduction <minimumf>, %64, %cst_27 [1] : vector<16x16xf32> to vector<16xf32>
    %66 = vector.shape_cast %65 : vector<16xf32> to vector<16x1xf32>
    %67 = vector.broadcast %66 : vector<16x1xf32> to vector<16x16xf32>
    %68 = arith.cmpf ole, %64, %67 : vector<16x16xf32>
    %69 = arith.extui %68 : vector<16x16xi1> to vector<16x16xi32>
    %70 = arith.sitofp %69 : vector<16x16xi32> to vector<16x16xf32>
    %cst_28 = arith.constant dense<0.000000e+00> : vector<16xf32>
    %71 = vector.multi_reduction <add>, %70, %cst_28 [1] : vector<16x16xf32> to vector<16xf32>
    %72 = vector.shape_cast %71 : vector<16xf32> to vector<16x1xf32>
    %cst_29 = arith.constant 4.000000e+00 : f32
    %73 = vector.broadcast %cst_29 : f32 to vector<16x1xf32>
    %74 = arith.cmpf olt, %60, %73 : vector<16x1xf32>
    %75 = arith.select %74, %66, %57 : vector<16x1xi1>, vector<16x1xf32>
    %cst_30 = arith.constant 0.000000e+00 : f32
    %76 = vector.broadcast %cst_30 : f32 to vector<16x1xf32>
    %77 = arith.select %74, %72, %76 : vector<16x1xi1>, vector<16x1xf32>
    %78 = arith.addf %60, %77 : vector<16x1xf32>
    %79 = vector.broadcast %66 : vector<16x1xf32> to vector<16x16xf32>
    %80 = arith.cmpf ole, %64, %79 : vector<16x16xf32>
    %cst_31 = arith.constant 3.000000e+38 : f32
    %81 = vector.broadcast %cst_31 : f32 to vector<16x16xf32>
    %82 = arith.select %80, %81, %64 : vector<16x16xi1>, vector<16x16xf32>
    %cst_32 = arith.constant dense<0x7F800000> : vector<16xf32>
    %83 = vector.multi_reduction <minimumf>, %82, %cst_32 [1] : vector<16x16xf32> to vector<16xf32>
    %84 = vector.shape_cast %83 : vector<16xf32> to vector<16x1xf32>
    %cst_33 = arith.constant 4.000000e+00 : f32
    %85 = vector.broadcast %cst_33 : f32 to vector<16x1xf32>
    %86 = arith.cmpf olt, %78, %85 : vector<16x1xf32>
    %87 = arith.select %86, %84, %75 : vector<16x1xi1>, vector<16x1xf32>
    %c0_34 = arith.constant 0 : index
    %c0_35 = arith.constant 0 : index
    %c0_36 = arith.constant 0 : index
    %88 = vector.load %arg6[%c0_34, %c0_35, %c0_36] : memref<1x16x1xf32, #tpu.memory_space<vmem>>, vector<1x16x1xf32>
    %89 = vector.shape_cast %88 : vector<1x16x1xf32> to vector<16x1xf32>
    %90 = vector.shape_cast %87 : vector<16x1xf32> to vector<1x16x1xf32>
    tpu.vector_store %arg6[%c0_34, %c0_35, %c0_36], %90 {strides = array<i32>} : memref<1x16x1xf32, #tpu.memory_space<vmem>>, vector<1x16x1xf32>,
    return
  }
  func.func @transform_0(%arg0: i32, %arg1: i32) -> (i32, i32, i32) {
    %c0_i32 = arith.constant 0 : i32
    %c0_i32_0 = arith.constant 0 : i32
    return %arg0, %arg1, %c0_i32 : i32, i32, i32
  }
  func.func @transform_1(%arg0: i32, %arg1: i32) -> (i32, i32, i32) {
    %c0_i32 = arith.constant 0 : i32
    %c0_i32_0 = arith.constant 0 : i32
    %c0_i32_1 = arith.constant 0 : i32
    return %arg0, %c0_i32, %c0_i32_0 : i32, i32, i32
  }
  func.func @transform_2(%arg0: i32, %arg1: i32) -> (i32, i32, i32) {
    %c0_i32 = arith.constant 0 : i32
    %c0_i32_0 = arith.constant 0 : i32
    return %arg0, %arg1, %c0_i32 : i32, i32, i32
  }
  func.func @transform_3(%arg0: i32, %arg1: i32) -> (i32, i32, i32) {
    %c0_i32 = arith.constant 0 : i32
    %c0_i32_0 = arith.constant 0 : i32
    %c0_i32_1 = arith.constant 0 : i32
    return %arg0, %c0_i32, %c0_i32_0 : i32, i32, i32
  }
  func.func @transform_4(%arg0: i32, %arg1: i32) -> (i32, i32, i32) {
    %c0_i32 = arith.constant 0 : i32
    %c0_i32_0 = arith.constant 0 : i32
    return %arg0, %arg1, %c0_i32 : i32, i32, i32
  }
}

module attributes {stable_mosaic.version = 11 : i64} {
  func.func @_mlp_logsoftmax_kernel(%arg0: i32, %arg1: memref<16x64xf32, #tpu.memory_space<vmem>>, %arg2: memref<64x7xf32, #tpu.memory_space<vmem>>, %arg3: memref<1x7xf32, #tpu.memory_space<vmem>>, %arg4: memref<16x7xf32, #tpu.memory_space<vmem>>) attributes {dimension_semantics = [#tpu.dimension_semantics<parallel>], iteration_bounds = array<i64: 1>, scalar_prefetch = 0 : i64, scratch_operands = 0 : i64, tpu.core_type = #tpu.core_type<tc>, window_params = [{transform_indices = @transform_0, window_bounds = array<i64: 16, 64>}, {pipeline_mode = #tpu.pipeline_mode<synchronous>, transform_indices = @transform_1, window_bounds = array<i64: 64, 7>}, {pipeline_mode = #tpu.pipeline_mode<synchronous>, transform_indices = @transform_2, window_bounds = array<i64: 1, 7>}, {transform_indices = @transform_3, window_bounds = array<i64: 16, 7>}]} {
    %c0 = arith.constant 0 : index
    %c0_0 = arith.constant 0 : index
    %0 = vector.load %arg1[%c0, %c0_0] : memref<16x64xf32, #tpu.memory_space<vmem>>, vector<16x64xf32>
    %c0_1 = arith.constant 0 : index
    %c0_2 = arith.constant 0 : index
    %1 = vector.load %arg2[%c0_1, %c0_2] : memref<64x7xf32, #tpu.memory_space<vmem>>, vector<64x7xf32>
    %cst = arith.constant dense<0.000000e+00> : vector<16x7xf32>
    %2 = tpu.matmul %0, %1, %cst {dimension_numbers = #tpu.dot_dimension_numbers<[1], [0], [0], [1], [0, 0, 1, 1], [], []>} : vector<16x64xf32>, vector<64x7xf32>, vector<16x7xf32> -> vector<16x7xf32>
    %c0_3 = arith.constant 0 : index
    %c0_4 = arith.constant 0 : index
    %3 = vector.load %arg3[%c0_3, %c0_4] : memref<1x7xf32, #tpu.memory_space<vmem>>, vector<1x7xf32>
    %4 = vector.broadcast %3 : vector<1x7xf32> to vector<16x7xf32>
    %5 = arith.addf %2, %4 : vector<16x7xf32>
    %cst_5 = arith.constant dense<0xFF800000> : vector<16xf32>
    %6 = vector.multi_reduction <maximumf>, %5, %cst_5 [1] : vector<16x7xf32> to vector<16xf32>
    %7 = vector.shape_cast %6 : vector<16xf32> to vector<16x1xf32>
    %8 = vector.broadcast %7 : vector<16x1xf32> to vector<16x7xf32>
    %9 = arith.subf %5, %8 : vector<16x7xf32>
    %10 = math.exp %9 : vector<16x7xf32>
    %cst_6 = arith.constant dense<0.000000e+00> : vector<16xf32>
    %11 = vector.multi_reduction <add>, %10, %cst_6 [1] : vector<16x7xf32> to vector<16xf32>
    %12 = vector.shape_cast %11 : vector<16xf32> to vector<16x1xf32>
    %13 = math.log %12 : vector<16x1xf32>
    %14 = vector.broadcast %13 : vector<16x1xf32> to vector<16x7xf32>
    %15 = arith.subf %9, %14 : vector<16x7xf32>
    %c0_7 = arith.constant 0 : index
    %c0_8 = arith.constant 0 : index
    %16 = vector.load %arg4[%c0_7, %c0_8] : memref<16x7xf32, #tpu.memory_space<vmem>>, vector<16x7xf32>
    tpu.vector_store %arg4[%c0_7, %c0_8], %15 {strides = array<i32>} : memref<16x7xf32, #tpu.memory_space<vmem>>, vector<16x7xf32>,
    return
  }
  func.func @transform_0(%arg0: i32) -> (i32, i32) {
    %c0_i32 = arith.constant 0 : i32
    %c0_i32_0 = arith.constant 0 : i32
    return %arg0, %c0_i32 : i32, i32
  }
  func.func @transform_1(%arg0: i32) -> (i32, i32) {
    %c0_i32 = arith.constant 0 : i32
    %c0_i32_0 = arith.constant 0 : i32
    %c0_i32_1 = arith.constant 0 : i32
    return %c0_i32, %c0_i32_0 : i32, i32
  }
  func.func @transform_2(%arg0: i32) -> (i32, i32) {
    %c0_i32 = arith.constant 0 : i32
    %c0_i32_0 = arith.constant 0 : i32
    %c0_i32_1 = arith.constant 0 : i32
    return %c0_i32, %c0_i32_0 : i32, i32
  }
  func.func @transform_3(%arg0: i32) -> (i32, i32) {
    %c0_i32 = arith.constant 0 : i32
    %c0_i32_0 = arith.constant 0 : i32
    return %arg0, %c0_i32 : i32, i32
  }
}

</mosaic_0001>

<bundles_post_ra>
// kernel: mul.32
= control target key start
LH: loop header
LB: loop body
LE: loop exit
PB: predicated region body
PF: predicated region fallthrough
CT: control target
= control target key end

     0   :  { %s56_s0 = inlined_call_operand.vmem [shape: f32[16,64], index: 0, kind: input, shape index: {}, may-alias: {0,1}]   ;;  %s57_s1 = inlined_call_operand.vmem [shape: f32[16,64], index: 1, kind: input, shape index: {}, may-alias: {0,1}]   ;;  %s58_s2 = inlined_call_operand.vmem [shape: f32[16,64], index: 2, kind: output, shape index: {}]  }
   0x1   :  { %v3_v0 = vld [vmem:[%s56_s0] sm:$0xff]  ;;  %v20_v2 = vld [vmem:[%s56_s0 + $0x8] sm:$0xff] }
   0x2   :  { %v4_v1 = vld [vmem:[%s57_s1] sm:$0xff]  ;;  %v21_v4 = vld [vmem:[%s57_s1 + $0x8] sm:$0xff] }
   0x3   :  { %v7_v3 = vmul.f32 %v4_v1, %v3_v0  ;;  %v16_v5 = vmul.f32 %v21_v4, %v20_v2 }
   0x5   :  { %9 = vst [vmem:[%s58_s2] sm:$0xff] %v7_v3 }
   0x6   :  { %22 = vst [vmem:[%s58_s2 + $0x8] sm:$0xff] %v16_v5 }

// kernel: capsule_net_forward.6
= control target key start
LH: loop header
LB: loop body
LE: loop exit
PB: predicated region body
PF: predicated region fallthrough
CT: control target
= control target key end

     0   :  { %8 = vsyncpa [#allocation3], 0  ;;  %s116_s15 = smov [#allocation2]   ;;  %s117_s17 = smov 128   ;;  %s163_s0 = inlined_call_operand.hbm [shape: f32[16,32], index: 0, kind: input, shape index: {}]   ;;  %s164_s1 = inlined_call_operand.vmem [shape: f32[32,64], index: 1, kind: input, shape index: {}]   ;;  %s165_s2 = inlined_call_operand.vmem [shape: f32[1,64], index: 2, kind: input, shape index: {}]   ;;  %s166_s3 = inlined_call_operand.vmem [shape: f32[16,64], index: 3, kind: output, shape index: {}]  }
   0x1   :  { %s13_s14 = sshll.u32 %s163_s0, 4  ;;  %s15_s16 = sshll.u32 %s116_s15, 4  ;;  %s14_s14 = int_to_ptr.hbm [resolvable:$true] %s13_s14  ;;  %s16_s16 = int_to_ptr.vmem [resolvable:$true] %s15_s16 }
   0x2   :  { %s118_s18 = smov 8  }
   0x3   :  { %21 = dma.hbm_to_vmem [thread:$0]  %s14_s14, 256, %s16_s16, [#allocation3], %s117_s17, %s117_s17, %s118_s18  }
   0x4   :  { %114 = dma.done.wait [#allocation3], 256  }
   0x5   :  { %115 = vsyncadd [#allocation3], 4294967040  ;;  %v35_v0 = vld [vmem:[%s164_s1 + $0x18] sm:$0xff]  ;;  %v34_v1 = vld [vmem:[%s164_s1 + $0x10] sm:$0xff]  ;;  %vm40_vm0 = vcmask 261120   ;;  %vm72_vm1 = vcmask 523264  }
   0x6   :  { %59 = vmatpush.msra.mxu0 %v35_v0  ;;  %82 = vmatpush.msra.mxu1 %v35_v0  ;;  %v33_v2 = vld [vmem:[%s164_s1 + $0x8] sm:$0xff]  ;;  %v32_v3 = vld [vmem:[%s164_s1] sm:$0xff] }
   0x7   :  { %v30_v4 = vld [vmem:[#allocation2] sm:$0xff]  ;;  %v31_v5 = vld [vmem:[#allocation2 + $0x8] sm:$0xff] }
   0x8   :  { %60 = vmatpush.msra.mxu0 %v34_v1  ;;  %83 = vmatpush.msra.mxu1 %v34_v1  ;;  %v89_v6 = vld [vmem:[%s165_s2] ss:$0 sm:$0xff] }
   0xa   :  { %61 = vmatpush.msra.mxu0 %v33_v2  ;;  %84 = vmatpush.msra.mxu1 %v33_v2 }
   0xc   :  { %62 = vmatpush.msra.mxu0 %v32_v3  ;;  %85 = vmatpush.msra.mxu1 %v32_v3 }
   0xd   :  { %80 = vmatmul.msk.f32.vlgmr.msra.gmra.mxu0 %vm40_vm0, %v30_v4  ;;  %81 = vmatmul.msk.f32.vlgmr.msra.gmra.mxu1 %vm40_vm0, %v31_v5 }
  0x8a   :  { %v64_v7 = vpop.f32.mrf.mxu0  ;;  %v67_v8 = vpop.f32.mrf.mxu1 }
  0x8b   :  { %v65_v9 = vadd.f32 %v89_v6, %v64_v7  ;;  %v68_v10 = vadd.f32 %v89_v6, %v67_v8 }
  0x8d   :  { %v70_v11 = vmax.f32 %v65_v9, 0.0  ;;  %v71_v12 = vmax.f32 %v68_v10, 0.0 }
  0x8f   :  { %73 = vst.msk [vmem:[%s166_s3] sm:$0xff] %vm72_vm1, %v70_v11 }
  0x90   :  { %74 = vst.msk [vmem:[%s166_s3 + $0x8] sm:$0xff] %vm72_vm1, %v71_v12 }
  0x91   :  { %79 = vsyncpa [#allocation3], 1 }

// kernel: capsule_net_forward.10
= control target key start
LH: loop header
LB: loop body
LE: loop exit
PB: predicated region body
PF: predicated region fallthrough
CT: control target
= control target key end

     0   :  { %s844_s21 = smov 0   ;;  %s846_s22 = smov 0   ;;  %s935_s0 = inlined_call_operand.vmem [shape: f32[4,16,17], index: 0, kind: input, shape index: {}]   ;;  %s936_s1 = inlined_call_operand.vmem [shape: f32[4,17,16], index: 1, kind: input, shape index: {}]   ;;  %s937_s2 = inlined_call_operand.vmem [shape: f32[4,16,1], index: 2, kind: input, shape index: {}]   ;;  %s938_s3 = inlined_call_operand.vmem [shape: f32[4,1,16], index: 3, kind: input, shape index: {}]   ;;  %s939_s4 = inlined_call_operand.vmem [shape: f32[4,16,1], index: 4, kind: input, shape index: {}]   ;;  %s940_s5 = inlined_call_operand.vmem [shape: f32[4,1,16], index: 5, kind: input, shape index: {}]   ;;  %s941_s6 = inlined_call_operand.vmem [shape: f32[4,16,16], index: 6, kind: output, shape index: {}]  }
   0x1   :  { %s848_s23 = smov 0  }
   0x2 LB: > { %s28_s24 = sadd.s32 1, %s801_s22  ;;  %p722_p0 = scmp.ge.s32.totalorder %s805_s23, 1  ;;  %s805_s23 = sphi %s848_s23, %s16_s23   ;;  %s801_s22 = sphi %s846_s22, %s943_s22   ;;  %s797_s21 = sphi %s844_s21, %s942_s21  }
   0x3   : > { %p30_p1 = scmp.ge.s32.totalorder %s28_s24, 4  ;;  %p293_p2 = scmp.lt.s32.totalorder %s805_s23, 5 }
   0x5   : > { %s945_s24 = smov (%p30_p1, %s28_s24), 0  ;;  %p294_p3 = pnand %p722_p0, %p293_p2 }
   0x6   : > { %p360_p4 = scmp.lt.s32.totalorder (!%p294_p3), %s797_s21, 3 }
   0x7   : > { %297 = sbr.rel (%p294_p3) target bundleno = 326 (0x146), region = 44 }
   0xc   : > { %v807_v0 = vmov 0   ;;  %s947_s21 = smov (!%p360_p4, %s797_s21), 3  ;;  %vm426_vm0 = vcmask 1040384   ;;  %vm419_vm1 = vcmask 138240   ;;  %v476_v14 = vlaneseq }
   0xd   : > { %777 = vset.pattern.permute.xlu0 %v807_v0  ;;  %778 = vset.pattern.permute.xlu1 %v807_v0  ;;  %s750_s25 = smul.u32 24, %s947_s21  ;;  %s866_s26 = sshll.u32 %s947_s21, 4  ;;  %v808_v32 = vmov 0.0   ;;  %vm520_vm8 = vcmask 130048  }
   0xe   : > { %s382_s29 = scalar_lea.vmem %s937_s2, %s866_s26  ;;  %s395_s11 = scalar_lea.vmem %s939_s4, %s866_s26  ;;  %v477_v18 = vshrl.u32 %v476_v14, 7  ;;  %v484_v19 = vand.u32 127, %v476_v14 }
   0xf   : > { %s373_s8 = scalar_lea.vmem %s936_s1, %s750_s25  ;;  %v414_v1 = vld [vmem:[%s382_s29 + $0x8] sm:$0xff]  ;;  %s367_s14 = scalar_lea.vmem %s935_s0, %s866_s26  ;;  %v413_v7 = vld [vmem:[%s382_s29] sm:$0xff] }
  0x10   : > { %v879_v2 = vld [vmem:[%s373_s8 + $0x10] sm:$0x1]  ;;  %v881_v3 = vld [vmem:[%s373_s8 + $0x8] sm:$0xff]  ;;  %460 = vperm.xlu0 %777, %v414_v1   ;;  %s386_s17 = scalar_lea.vmem %s938_s3, %s947_s21  ;;  %v892_v5 = vld [vmem:[%s373_s8] sm:$0xff]  ;;  %s399_s20 = scalar_lea.vmem %s940_s5, %s947_s21  ;;  %vm485_vm2 = vcmp.eq.s32.totalorder %v477_v18, %v484_v19  ;;  %v478_v27 = vadd.s32 8, %v477_v18 }
  0x11   : > { %732 = vmatpush.msk.msra.mxu0 %vm426_vm0, %v879_v2  ;;  %v417_v4 = vld [vmem:[%s395_s11 + $0x8] sm:$0xff]  ;;  %v408_v6 = vld [vmem:[%s367_s14] sm:$0xff]  ;;  %s407_s27 = scalar_lea.vmem %s941_s6, %s866_s26 }
  0x12   : > { %496 = vperm.xlu1 %778, %v417_v4   ;;  %v416_v8 = vld [vmem:[%s395_s11] sm:$0xff]  ;;  %v409_v9 = vld [vmem:[%s367_s14 + $0x8] sm:$0xff]  ;;  %vm486_vm5 = vcmp.eq.s32.totalorder %v478_v27, %v484_v19 }
  0x13   : > { %444 = vmatpush.msra.mxu0 %v881_v3  ;;  %v779_v11 = vld [vmem:[%s386_s17] ss:$0 sm:$0xff] }
  0x14   : > { %v780_v24 = vld [vmem:[%s399_s20] ss:$0 sm:$0xff] }
  0x15   : > { %445 = vmatpush.msra.mxu0 %v892_v5 }
  0x16   : > { %733 = vmatmul.msk.f32.vlgmr.msra.gmra.mxu0 %vm419_vm1, %v408_v6 }
  0x18   : > { %455 = vperm.xlu0 %777, %v413_v7  }
  0x1a   : > { %491 = vperm.xlu1 %778, %v416_v8  }
  0x1e   : > { %734 = vmatmul.msk.f32.gmra.mxu0 %vm419_vm1, %v409_v9 }
  0x82   : > { %v461_v10 = vpop.permute.xlu0 %460 }
  0x83   : > { %v467_v22 = vadd.f32 %v779_v11, %v461_v10 }
  0x84   : > { %v497_v15 = vpop.permute.xlu1 %496 }
  0x85   : > { %v469_v29 = vadd.f32 2.0, %v467_v22 }
  0x8a   : > { %v456_v12 = vpop.permute.xlu0 %455 }
  0x8b   : > { %v466_v13 = vadd.f32 %v779_v11, %v456_v12 }
  0x8c   : > { %v492_v25 = vpop.permute.xlu1 %491 }
  0x8d   : > { %v468_v16 = vadd.f32 2.0, %v466_v13 }
  0x93   : > { %v447_v17 = vpop.f32.mrf.mxu0 }
  0x94   : > { %v470_v20 = vmul.f32 2.0, %v447_v17 }
  0x96   : > { %v472_v21 = vsub.f32 %v468_v16, %v470_v20 }
  0x98   : > { %v474_v23 = vmax.f32 %v472_v21, 0.0 }
  0x9a   : > { %v487_v26 = vsel %vm485_vm2, 0.0, %v474_v23 }
  0x9b   : > { %v450_v28 = vpop.f32.mrf.mxu0  ;;  %vm499_vm3 = vcmp.le.f32.partialorder %v487_v26, %v492_v25  ;;  %vm506_vm4 = vcmp.le.f32.partialorder %v487_v26, %v780_v24 }
  0x9c   : > { %v471_v30 = vmul.f32 2.0, %v450_v28  ;;  %v501_v33 = vsel %vm499_vm3, 1.0, %v808_v32  ;;  %v508_v34 = vsel %vm506_vm4, 1.0, %v808_v32 }
  0x9d   : > { %v510_v37 = vsel %vm485_vm2, 0.0, %v501_v33  ;;  %v512_v38 = vsel %vm485_vm2, 0.0, %v508_v34 }
  0x9e   : > { %v473_v31 = vsub.f32 %v469_v29, %v471_v30  ;;  %v514_v43 = vadd.f32 %v512_v38, %v510_v37 }
  0xa0   : > { %v475_v35 = vmax.f32 %v473_v31, 0.0  ;;  %v516_v47 = vmul.f32 0.5, %v514_v43 }
  0xa2   : > { %v488_v36 = vsel %vm486_vm5, 0.0, %v475_v35  ;;  %v518_v48 = vsel %vm485_vm2, 1.0, %v516_v47 }
  0xa3   : > { %vm500_vm6 = vcmp.le.f32.partialorder %v488_v36, %v497_v15  ;;  %vm507_vm7 = vcmp.le.f32.partialorder %v488_v36, %v780_v24 }
  0xa4   : > { %v502_v39 = vsel %vm500_vm6, 1.0, %v808_v32  ;;  %v509_v40 = vsel %vm507_vm7, 1.0, %v808_v32 }
  0xa5   : > { %v511_v41 = vsel %vm486_vm5, 0.0, %v502_v39  ;;  %v513_v42 = vsel %vm486_vm5, 0.0, %v509_v40 }
  0xa6   : > { %v515_v44 = vadd.f32 %v513_v42, %v511_v41 }
  0xa8   : > { %v517_v45 = vmul.f32 0.5, %v515_v44 }
  0xaa   : > { %v519_v46 = vsel %vm486_vm5, 1.0, %v517_v45 }
  0xab   : > { %735 = vmatpush.xpose.msk.msra.mxu1 %vm520_vm8, %v519_v46  ;;  %746 = vmatpush.xpose.msk.msra.mxu2 %vm520_vm8, %v519_v46 }
  0xac   : > { %747 = vmatpush.xpose.msk.msra.mxu3 %vm520_vm8, %v519_v46 }
  0xaf   : > { %736 = vmatpush.xpose.msk.msra.mxu1 %vm520_vm8, %v518_v48  ;;  %748 = vmatpush.xpose.msk.msra.mxu2 %vm520_vm8, %v518_v48 }
  0xb0   : > { %749 = vmatpush.xpose.msk.msra.mxu3 %vm520_vm8, %v518_v48 }
  0xb2   : > { %738 = vmatmul.msk.f32.vlgmr.msra.gmra.mxu2 %vm520_vm8, %v881_v3  ;;  %737 = vmatmul.msk.f32.vlgmr.msra.gmra.mxu1 %vm520_vm8, %v892_v5 }
  0xb3   : > { %739 = vmatmul.msk.f32.vlgmr.msra.gmra.mxu3 %vm520_vm8, %v879_v2 }
 0x12f   : > { %v552_v51 = vpop.f32.mrf.mxu1 }
 0x135   : > { %v555_v52 = vpop.f32.mrf.mxu2 }
 0x136   : > { %v558_v49 = vpop.f32.mrf.mxu3 }
 0x137   : > { %781 = vrcp.f32 %v558_v49 }
 0x13d   : > { %v782_v50 = vpop.eup %781 }
 0x13e   : > { %v562_v53 = vperm.slane %v782_v50, 0 }
 0x140   : > { %v563_v54 = vmul.f32 %v562_v53, %v552_v51  ;;  %v564_v55 = vmul.f32 %v562_v53, %v555_v52 }
 0x142   : > { %v565_v56 = vmax.f32 %v563_v54, 0.0  ;;  %v566_v57 = vmax.f32 %v564_v55, 0.0 }
 0x144   : > { %567 = vst.msk [vmem:[%s407_s27] sm:$0xff] %vm520_vm8, %v565_v56 }
 0x145   : > { %568 = vst.msk [vmem:[%s407_s27 + $0x8] sm:$0xff] %vm520_vm8, %v566_v57 }
 0x146 PF: > { %s16_s23 = sadd.s32 1, %s805_s23   ;;  %s942_s21 = smov %s801_s22 }
 0x147   : > { %p13_p5 = scmp.ge.s32.totalorder %s16_s23, 6   ;;  %s943_s22 = smov %s945_s24 }
 0x149   :  { %15 = sbr.rel (!%p13_p5) target bundleno = 2 (0x2), region = 89 }

// kernel: capsule_net_forward.7
= control target key start
LH: loop header
LB: loop body
LE: loop exit
PB: predicated region body
PF: predicated region fallthrough
CT: control target
= control target key end

     0   :  { %vm378_vm0 = vcmask 1043456   ;;  %vm341_vm1 = vcmask 523264   ;;  %vm371_vm2 = vcmask 31744   ;;  %vm639_vm9 = vcmask 261120   ;;  %s3318_s6 = inlined_call_operand.vmem [shape: f32[512,64], index: 6, kind: input, shape index: {}]   ;;  %s3319_s0 = inlined_call_operand.vmem [shape: bf16[16,512], index: 0, kind: input, shape index: {}]   ;;  %s3320_s7 = inlined_call_operand.vmem [shape: f32[64,4], index: 7, kind: input, shape index: {}]   ;;  %s3321_s8 = inlined_call_operand.vmem [shape: f32[4,64], index: 8, kind: input, shape index: {}]   ;;  %s3322_s1 = inlined_call_operand.vmem [shape: f32[16,64], index: 1, kind: input, shape index: {}]   ;;  %s3323_s2 = inlined_call_operand.vmem [shape: f32[64,512], index: 2, kind: input, shape index: {}]   ;;  %s3324_s3 = inlined_call_operand.vmem [shape: f32[512,32], index: 3, kind: input, shape index: {}]   ;;  %s3325_s4 = inlined_call_operand.vmem [shape: f32[32,32], index: 4, kind: input, shape index: {}]   ;;  %s3326_s5 = inlined_call_operand.vmem [shape: f32[32,512], index: 5, kind: input, shape index: {}]   ;;  %s3327_s9 = inlined_call_operand.vmem [shape: f32[16,64], index: 9, kind: output, shape index: {}]  }
   0x1   :  { %v169_v0 = vld [vmem:[%s3318_s6 + $0x78] sm:$0xff]  ;;  %v168_v4 = vld [vmem:[%s3318_s6 + $0x70] sm:$0xff]  ;;  %v167_v8 = vld [vmem:[%s3318_s6 + $0x68] sm:$0xff] }
   0x2   :  { %v185_v1 = vld [vmem:[%s3318_s6 + $0xf8] sm:$0xff]  ;;  %247 = vmatpush.msra.mxu0 %v169_v0  ;;  %v184_v5 = vld [vmem:[%s3318_s6 + $0xf0] sm:$0xff]  ;;  %v183_v9 = vld [vmem:[%s3318_s6 + $0xe8] sm:$0xff] }
   0x3   :  { %v201_v2 = vld [vmem:[%s3318_s6 + $0x178] sm:$0xff]  ;;  %269 = vmatpush.msra.mxu1 %v185_v1  ;;  %v200_v6 = vld [vmem:[%s3318_s6 + $0x170] sm:$0xff]  ;;  %v199_v10 = vld [vmem:[%s3318_s6 + $0x168] sm:$0xff] }
   0x4   :  { %v217_v3 = vld [vmem:[%s3318_s6 + $0x1f8] sm:$0xff]  ;;  %291 = vmatpush.msra.mxu2 %v201_v2  ;;  %v216_v7 = vld [vmem:[%s3318_s6 + $0x1f0] sm:$0xff]  ;;  %248 = vmatpush.msra.mxu0 %v168_v4  ;;  %v215_v11 = vld [vmem:[%s3318_s6 + $0x1e8] sm:$0xff] }
   0x5   :  { %313 = vmatpush.msra.mxu3 %v217_v3  ;;  %270 = vmatpush.msra.mxu1 %v184_v5  ;;  %v166_v12 = vld [vmem:[%s3318_s6 + $0x60] sm:$0xff]  ;;  %v165_v16 = vld [vmem:[%s3318_s6 + $0x58] sm:$0xff]  ;;  %v164_v20 = vld [vmem:[%s3318_s6 + $0x50] sm:$0xff] }
   0x6   :  { %292 = vmatpush.msra.mxu2 %v200_v6  ;;  %v182_v13 = vld [vmem:[%s3318_s6 + $0xe0] sm:$0xff]  ;;  %249 = vmatpush.msra.mxu0 %v167_v8  ;;  %v181_v17 = vld [vmem:[%s3318_s6 + $0xd8] sm:$0xff]  ;;  %v1672_v21 = vld [vmem:[%s3318_s6 + $0xd0] sm:$0xff] }
   0x7   :  { %314 = vmatpush.msra.mxu3 %v216_v7  ;;  %271 = vmatpush.msra.mxu1 %v183_v9  ;;  %v198_v14 = vld [vmem:[%s3318_s6 + $0x160] sm:$0xff]  ;;  %v197_v18 = vld [vmem:[%s3318_s6 + $0x158] sm:$0xff]  ;;  %v1677_v22 = vld [vmem:[%s3318_s6 + $0x150] sm:$0xff] }
   0x8   :  { %v214_v15 = vld [vmem:[%s3318_s6 + $0x1e0] sm:$0xff]  ;;  %293 = vmatpush.msra.mxu2 %v199_v10  ;;  %250 = vmatpush.msra.mxu0 %v166_v12  ;;  %v213_v19 = vld [vmem:[%s3318_s6 + $0x1d8] sm:$0xff]  ;;  %v1682_v23 = vld [vmem:[%s3318_s6 + $0x1d0] sm:$0xff] }
   0x9   :  { %315 = vmatpush.msra.mxu3 %v215_v11  ;;  %272 = vmatpush.msra.mxu1 %v182_v13  ;;  %v1687_v24 = vld [vmem:[%s3318_s6 + $0x48] sm:$0xff]  ;;  %v1710_v28 = vld [vmem:[%s3318_s6 + $0x40] sm:$0xff]  ;;  %v1734_v32 = vld [vmem:[%s3318_s6 + $0x38] sm:$0xff] }
   0xa   :  { %294 = vmatpush.msra.mxu2 %v198_v14  ;;  %251 = vmatpush.msra.mxu0 %v165_v16  ;;  %v1692_v25 = vld [vmem:[%s3318_s6 + $0xc8] sm:$0xff]  ;;  %v1715_v29 = vld [vmem:[%s3318_s6 + $0xc0] sm:$0xff]  ;;  %v1739_v33 = vld [vmem:[%s3318_s6 + $0xb8] sm:$0xff] }
   0xb   :  { %316 = vmatpush.msra.mxu3 %v214_v15  ;;  %273 = vmatpush.msra.mxu1 %v181_v17  ;;  %v1698_v26 = vld [vmem:[%s3318_s6 + $0x148] sm:$0xff]  ;;  %v1722_v30 = vld [vmem:[%s3318_s6 + $0x140] sm:$0xff]  ;;  %v1746_v34 = vld [vmem:[%s3318_s6 + $0x138] sm:$0xff] }
   0xc   :  { %295 = vmatpush.msra.mxu2 %v197_v18  ;;  %252 = vmatpush.msra.mxu0 %v164_v20  ;;  %v1703_v27 = vld [vmem:[%s3318_s6 + $0x1c8] sm:$0xff]  ;;  %v1727_v31 = vld [vmem:[%s3318_s6 + $0x1c0] sm:$0xff]  ;;  %v1751_v35 = vld [vmem:[%s3318_s6 + $0x1b8] sm:$0xff] }
   0xd   :  { %317 = vmatpush.msra.mxu3 %v213_v19  ;;  %274 = vmatpush.msra.mxu1 %v1672_v21  ;;  %v1758_v36 = vld [vmem:[%s3318_s6 + $0x30] sm:$0xff]  ;;  %v1782_v40 = vld [vmem:[%s3318_s6 + $0x28] sm:$0xff]  ;;  %v1806_v44 = vld [vmem:[%s3318_s6 + $0x20] sm:$0xff] }
   0xe   :  { %296 = vmatpush.msra.mxu2 %v1677_v22  ;;  %253 = vmatpush.msra.mxu0 %v1687_v24  ;;  %v1763_v37 = vld [vmem:[%s3318_s6 + $0xb0] sm:$0xff]  ;;  %v1787_v41 = vld [vmem:[%s3318_s6 + $0xa8] sm:$0xff]  ;;  %v1811_v45 = vld [vmem:[%s3318_s6 + $0xa0] sm:$0xff] }
   0xf   :  { %318 = vmatpush.msra.mxu3 %v1682_v23  ;;  %275 = vmatpush.msra.mxu1 %v1692_v25  ;;  %v1770_v38 = vld [vmem:[%s3318_s6 + $0x130] sm:$0xff]  ;;  %v1794_v42 = vld [vmem:[%s3318_s6 + $0x128] sm:$0xff]  ;;  %v1818_v46 = vld [vmem:[%s3318_s6 + $0x120] sm:$0xff] }
  0x10   :  { %297 = vmatpush.msra.mxu2 %v1698_v26  ;;  %254 = vmatpush.msra.mxu0 %v1710_v28  ;;  %v1775_v39 = vld [vmem:[%s3318_s6 + $0x1b0] sm:$0xff]  ;;  %v1799_v43 = vld [vmem:[%s3318_s6 + $0x1a8] sm:$0xff]  ;;  %v1823_v47 = vld [vmem:[%s3318_s6 + $0x1a0] sm:$0xff] }
  0x11   :  { %319 = vmatpush.msra.mxu3 %v1703_v27  ;;  %276 = vmatpush.msra.mxu1 %v1715_v29  ;;  %v1828_v48 = vld [vmem:[%s3318_s6 + $0x18] sm:$0xff]  ;;  %v1852_v52 = vld [vmem:[%s3318_s6 + $0x10] sm:$0xff]  ;;  %v1874_v56 = vld [vmem:[%s3318_s6 + $0x8] sm:$0xff] }
  0x12   :  { %298 = vmatpush.msra.mxu2 %v1722_v30  ;;  %255 = vmatpush.msra.mxu0 %v1734_v32  ;;  %v1835_v49 = vld [vmem:[%s3318_s6 + $0x98] sm:$0xff]  ;;  %v1857_v53 = vld [vmem:[%s3318_s6 + $0x90] sm:$0xff]  ;;  %v1879_v57 = vld [vmem:[%s3318_s6 + $0x88] sm:$0xff] }
  0x13   :  { %320 = vmatpush.msra.mxu3 %v1727_v31  ;;  %277 = vmatpush.msra.mxu1 %v1739_v33  ;;  %v1840_v50 = vld [vmem:[%s3318_s6 + $0x118] sm:$0xff]  ;;  %v1862_v54 = vld [vmem:[%s3318_s6 + $0x110] sm:$0xff]  ;;  %v1886_v58 = vld [vmem:[%s3318_s6 + $0x108] sm:$0xff] }
  0x14   :  { %299 = vmatpush.msra.mxu2 %v1746_v34  ;;  %256 = vmatpush.msra.mxu0 %v1758_v36  ;;  %v1845_v51 = vld [vmem:[%s3318_s6 + $0x198] sm:$0xff]  ;;  %v1869_v55 = vld [vmem:[%s3318_s6 + $0x190] sm:$0xff]  ;;  %v1891_v59 = vld [vmem:[%s3318_s6 + $0x188] sm:$0xff] }
  0x15   :  { %321 = vmatpush.msra.mxu3 %v1751_v35  ;;  %278 = vmatpush.msra.mxu1 %v1763_v37  ;;  %v1402_v60 = vld [vmem:[%s3319_s0] sm:$0xf]  ;;  %v1464_v61 = vld [vmem:[%s3319_s0 + $0xc] sm:$0xf0]  ;;  %v1462_v62 = vld [vmem:[%s3319_s0 + $0x4] sm:$0xf] }
  0x16   :  { %300 = vmatpush.msra.mxu2 %v1770_v38  ;;  %257 = vmatpush.msra.mxu0 %v1782_v40  ;;  %v1404_v63 = vld [vmem:[%s3319_s0 + $0x10] sm:$0xf0]  ;;  %v1410_v0 = vld [vmem:[%s3319_s0 + $0x8] sm:$0xf]  ;;  %v1465_v1 = vld [vmem:[%s3319_s0 + $0x14] sm:$0xf0]  ;;  %v1403_v8 = vor.u32 %v1464_v61, %v1402_v60 }
  0x17   :  { %322 = vmatpush.msra.mxu3 %v1775_v39  ;;  %279 = vmatpush.msra.mxu1 %v1787_v41  ;;  %v1463_v2 = vld [vmem:[%s3319_s0 + $0xc] sm:$0xf]  ;;  %v1412_v3 = vld [vmem:[%s3319_s0 + $0x18] sm:$0xf0]  ;;  %v1926_v4 = vld [vmem:[%s3318_s6] sm:$0xff]  ;;  %v1407_v9 = vor.u32 %v1462_v62, %v1404_v63  ;;  %v1411_v10 = vor.u32 %v1465_v1, %v1410_v0 }
  0x18   :  { %301 = vmatpush.msra.mxu2 %v1794_v42  ;;  %258 = vmatpush.msra.mxu0 %v1806_v44  ;;  %v1931_v5 = vld [vmem:[%s3318_s6 + $0x80] sm:$0xff]  ;;  %v1415_v11 = vor.u32 %v1463_v2, %v1412_v3  ;;  %v1954_v12 = vld [vmem:[%s3320_s7 + $0x38] sm:$0xff]  ;;  %v1959_v13 = vld [vmem:[%s3320_s7 + $0x30] sm:$0xff] }
  0x19   :  { %323 = vmatpush.msra.mxu3 %v1799_v43  ;;  %280 = vmatpush.msra.mxu1 %v1811_v45  ;;  %v1938_v6 = vld [vmem:[%s3318_s6 + $0x100] sm:$0xff]  ;;  %3470 = vst [vmem:[#allocation2_spill] sm:$0xff] %v1959_v13  ;;  %v1965_v14 = vld [vmem:[%s3320_s7 + $0x28] sm:$0xff]  ;;  %v1978_v16 = vld [vmem:[%s3320_s7 + $0x18] sm:$0xff] }
  0x1a   :  { %302 = vmatpush.msra.mxu2 %v1818_v46  ;;  %259 = vmatpush.msra.mxu0 %v1828_v48  ;;  %v1943_v7 = vld [vmem:[%s3318_s6 + $0x180] sm:$0xff]  ;;  %3471 = vst [vmem:[#allocation3_spill] sm:$0xff] %v1965_v14  ;;  %v1984_v17 = vld [vmem:[%s3320_s7 + $0x10] sm:$0xff]  ;;  %v1990_v18 = vld [vmem:[%s3320_s7 + $0x8] sm:$0xff] }
  0x1b   :  { %324 = vmatpush.msra.mxu3 %v1823_v47  ;;  %281 = vmatpush.msra.mxu1 %v1835_v49  ;;  %v1972_v15 = vld [vmem:[%s3320_s7 + $0x20] sm:$0xff]  ;;  %3473 = vst [vmem:[#allocation5_spill] sm:$0xff] %v1978_v16 }
  0x1c   :  { %303 = vmatpush.msra.mxu2 %v1840_v50  ;;  %260 = vmatpush.msra.mxu0 %v1852_v52  ;;  %3472 = vst [vmem:[#allocation4_spill] sm:$0xff] %v1972_v15  ;;  %v1996_v19 = vld [vmem:[%s3320_s7] sm:$0xff] }
  0x1d   :  { %325 = vmatpush.msra.mxu3 %v1845_v51  ;;  %282 = vmatpush.msra.mxu1 %v1857_v53  ;;  %3474 = vst [vmem:[#allocation6_spill] sm:$0xff] %v1984_v17  ;;  %v2002_v20 = vld [vmem:[%s3321_s8] sm:$0xf] }
  0x1e   :  { %304 = vmatpush.msra.mxu2 %v1862_v54  ;;  %261 = vmatpush.msra.mxu0 %v1874_v56  ;;  %3475 = vst [vmem:[#allocation7_spill] sm:$0xff] %v1990_v18  ;;  %v36_v3 = vld [vmem:[%s3322_s1] sm:$0xff] }
  0x1f   :  { %326 = vmatpush.msra.mxu3 %v1869_v55  ;;  %283 = vmatpush.msra.mxu1 %v1879_v57  ;;  %3476 = vst [vmem:[#allocation8_spill] sm:$0xff] %v1996_v19 }
  0x20   :  { %305 = vmatpush.msra.mxu2 %v1886_v58  ;;  %262 = vmatpush.msra.mxu0 %v1926_v4 }
  0x21   :  { %327 = vmatpush.msra.mxu3 %v1891_v59  ;;  %284 = vmatpush.msra.mxu1 %v1931_v5 }
  0x22   :  { %306 = vmatpush.msra.mxu2 %v1938_v6  ;;  %263 = vmatmul.bf16.vlgmr.msra.gmra.mxu0 %v1403_v8 }
  0x23   :  { %328 = vmatpush.msra.mxu3 %v1943_v7  ;;  %285 = vmatmul.bf16.vlgmr.msra.gmra.mxu1 %v1407_v9 }
  0x24   :  { %307 = vmatmul.bf16.vlgmr.msra.gmra.mxu2 %v1411_v10  ;;  %329 = vmatmul.bf16.vlgmr.msra.gmra.mxu3 %v1415_v11 }
  0x25   :  { %356 = vmatpush.msrb.mxu0 %v1954_v12  ;;  %1418 = vmatpush.msk.msrb.mxu1 %vm378_vm0, %v2002_v20 }
  0x27   :  { %357 = vmatpush.msrb.mxu0 %v1959_v13 }
  0x29   :  { %358 = vmatpush.msrb.mxu0 %v1965_v14 }
  0x2b   :  { %359 = vmatpush.msrb.mxu0 %v1972_v15  ;;  %v2271_v15 = vld [vmem:[%s3324_s3 + $0xf0] sm:$0xff] }
  0x2c   :  { %3517 = vst [vmem:[#allocation49_spill] sm:$0xff] %v2271_v15 }
  0x2d   :  { %360 = vmatpush.msrb.mxu0 %v1978_v16 }
  0x2f   :  { %361 = vmatpush.msrb.mxu0 %v1984_v17 }
  0x31   :  { %362 = vmatpush.msrb.mxu0 %v1990_v18 }
  0x33   :  { %363 = vmatpush.msrb.mxu0 %v1996_v19 }
  0x9f   :  { %v264_v60 = vpop.f32.mrf.mxu0 }
  0xa0   :  { %v286_v61 = vpop.f32.mrf.mxu1 }
  0xa1   :  { %v287_v62 = vadd.f32 %v286_v61, %v264_v60 }
  0xa7   :  { %v308_v63 = vpop.f32.mrf.mxu2  ;;  %v330_v0 = vpop.f32.mrf.mxu3 }
  0xa8   :  { %v309_v1 = vadd.f32 %v308_v63, %v287_v62  ;;  %v266_v8 = vpop.f32.mrf.mxu0  ;;  %v288_v9 = vpop.f32.mrf.mxu1  ;;  %v37_v62 = vld [vmem:[%s3322_s1 + $0x8] sm:$0xff] }
  0xa9   :  { %v289_v19 = vadd.f32 %v288_v9, %v266_v8  ;;  %v2051_v8 = vld [vmem:[%s3323_s2 + $0xc0] sm:$0xff]  ;;  %v2056_v9 = vld [vmem:[%s3323_s2 + $0xc8] sm:$0xff] }
  0xaa   :  { %v331_v2 = vadd.f32 %v330_v0, %v309_v1  ;;  %3480 = vst [vmem:[#allocation12_spill] sm:$0xff] %v2051_v8 }
  0xab   :  { %3481 = vst [vmem:[#allocation13_spill] sm:$0xff] %v2056_v9 }
  0xac   :  { %v335_v10 = vmul.f32 0.25, %v331_v2 }
  0xae   :  { %v2009_v11 = vadd.f32 %v335_v10, %v36_v3  ;;  %v2044_v3 = vld [vmem:[%s3323_s2 + $0xf8] sm:$0xff]  ;;  %v2061_v10 = vld [vmem:[%s3323_s2 + $0xd0] sm:$0xff] }
  0xaf   :  { %v310_v18 = vpop.f32.mrf.mxu2  ;;  %v332_v61 = vpop.f32.mrf.mxu3  ;;  %3479 = vst [vmem:[#allocation11_spill] sm:$0xff] %v2044_v3  ;;  %512 = vmatpush.msra.mxu1 %v2044_v3  ;;  %v2152_v3 = vld [vmem:[%s3323_s2 + $0x48] sm:$0xff] }
  0xb0   :  { %v339_v17 = vmul.f32 %v2009_v11, %v2009_v11  ;;  %v311_v60 = vadd.f32 %v310_v18, %v289_v19  ;;  %v2037_v19 = vld [vmem:[%s3323_s2 + $0xf0] sm:$0xff]  ;;  %3482 = vst [vmem:[#allocation14_spill] sm:$0xff] %v2061_v10 }
  0xb1   :  { %3478 = vst [vmem:[#allocation10_spill] sm:$0xff] %v2037_v19  ;;  %489 = vmatpush.msra.mxu0 %v2037_v19  ;;  %v2123_v19 = vld [vmem:[%s3323_s2 + $0x60] sm:$0xff] }
  0xb2   :  { %v333_v16 = vadd.f32 %v332_v61, %v311_v60  ;;  %1416 = vmatmul.msk.f32.vlgmr.msrb.gmra.mxu0 %vm341_vm1, %v339_v17  ;;  %v2027_v17 = vld [vmem:[%s3323_s2 + $0xe0] sm:$0xff]  ;;  %v2068_v60 = vld [vmem:[%s3323_s2 + $0xd8] sm:$0xff]  ;;  %3492 = vst [vmem:[#allocation24_spill] sm:$0xff] %v2123_v19 }
  0xb3   :  { %3477 = vst [vmem:[#allocation9_spill] sm:$0xff] %v2027_v17  ;;  %443 = vmatpush.msrb.mxu2 %v2027_v17  ;;  %490 = vmatpush.msra.mxu0 %v2061_v10  ;;  %v2075_v61 = vld [vmem:[%s3323_s2 + $0xa0] sm:$0xff]  ;;  %v2109_v10 = vld [vmem:[%s3323_s2 + $0x90] sm:$0xff] }
  0xb4   :  { %v336_v63 = vmul.f32 0.25, %v333_v16  ;;  %v2032_v16 = vld [vmem:[%s3323_s2 + $0xe8] sm:$0xff]  ;;  %3483 = vst [vmem:[#allocation15_spill] sm:$0xff] %v2068_v60  ;;  %513 = vmatpush.msra.mxu1 %v2068_v60  ;;  %v2133_v60 = vld [vmem:[%s3323_s2 + $0x70] sm:$0xff]  ;;  %v2480_v17 = vld [vmem:[%s3324_s3 + $0x120] sm:$0xff] }
  0xb5   :  { %466 = vmatpush.msrb.mxu3 %v2032_v16  ;;  %444 = vmatpush.msrb.mxu2 %v2051_v8  ;;  %3484 = vst [vmem:[#allocation16_spill] sm:$0xff] %v2075_v61 }
  0xb6   :  { %v2017_v0 = vadd.f32 %v336_v63, %v37_v62  ;;  %v2080_v62 = vld [vmem:[%s3323_s2 + $0xa8] sm:$0xff]  ;;  %v2085_v63 = vld [vmem:[%s3323_s2 + $0xb0] sm:$0xff]  ;;  %3490 = vst [vmem:[#allocation22_spill] sm:$0xff] %v2109_v10 }
  0xb7   :  { %467 = vmatpush.msrb.mxu3 %v2056_v9  ;;  %3485 = vst [vmem:[#allocation17_spill] sm:$0xff] %v2080_v62  ;;  %445 = vmatpush.msrb.mxu2 %v2075_v61 }
  0xb8   :  { %v340_v1 = vmul.f32 %v2017_v0, %v2017_v0  ;;  %3486 = vst [vmem:[#allocation18_spill] sm:$0xff] %v2085_v63  ;;  %491 = vmatpush.msra.mxu0 %v2085_v63  ;;  %v2116_v63 = vld [vmem:[%s3323_s2 + $0x98] sm:$0xff] }
  0xb9   :  { %468 = vmatpush.msrb.mxu3 %v2080_v62  ;;  %3491 = vst [vmem:[#allocation23_spill] sm:$0xff] %v2116_v63 }
  0xba   :  { %1417 = vmatmul.msk.f32.gmra.mxu0 %vm341_vm1, %v340_v1  ;;  %v2092_v1 = vld [vmem:[%s3323_s2 + $0xb8] sm:$0xff]  ;;  %3494 = vst [vmem:[#allocation26_spill] sm:$0xff] %v2133_v60 }
  0xbb   :  { %3487 = vst [vmem:[#allocation19_spill] sm:$0xff] %v2092_v1  ;;  %514 = vmatpush.msra.mxu1 %v2092_v1  ;;  %492 = vmatpush.msra.mxu0 %v2109_v10  ;;  %v2128_v1 = vld [vmem:[%s3323_s2 + $0x68] sm:$0xff]  ;;  %v2140_v10 = vld [vmem:[%s3323_s2 + $0x78] sm:$0xff] }
  0xbc   :  { %3493 = vst [vmem:[#allocation25_spill] sm:$0xff] %v2128_v1 }
  0xbd   :  { %515 = vmatpush.msra.mxu1 %v2116_v63  ;;  %3495 = vst [vmem:[#allocation27_spill] sm:$0xff] %v2140_v10  ;;  %493 = vmatpush.msra.mxu0 %v2133_v60  ;;  %v2147_v63 = vld [vmem:[%s3323_s2 + $0x40] sm:$0xff]  ;;  %v2164_v60 = vld [vmem:[%s3323_s2 + $0x58] sm:$0xff] }
  0xbe   :  { %3496 = vst [vmem:[#allocation28_spill] sm:$0xff] %v2147_v63 }
  0xbf   :  { %516 = vmatpush.msra.mxu1 %v2140_v10  ;;  %3497 = vst [vmem:[#allocation29_spill] sm:$0xff] %v2152_v3  ;;  %v2171_v10 = vld [vmem:[%s3323_s2 + $0x20] sm:$0xff] }
  0xc0   :  { %3499 = vst [vmem:[#allocation31_spill] sm:$0xff] %v2164_v60 }
  0xc1   :  { %517 = vmatpush.msra.mxu1 %v2164_v60  ;;  %3500 = vst [vmem:[#allocation32_spill] sm:$0xff] %v2171_v10  ;;  %v2195_v60 = vld [vmem:[%s3323_s2] sm:$0xff] }
  0xc2   :  { %3504 = vst [vmem:[#allocation36_spill] sm:$0xff] %v2195_v60 }
  0xc3   :  { %3550 = vst [vmem:[#allocation82_spill] sm:$0xff] %v2480_v17 }
 0x12f   :  { %v365_v2 = vpop.f32.mrf.mxu0 }
 0x130   :  { %1419 = vmatmul.msk.f32.vlgmr.msrb.gmra.mxu1 %vm371_vm2, %v365_v2  ;;  %v2099_v2 = vld [vmem:[%s3323_s2 + $0x80] sm:$0xff] }
 0x131   :  { %3488 = vst [vmem:[#allocation20_spill] sm:$0xff] %v2099_v2  ;;  %446 = vmatpush.msrb.mxu2 %v2099_v2 }
 0x133   :  { %447 = vmatpush.msrb.mxu2 %v2123_v19  ;;  %v2157_v19 = vld [vmem:[%s3323_s2 + $0x50] sm:$0xff] }
 0x134   :  { %3498 = vst [vmem:[#allocation30_spill] sm:$0xff] %v2157_v19  ;;  %494 = vmatpush.msra.mxu0 %v2157_v19  ;;  %v2188_v19 = vld [vmem:[%s3323_s2 + $0x38] sm:$0xff] }
 0x135   :  { %448 = vmatpush.msrb.mxu2 %v2147_v63  ;;  %v2176_v63 = vld [vmem:[%s3323_s2 + $0x28] sm:$0xff]  ;;  %3503 = vst [vmem:[#allocation35_spill] sm:$0xff] %v2188_v19  ;;  %518 = vmatpush.msra.mxu1 %v2188_v19 }
 0x136   :  { %3501 = vst [vmem:[#allocation33_spill] sm:$0xff] %v2176_v63 }
 0x137   :  { %v368_v18 = vpop.f32.mrf.mxu0  ;;  %449 = vmatpush.msrb.mxu2 %v2171_v10  ;;  %v2200_v10 = vld [vmem:[%s3323_s2 + $0x8] sm:$0xff] }
 0x138   :  { %1420 = vmatmul.msk.f32.gmra.mxu1 %vm371_vm2, %v368_v18  ;;  %v2104_v18 = vld [vmem:[%s3323_s2 + $0x88] sm:$0xff]  ;;  %3505 = vst [vmem:[#allocation37_spill] sm:$0xff] %v2200_v10 }
 0x139   :  { %3489 = vst [vmem:[#allocation21_spill] sm:$0xff] %v2104_v18  ;;  %469 = vmatpush.msrb.mxu3 %v2104_v18  ;;  %450 = vmatpush.msrb.mxu2 %v2195_v60  ;;  %v2224_v60 = vld [vmem:[%s3324_s3 + $0x1f8] sm:$0xff]  ;;  %v2248_v18 = vld [vmem:[%s3324_s3 + $0x1e8] sm:$0xff] }
 0x13a   :  { %3509 = vst [vmem:[#allocation41_spill] sm:$0xff] %v2224_v60 }
 0x13b   :  { %470 = vmatpush.msrb.mxu3 %v2128_v1  ;;  %v2219_v1 = vld [vmem:[%s3324_s3 + $0x178] sm:$0xff]  ;;  %3513 = vst [vmem:[#allocation45_spill] sm:$0xff] %v2248_v18 }
 0x13c   :  { %3508 = vst [vmem:[#allocation40_spill] sm:$0xff] %v2219_v1 }
 0x13d   :  { %471 = vmatpush.msrb.mxu3 %v2152_v3  ;;  %v2181_v3 = vld [vmem:[%s3323_s2 + $0x30] sm:$0xff] }
 0x13e   :  { %3502 = vst [vmem:[#allocation34_spill] sm:$0xff] %v2181_v3  ;;  %495 = vmatpush.msra.mxu0 %v2181_v3  ;;  %v2212_v3 = vld [vmem:[%s3323_s2 + $0x18] sm:$0xff] }
 0x13f   :  { %472 = vmatpush.msrb.mxu3 %v2176_v63  ;;  %v2205_v63 = vld [vmem:[%s3323_s2 + $0x10] sm:$0xff]  ;;  %3507 = vst [vmem:[#allocation39_spill] sm:$0xff] %v2212_v3  ;;  %519 = vmatpush.msra.mxu1 %v2212_v3  ;;  %v2243_v3 = vld [vmem:[%s3324_s3 + $0x168] sm:$0xff] }
 0x140   :  { %3506 = vst [vmem:[#allocation38_spill] sm:$0xff] %v2205_v63  ;;  %496 = vmatpush.msra.mxu0 %v2205_v63  ;;  %v2238_v63 = vld [vmem:[%s3324_s3 + $0x1f0] sm:$0xff] }
 0x141   :  { %473 = vmatpush.msrb.mxu3 %v2200_v10  ;;  %v2229_v10 = vld [vmem:[%s3324_s3 + $0x170] sm:$0xff]  ;;  %612 = vmatpush.msrb.mxu1 %v2224_v60  ;;  %3511 = vst [vmem:[#allocation43_spill] sm:$0xff] %v2238_v63  ;;  %v2258_v60 = vld [vmem:[%s3324_s3 + $0xf8] sm:$0xff] }
 0x142   :  { %3510 = vst [vmem:[#allocation42_spill] sm:$0xff] %v2229_v10  ;;  %589 = vmatpush.msrb.mxu0 %v2219_v1  ;;  %v2266_v1 = vld [vmem:[%s3324_s3 + $0x70] sm:$0xff] }
 0x143   :  { %3512 = vst [vmem:[#allocation44_spill] sm:$0xff] %v2243_v3  ;;  %613 = vmatpush.msrb.mxu1 %v2238_v63  ;;  %566 = vmatpush.msra.mxu3 %v2258_v60  ;;  %v2283_v63 = vld [vmem:[%s3324_s3 + $0x1e0] sm:$0xff] }
 0x144   :  { %3515 = vst [vmem:[#allocation47_spill] sm:$0xff] %v2258_v60  ;;  %590 = vmatpush.msrb.mxu0 %v2229_v10  ;;  %v2278_v10 = vld [vmem:[%s3324_s3 + $0x160] sm:$0xff]  ;;  %v2295_v60 = vld [vmem:[%s3324_s3 + $0xe8] sm:$0xff] }
 0x145   :  { %3516 = vst [vmem:[#allocation48_spill] sm:$0xff] %v2266_v1  ;;  %614 = vmatpush.msrb.mxu1 %v2248_v18  ;;  %567 = vmatpush.msra.mxu3 %v2271_v15  ;;  %v2307_v18 = vld [vmem:[%s3324_s3 + $0x1d8] sm:$0xff]  ;;  %v2319_v15 = vld [vmem:[%s3324_s3 + $0xe0] sm:$0xff] }
 0x146   :  { %3518 = vst [vmem:[#allocation50_spill] sm:$0xff] %v2278_v10  ;;  %591 = vmatpush.msrb.mxu0 %v2243_v3  ;;  %v2302_v3 = vld [vmem:[%s3324_s3 + $0x158] sm:$0xff] }
 0x147   :  { %3519 = vst [vmem:[#allocation51_spill] sm:$0xff] %v2283_v63  ;;  %615 = vmatpush.msrb.mxu1 %v2283_v63  ;;  %568 = vmatpush.msra.mxu3 %v2295_v60  ;;  %v2331_v63 = vld [vmem:[%s3324_s3 + $0x1d0] sm:$0xff] }
 0x148   :  { %3521 = vst [vmem:[#allocation53_spill] sm:$0xff] %v2295_v60  ;;  %592 = vmatpush.msrb.mxu0 %v2278_v10  ;;  %v2326_v10 = vld [vmem:[%s3324_s3 + $0x150] sm:$0xff]  ;;  %v2340_v60 = vld [vmem:[%s3324_s3 + $0x58] sm:$0xff] }
 0x149   :  { %3522 = vst [vmem:[#allocation54_spill] sm:$0xff] %v2302_v3  ;;  %616 = vmatpush.msrb.mxu1 %v2307_v18  ;;  %569 = vmatpush.msra.mxu3 %v2319_v15 }
 0x14a   :  { %3523 = vst [vmem:[#allocation55_spill] sm:$0xff] %v2307_v18  ;;  %593 = vmatpush.msrb.mxu0 %v2302_v3  ;;  %v2358_v18 = vld [vmem:[%s3324_s3 + $0x1c8] sm:$0xff]  ;;  %v2366_v3 = vld [vmem:[%s3324_s3 + $0x50] sm:$0xff] }
 0x14b   :  { %3525 = vst [vmem:[#allocation57_spill] sm:$0xff] %v2319_v15  ;;  %617 = vmatpush.msrb.mxu1 %v2331_v63  ;;  %v2371_v15 = vld [vmem:[%s3324_s3 + $0xd0] sm:$0xff] }
 0x14c   :  { %3526 = vst [vmem:[#allocation58_spill] sm:$0xff] %v2326_v10  ;;  %594 = vmatpush.msrb.mxu0 %v2326_v10  ;;  %v2378_v10 = vld [vmem:[%s3324_s3 + $0x140] sm:$0xff] }
 0x14d   :  { %3527 = vst [vmem:[#allocation59_spill] sm:$0xff] %v2331_v63  ;;  %v2383_v63 = vld [vmem:[%s3324_s3 + $0x1c0] sm:$0xff]  ;;  %618 = vmatpush.msrb.mxu1 %v2358_v18 }
 0x14e   :  { %3528 = vst [vmem:[#allocation60_spill] sm:$0xff] %v2340_v60 }
 0x14f   :  { %3531 = vst [vmem:[#allocation63_spill] sm:$0xff] %v2358_v18  ;;  %v2407_v18 = vld [vmem:[%s3324_s3 + $0x1b8] sm:$0xff]  ;;  %619 = vmatpush.msrb.mxu1 %v2383_v63 }
 0x150   :  { %3532 = vst [vmem:[#allocation64_spill] sm:$0xff] %v2366_v3 }
 0x151   :  { %3533 = vst [vmem:[#allocation65_spill] sm:$0xff] %v2371_v15  ;;  %620 = vmatpush.msrb.mxu1 %v2407_v18 }
 0x152   :  { %3534 = vst [vmem:[#allocation66_spill] sm:$0xff] %v2378_v10 }
 0x153   :  { %3535 = vst [vmem:[#allocation67_spill] sm:$0xff] %v2383_v63  ;;  %v2426_v63 = vld [vmem:[%s3324_s3 + $0x130] sm:$0xff] }
 0x154   :  { %3539 = vst [vmem:[#allocation71_spill] sm:$0xff] %v2407_v18  ;;  %v2452_v18 = vld [vmem:[%s3324_s3 + $0x128] sm:$0xff] }
 0x155   :  { %3542 = vst [vmem:[#allocation74_spill] sm:$0xff] %v2426_v63 }
 0x156   :  { %3546 = vst [vmem:[#allocation78_spill] sm:$0xff] %v2452_v18 }
 0x1ad   :  { %v399_v19 = vpop.f32.mrf.mxu1 }
 0x1ae   :  { %v2231_v2 = vmax.f32 %v399_v19, 1e-24  ;;  %v2253_v19 = vld [vmem:[%s3324_s3 + $0x78] sm:$0xff] }
 0x1af   :  { %3514 = vst [vmem:[#allocation46_spill] sm:$0xff] %v2253_v19  ;;  %543 = vmatpush.msra.mxu2 %v2253_v19  ;;  %v2290_v19 = vld [vmem:[%s3324_s3 + $0x68] sm:$0xff] }
 0x1b0   :  { %1466 = vrsqrt.f32 %v2231_v2  ;;  %3520 = vst [vmem:[#allocation52_spill] sm:$0xff] %v2290_v19  ;;  %vm413_vm4 = vweird.f32 %v2231_v2 }
 0x1b1   :  { %544 = vmatpush.msra.mxu2 %v2266_v1  ;;  %v2314_v1 = vld [vmem:[%s3324_s3 + $0x60] sm:$0xff] }
 0x1b2   :  { %3524 = vst [vmem:[#allocation56_spill] sm:$0xff] %v2314_v1 }
 0x1b3   :  { %545 = vmatpush.msra.mxu2 %v2290_v19  ;;  %v2345_v19 = vld [vmem:[%s3324_s3 + $0xd8] sm:$0xff] }
 0x1b4   :  { %3529 = vst [vmem:[#allocation61_spill] sm:$0xff] %v2345_v19  ;;  %570 = vmatpush.msra.mxu3 %v2345_v19  ;;  %v2395_v19 = vld [vmem:[%s3324_s3 + $0xc8] sm:$0xff] }
 0x1b5   :  { %v402_v61 = vpop.f32.mrf.mxu1  ;;  %546 = vmatpush.msra.mxu2 %v2314_v1  ;;  %3537 = vst [vmem:[#allocation69_spill] sm:$0xff] %v2395_v19 }
 0x1b6   :  { %v1467_v62 = vpop.eup %1466  ;;  %v2333_v14 = vmax.f32 %v402_v61, 1e-24  ;;  %v2353_v61 = vld [vmem:[%s3324_s3 + $0x148] sm:$0xff]  ;;  %571 = vmatpush.msra.mxu3 %v2371_v15  ;;  %v2419_v15 = vld [vmem:[%s3324_s3 + $0xc0] sm:$0xff] }
 0x1b7   :  { %v408_v8 = vmul.f32 %v1467_v62, %v2231_v2  ;;  %3530 = vst [vmem:[#allocation62_spill] sm:$0xff] %v2353_v61  ;;  %547 = vmatpush.msra.mxu2 %v2340_v60  ;;  %595 = vmatpush.msrb.mxu0 %v2353_v61  ;;  %v2402_v61 = vld [vmem:[%s3324_s3 + $0x138] sm:$0xff]  ;;  %vm414_vm3 = vweird.f32 %v1467_v62  ;;  %v2470_v2 = vld [vmem:[%s3324_s3 + $0xb0] sm:$0xff] }
 0x1b8   :  { %1468 = vrsqrt.f32 %v2333_v14  ;;  %3538 = vst [vmem:[#allocation70_spill] sm:$0xff] %v2402_v61  ;;  %572 = vmatpush.msra.mxu3 %v2395_v19  ;;  %v2443_v19 = vld [vmem:[%s3324_s3 + $0xb8] sm:$0xff]  ;;  %vm415_vm5 = vmor %vm413_vm4, %vm414_vm3  ;;  %vm423_vm7 = vweird.f32 %v2333_v14 }
 0x1b9   :  { %v409_v1 = vmul.f32 %v1467_v62, %v408_v8  ;;  %v2390_v8 = vld [vmem:[%s3324_s3 + $0x48] sm:$0xff]  ;;  %548 = vmatpush.msra.mxu2 %v2366_v3  ;;  %596 = vmatpush.msrb.mxu0 %v2378_v10  ;;  %3541 = vst [vmem:[#allocation73_spill] sm:$0xff] %v2419_v15  ;;  %v2431_v10 = vld [vmem:[%s3324_s3 + $0x1b0] sm:$0xff] }
 0x1ba   :  { %3536 = vst [vmem:[#allocation68_spill] sm:$0xff] %v2390_v8  ;;  %573 = vmatpush.msra.mxu3 %v2419_v15  ;;  %621 = vmatpush.msrb.mxu1 %v2431_v10 }
 0x1bb   :  { %v410_v60 = vmul.f32 0.5, %v409_v1  ;;  %v2414_v1 = vld [vmem:[%s3324_s3 + $0x40] sm:$0xff]  ;;  %549 = vmatpush.msra.mxu2 %v2390_v8  ;;  %3543 = vst [vmem:[#allocation75_spill] sm:$0xff] %v2431_v10  ;;  %597 = vmatpush.msrb.mxu0 %v2402_v61  ;;  %v2457_v61 = vld [vmem:[%s3324_s3 + $0x1a8] sm:$0xff] }
 0x1bc   :  { %3540 = vst [vmem:[#allocation72_spill] sm:$0xff] %v2414_v1  ;;  %574 = vmatpush.msra.mxu3 %v2443_v19  ;;  %622 = vmatpush.msrb.mxu1 %v2457_v61 }
 0x1bd   :  { %v411_v3 = vsub.f32 1.5, %v410_v60  ;;  %v2438_v60 = vld [vmem:[%s3324_s3 + $0x38] sm:$0xff]  ;;  %3545 = vst [vmem:[#allocation77_spill] sm:$0xff] %v2443_v19  ;;  %550 = vmatpush.msra.mxu2 %v2414_v1  ;;  %598 = vmatpush.msrb.mxu0 %v2426_v63 }
 0x1be   :  { %v1469_v9 = vpop.eup %1468  ;;  %3544 = vst [vmem:[#allocation76_spill] sm:$0xff] %v2438_v60  ;;  %575 = vmatpush.msra.mxu3 %v2470_v2 }
 0x1bf   :  { %v412_v8 = vmul.f32 %v1467_v62, %v411_v3  ;;  %v418_v13 = vmul.f32 %v1469_v9, %v2333_v14  ;;  %3547 = vst [vmem:[#allocation79_spill] sm:$0xff] %v2457_v61  ;;  %v2465_v3 = vld [vmem:[%s3324_s3 + $0x30] sm:$0xff]  ;;  %551 = vmatpush.msra.mxu2 %v2438_v60  ;;  %599 = vmatpush.msrb.mxu0 %v2452_v18  ;;  %vm424_vm6 = vweird.f32 %v1469_v9 }
 0x1c0   :  { %3548 = vst [vmem:[#allocation80_spill] sm:$0xff] %v2465_v3  ;;  %v2526_v61 = vld [vmem:[%s3324_s3 + $0x190] sm:$0xff]  ;;  %vm425_vm8 = vmor %vm423_vm7, %vm424_vm6 }
 0x1c1   :  { %3549 = vst [vmem:[#allocation81_spill] sm:$0xff] %v2470_v2  ;;  %v416_v15 = vsel %vm415_vm5, %v1467_v62, %v412_v8  ;;  %v419_v1 = vmul.f32 %v1469_v9, %v418_v13  ;;  %v2485_v13 = vld [vmem:[%s3324_s3 + $0x1a0] sm:$0xff]  ;;  %552 = vmatpush.msra.mxu2 %v2465_v3  ;;  %v2506_v8 = vld [vmem:[%s3324_s3 + $0x118] sm:$0xff]  ;;  %600 = vmatpush.msrb.mxu0 %v2480_v17  ;;  %v33_v17 = vld [vmem:[%s3319_s0 + $0x8] sm:$0xff] }
 0x1c2   :  { %v427_v63 = vmul.f32 %v416_v15, %v2009_v11  ;;  %3551 = vst [vmem:[#allocation83_spill] sm:$0xff] %v2485_v13  ;;  %v2494_v15 = vld [vmem:[%s3324_s3 + $0x28] sm:$0xff]  ;;  %623 = vmatpush.msrb.mxu1 %v2485_v13  ;;  %v2540_v13 = vld [vmem:[%s3324_s3 + $0x20] sm:$0xff]  ;;  %v2624_v18 = vunpack.c.l.bf16 %v33_v17 }
 0x1c3   :  { %v420_v10 = vmul.f32 0.5, %v419_v1  ;;  %3552 = vst [vmem:[#allocation84_spill] sm:$0xff] %v2494_v15  ;;  %v2499_v11 = vld [vmem:[%s3324_s3 + $0xa8] sm:$0xff]  ;;  %v2511_v1 = vld [vmem:[%s3324_s3 + $0x198] sm:$0xff]  ;;  %553 = vmatpush.msra.mxu2 %v2494_v15  ;;  %601 = vmatpush.msrb.mxu0 %v2506_v8 }
 0x1c4   :  { %1421 = vmatmul.msk.f32.vlgmr.msrb.gmra.mxu2 %vm341_vm1, %v427_v63  ;;  %1423 = vmatmul.msk.f32.vlgmr.msrb.gmra.mxu3 %vm341_vm1, %v427_v63  ;;  %3553 = vst [vmem:[#allocation85_spill] sm:$0xff] %v2499_v11 }
 0x1c5   :  { %v421_v62 = vsub.f32 1.5, %v420_v10  ;;  %1425 = vmatmul.msk.f32.vlgmr.msra.gmra.mxu0 %vm341_vm1, %v427_v63  ;;  %1427 = vmatmul.msk.f32.vlgmr.msra.gmra.mxu1 %vm341_vm1, %v427_v63  ;;  %3554 = vst [vmem:[#allocation86_spill] sm:$0xff] %v2506_v8  ;;  %v2521_v63 = vld [vmem:[%s3324_s3 + $0x110] sm:$0xff]  ;;  %v2617_v8 = vld [vmem:[%s3324_s3 + $0x80] sm:$0xff] }
 0x1c6   :  { %3555 = vst [vmem:[#allocation87_spill] sm:$0xff] %v2511_v1  ;;  %576 = vmatpush.msra.mxu3 %v2499_v11  ;;  %624 = vmatpush.msrb.mxu1 %v2511_v1  ;;  %v2588_v1 = vld [vmem:[%s3324_s3 + $0x10] sm:$0xff] }
 0x1c7   :  { %v422_v10 = vmul.f32 %v1469_v9, %v421_v62  ;;  %3556 = vst [vmem:[#allocation88_spill] sm:$0xff] %v2521_v63  ;;  %602 = vmatpush.msrb.mxu0 %v2521_v63  ;;  %554 = vmatpush.msra.mxu2 %v2540_v13  ;;  %v2612_v63 = vld [vmem:[%s3324_s3] sm:$0xff] }
 0x1c8   :  { %3557 = vst [vmem:[#allocation89_spill] sm:$0xff] %v2526_v61  ;;  %625 = vmatpush.msrb.mxu1 %v2526_v61  ;;  %v2574_v61 = vld [vmem:[%s3324_s3 + $0x100] sm:$0xff] }
 0x1c9   :  { %v426_v14 = vsel %vm425_vm8, %v1469_v9, %v422_v10  ;;  %3558 = vst [vmem:[#allocation90_spill] sm:$0xff] %v2540_v13  ;;  %v2550_v9 = vld [vmem:[%s3324_s3 + $0x108] sm:$0xff] }
 0x1ca   :  { %v428_v62 = vmul.f32 %v426_v14, %v2017_v0  ;;  %v2545_v0 = vld [vmem:[%s3324_s3 + $0xa0] sm:$0xff]  ;;  %3560 = vst [vmem:[#allocation92_spill] sm:$0xff] %v2550_v9  ;;  %v2557_v10 = vld [vmem:[%s3324_s3 + $0x188] sm:$0xff]  ;;  %603 = vmatpush.msrb.mxu0 %v2550_v9  ;;  %v2564_v14 = vld [vmem:[%s3324_s3 + $0x18] sm:$0xff] }
 0x1cb   :  { %3559 = vst [vmem:[#allocation91_spill] sm:$0xff] %v2545_v0  ;;  %577 = vmatpush.msra.mxu3 %v2545_v0  ;;  %626 = vmatpush.msrb.mxu1 %v2557_v10  ;;  %v2593_v9 = vld [vmem:[%s3324_s3 + $0x90] sm:$0xff] }
 0x1cc   :  { %1422 = vmatmul.msk.f32.gmra.mxu2 %vm341_vm1, %v428_v62  ;;  %1424 = vmatmul.msk.f32.gmra.mxu3 %vm341_vm1, %v428_v62  ;;  %3561 = vst [vmem:[#allocation93_spill] sm:$0xff] %v2557_v10  ;;  %v2581_v10 = vld [vmem:[%s3324_s3 + $0x180] sm:$0xff] }
 0x1cd   :  { %1426 = vmatmul.msk.f32.gmra.mxu0 %vm341_vm1, %v428_v62  ;;  %1428 = vmatmul.msk.f32.gmra.mxu1 %vm341_vm1, %v428_v62  ;;  %3562 = vst [vmem:[#allocation94_spill] sm:$0xff] %v2564_v14  ;;  %v2569_v62 = vld [vmem:[%s3324_s3 + $0x98] sm:$0xff] }
 0x1ce   :  { %3563 = vst [vmem:[#allocation95_spill] sm:$0xff] %v2569_v62  ;;  %555 = vmatpush.msra.mxu2 %v2564_v14  ;;  %578 = vmatpush.msra.mxu3 %v2569_v62 }
 0x1cf   :  { %3564 = vst [vmem:[#allocation96_spill] sm:$0xff] %v2574_v61  ;;  %604 = vmatpush.msrb.mxu0 %v2574_v61  ;;  %627 = vmatpush.msrb.mxu1 %v2581_v10  ;;  %v2600_v61 = vld [vmem:[%s3324_s3 + $0x8] sm:$0xff] }
 0x1d0   :  { %3565 = vst [vmem:[#allocation97_spill] sm:$0xff] %v2581_v10  ;;  %556 = vmatpush.msra.mxu2 %v2588_v1  ;;  %579 = vmatpush.msra.mxu3 %v2593_v9  ;;  %v2605_v10 = vld [vmem:[%s3324_s3 + $0x88] sm:$0xff] }
 0x1d1   :  { %3566 = vst [vmem:[#allocation98_spill] sm:$0xff] %v2588_v1  ;;  %v35_v1 = vld [vmem:[%s3319_s0 + $0x18] sm:$0xff] }
 0x1d2   :  { %3567 = vst [vmem:[#allocation99_spill] sm:$0xff] %v2593_v9  ;;  %557 = vmatpush.msra.mxu2 %v2600_v61  ;;  %580 = vmatpush.msra.mxu3 %v2605_v10  ;;  %v32_v9 = vld [vmem:[%s3319_s0] sm:$0xff]  ;;  %v2640_v14 = vunpack.c.l.bf16 %v35_v1  ;;  %v2642_v19 = vunpack.c.h.bf16 %v35_v1 }
 0x1d3   :  { %3568 = vst [vmem:[#allocation100_spill] sm:$0xff] %v2600_v61  ;;  %v2633_v11 = vunpack.c.l.bf16 %v32_v9 }
 0x1d4   :  { %3569 = vst [vmem:[#allocation101_spill] sm:$0xff] %v2605_v10  ;;  %558 = vmatpush.msra.mxu2 %v2612_v63  ;;  %581 = vmatpush.msra.mxu3 %v2617_v8  ;;  %v2626_v10 = vunpack.c.h.bf16 %v33_v17 }
 0x1d5   :  { %3570 = vst [vmem:[#allocation102_spill] sm:$0xff] %v2612_v63 }
 0x1d6   :  { %3571 = vst [vmem:[#allocation103_spill] sm:$0xff] %v2617_v8  ;;  %v2635_v8 = vunpack.c.h.bf16 %v32_v9  ;;  %v34_v9 = vld [vmem:[%s3319_s0 + $0x10] sm:$0xff] }
 0x1d7   :  { %3572 = vst [vmem:[#allocation104_spill] sm:$0xff] %v2624_v18  ;;  %v2651_v3 = vunpack.c.l.bf16 %v34_v9  ;;  %v2653_v1 = vunpack.c.h.bf16 %v34_v9  ;;  %v2694_v9 = vld [vmem:[%s3326_s5 + $0x78] sm:$0xff] }
 0x1d8   :  { %3573 = vst [vmem:[#allocation105_spill] sm:$0xff] %v2626_v10 }
 0x1d9   :  { %3574 = vst [vmem:[#allocation106_spill] sm:$0xff] %v2633_v11 }
 0x1da   :  { %3575 = vst [vmem:[#allocation107_spill] sm:$0xff] %v2640_v14 }
 0x1db   :  { %3576 = vst [vmem:[#allocation108_spill] sm:$0xff] %v2642_v19 }
 0x1dc   :  { %3577 = vst [vmem:[#allocation109_spill] sm:$0xff] %v2651_v3 }
 0x1dd   :  { %3578 = vst [vmem:[#allocation110_spill] sm:$0xff] %v2653_v1 }
 0x1de   :  { %3585 = vst [vmem:[#allocation117_spill] sm:$0xff] %v2694_v9 }
 0x242   :  { %v498_v62 = vpop.f32.mrf.mxu0  ;;  %v521_v0 = vpop.f32.mrf.mxu1 }
 0x243   :  { %v537_v61 = vmul.f32 %v2624_v18, %v498_v62  ;;  %v538_v63 = vmul.f32 %v2626_v10, %v521_v0 }
 0x245   :  { %605 = vmatmul.f32.vlgmr.msrb.gmra.mxu0 %v537_v61  ;;  %628 = vmatmul.f32.vlgmr.msrb.gmra.mxu1 %v538_v63 }
 0x247   :  { %v452_v17 = vpop.f32.mrf.mxu2  ;;  %v475_v2 = vpop.f32.mrf.mxu3 }
 0x248   :  { %v535_v62 = vmul.f32 %v2633_v11, %v452_v17  ;;  %v536_v0 = vmul.f32 %v2635_v8, %v475_v2 }
 0x24a   :  { %v501_v13 = vpop.f32.mrf.mxu0  ;;  %v524_v15 = vpop.f32.mrf.mxu1  ;;  %559 = vmatmul.f32.vlgmr.msra.gmra.mxu2 %v535_v62  ;;  %582 = vmatmul.f32.vlgmr.msra.gmra.mxu3 %v536_v0  ;;  %v2672_v62 = vld [vmem:[%s3325_s4 + $0x8] sm:$0xff]  ;;  %v2689_v0 = vld [vmem:[%s3326_s5 + $0x40] sm:$0xff] }
 0x24b   :  { %v541_v61 = vmul.f32 %v2640_v14, %v501_v13  ;;  %v542_v63 = vmul.f32 %v2642_v19, %v524_v15  ;;  %v2660_v13 = vld [vmem:[%s3325_s4 + $0x18] sm:$0xff]  ;;  %v2665_v15 = vld [vmem:[%s3325_s4 + $0x10] sm:$0xff]  ;;  %3581 = vst [vmem:[#allocation113_spill] sm:$0xff] %v2672_v62 }
 0x24c   :  { %3579 = vst [vmem:[#allocation111_spill] sm:$0xff] %v2660_v13  ;;  %658 = vmatpush.msrb.mxu2 %v2660_v13 }
 0x24d   :  { %608 = vmatmul.f32.gmra.mxu0 %v541_v61  ;;  %631 = vmatmul.f32.gmra.mxu1 %v542_v63  ;;  %3580 = vst [vmem:[#allocation112_spill] sm:$0xff] %v2665_v15 }
 0x24e   :  { %659 = vmatpush.msrb.mxu2 %v2665_v15  ;;  %3584 = vst [vmem:[#allocation116_spill] sm:$0xff] %v2689_v0 }
 0x24f   :  { %v455_v17 = vpop.f32.mrf.mxu2  ;;  %v478_v2 = vpop.f32.mrf.mxu3 }
 0x250   :  { %v539_v60 = vmul.f32 %v2651_v3, %v455_v17  ;;  %v540_v10 = vmul.f32 %v2653_v1, %v478_v2  ;;  %660 = vmatpush.msrb.mxu2 %v2672_v62 }
 0x252   :  { %562 = vmatmul.f32.gmra.mxu2 %v539_v60  ;;  %585 = vmatmul.f32.gmra.mxu3 %v540_v10  ;;  %v2678_v60 = vld [vmem:[%s3325_s4] sm:$0xff] }
 0x253   :  { %3582 = vst [vmem:[#allocation114_spill] sm:$0xff] %v2678_v60  ;;  %661 = vmatpush.msrb.mxu2 %v2678_v60  ;;  %v2684_v10 = vld [vmem:[%s3326_s5 + $0x60] sm:$0xff] }
 0x254   :  { %3583 = vst [vmem:[#allocation115_spill] sm:$0xff] %v2684_v10  ;;  %691 = vmatpush.msrb.mxu3 %v2684_v10 }
 0x255   :  { %760 = vmatpush.msra.mxu2 %v2694_v9 }
 0x256   :  { %692 = vmatpush.msrb.mxu3 %v2689_v0 }
 0x2c2   :  { %v606_v61 = vpop.f32.mrf.mxu0  ;;  %v629_v60 = vpop.f32.mrf.mxu1 }
 0x2ca   :  { %v609_v1 = vpop.f32.mrf.mxu0  ;;  %v632_v18 = vpop.f32.mrf.mxu1 }
 0x2cd   :  { %v560_v63 = vpop.f32.mrf.mxu2  ;;  %v583_v17 = vpop.f32.mrf.mxu3 }
 0x2ce   :  { %v584_v2 = vadd.f32 %v583_v17, %v560_v63  ;;  %v2788_v17 = vld [vmem:[%s3318_s6 + $0xf8] sm:$0xff] }
 0x2cf   :  { %3589 = vst [vmem:[#allocation121_spill] sm:$0xff] %v2788_v17 }
 0x2d0   :  { %v607_v62 = vadd.f32 %v606_v61, %v584_v2  ;;  %v2779_v61 = vld [vmem:[%s3326_s5 + $0x18] sm:$0xff] }
 0x2d1   :  { %3588 = vst [vmem:[#allocation120_spill] sm:$0xff] %v2779_v61  ;;  %v2794_v2 = vld [vmem:[%s3318_s6 + $0x178] sm:$0xff] }
 0x2d2   :  { %v630_v15 = vadd.f32 %v629_v60, %v607_v62  ;;  %v2756_v62 = vld [vmem:[%s3326_s5] sm:$0xff]  ;;  %v2762_v60 = vld [vmem:[%s3326_s5 + $0x30] sm:$0xff] }
 0x2d4   :  { %v635_v13 = vmul.f32 1.442695, %v630_v15  ;;  %v2750_v15 = vld [vmem:[%s3326_s5 + $0x28] sm:$0xff] }
 0x2d5   :  { %v563_v19 = vpop.f32.mrf.mxu2  ;;  %v586_v3 = vpop.f32.mrf.mxu3 }
 0x2d6   :  { %1470 = vpow2.f32 %v635_v13  ;;  %v587_v14 = vadd.f32 %v586_v3, %v563_v19  ;;  %v2710_v19 = vld [vmem:[%s3326_s5 + $0x68] sm:$0xff]  ;;  %v2722_v3 = vld [vmem:[%s3326_s5 + $0x58] sm:$0xff] }
 0x2d7   :  { %714 = vmatpush.msra.mxu0 %v2710_v19  ;;  %3586 = vst [vmem:[#allocation118_spill] sm:$0xff] %v2722_v3  ;;  %761 = vmatpush.msra.mxu2 %v2722_v3  ;;  %v2745_v13 = vld [vmem:[%s3326_s5 + $0x38] sm:$0xff]  ;;  %v2818_v3 = vld [vmem:[%s3318_s6 + $0x170] sm:$0xff] }
 0x2d8   :  { %v610_v11 = vadd.f32 %v609_v1, %v587_v14  ;;  %v2732_v14 = vld [vmem:[%s3326_s5 + $0x50] sm:$0xff]  ;;  %v2739_v1 = vld [vmem:[%s3326_s5 + $0x20] sm:$0xff]  ;;  %3587 = vst [vmem:[#allocation119_spill] sm:$0xff] %v2745_v13 }
 0x2d9   :  { %693 = vmatpush.msrb.mxu3 %v2739_v1  ;;  %762 = vmatpush.msra.mxu2 %v2745_v13  ;;  %v2806_v13 = vld [vmem:[%s3318_s6 + $0x1f8] sm:$0xff]  ;;  %3593 = vst [vmem:[#allocation125_spill] sm:$0xff] %v2818_v3 }
 0x2da   :  { %v633_v10 = vadd.f32 %v632_v18, %v610_v11  ;;  %v2715_v18 = vld [vmem:[%s3326_s5 + $0x70] sm:$0xff]  ;;  %v2727_v11 = vld [vmem:[%s3326_s5 + $0x48] sm:$0xff]  ;;  %3591 = vst [vmem:[#allocation123_spill] sm:$0xff] %v2806_v13 }
 0x2db   :  { %737 = vmatpush.msra.mxu1 %v2715_v18  ;;  %715 = vmatpush.msra.mxu0 %v2727_v11 }
 0x2dc   :  { %v2699_v9 = vpop.eup %1470  ;;  %v637_v0 = vmul.f32 1.442695, %v633_v10  ;;  %v2769_v10 = vld [vmem:[%s3326_s5 + $0x8] sm:$0xff]  ;;  %694 = vmatpush.msrb.mxu3 %v2756_v62  ;;  %763 = vmatpush.msra.mxu2 %v2779_v61  ;;  %v2800_v61 = vld [vmem:[%s3318_s6 + $0x78] sm:$0xff] }
 0x2dd   :  { %1429 = vmatmul.msk.f32.vlgmr.msrb.gmra.mxu2 %vm639_vm9, %v2699_v9  ;;  %738 = vmatpush.msra.mxu1 %v2732_v14  ;;  %3590 = vst [vmem:[#allocation122_spill] sm:$0xff] %v2800_v61 }
 0x2de   :  { %1472 = vpow2.f32 %v637_v0  ;;  %716 = vmatpush.msra.mxu0 %v2750_v15  ;;  %v2774_v0 = vld [vmem:[%s3326_s5 + $0x10] sm:$0xff]  ;;  %779 = vmatpush.msra.mxu3 %v2800_v61 }
 0x2df   :  { %739 = vmatpush.msra.mxu1 %v2762_v60  ;;  %848 = vmatpush.msrb.mxu2 %v2806_v13  ;;  %v2824_v61 = vld [vmem:[%s3318_s6 + $0x70] sm:$0xff] }
 0x2e0   :  { %717 = vmatpush.msra.mxu0 %v2769_v10  ;;  %3594 = vst [vmem:[#allocation126_spill] sm:$0xff] %v2824_v61  ;;  %780 = vmatpush.msra.mxu3 %v2824_v61  ;;  %v2830_v13 = vld [vmem:[%s3318_s6 + $0x1f0] sm:$0xff]  ;;  %v2848_v61 = vld [vmem:[%s3318_s6 + $0x68] sm:$0xff] }
 0x2e1   :  { %740 = vmatpush.msra.mxu1 %v2774_v0  ;;  %3595 = vst [vmem:[#allocation127_spill] sm:$0xff] %v2830_v13  ;;  %849 = vmatpush.msrb.mxu2 %v2830_v13  ;;  %v2854_v13 = vld [vmem:[%s3318_s6 + $0x1e8] sm:$0xff] }
 0x2e2   :  { %802 = vmatpush.msrb.mxu0 %v2788_v17  ;;  %v2812_v17 = vld [vmem:[%s3318_s6 + $0xf0] sm:$0xff]  ;;  %3598 = vst [vmem:[#allocation130_spill] sm:$0xff] %v2848_v61  ;;  %781 = vmatpush.msra.mxu3 %v2848_v61  ;;  %v2872_v61 = vld [vmem:[%s3318_s6 + $0x60] sm:$0xff] }
 0x2e3   :  { %825 = vmatpush.msrb.mxu1 %v2794_v2  ;;  %3592 = vst [vmem:[#allocation124_spill] sm:$0xff] %v2812_v17  ;;  %850 = vmatpush.msrb.mxu2 %v2854_v13 }
 0x2e4   :  { %v2703_v63 = vpop.eup %1472  ;;  %803 = vmatpush.msrb.mxu0 %v2812_v17  ;;  %v2836_v17 = vld [vmem:[%s3318_s6 + $0xe8] sm:$0xff]  ;;  %3599 = vst [vmem:[#allocation131_spill] sm:$0xff] %v2854_v13  ;;  %782 = vmatpush.msra.mxu3 %v2872_v61  ;;  %v2878_v13 = vld [vmem:[%s3318_s6 + $0x1e0] sm:$0xff] }
 0x2e5   :  { %1430 = vmatmul.msk.f32.gmra.mxu2 %vm639_vm9, %v2703_v63  ;;  %826 = vmatpush.msrb.mxu1 %v2818_v3  ;;  %3596 = vst [vmem:[#allocation128_spill] sm:$0xff] %v2836_v17  ;;  %v2842_v3 = vld [vmem:[%s3318_s6 + $0x168] sm:$0xff] }
 0x2e6   :  { %804 = vmatpush.msrb.mxu0 %v2836_v17  ;;  %3597 = vst [vmem:[#allocation129_spill] sm:$0xff] %v2842_v3  ;;  %v2860_v17 = vld [vmem:[%s3318_s6 + $0xe0] sm:$0xff]  ;;  %851 = vmatpush.msrb.mxu2 %v2878_v13 }
 0x2e7   :  { %827 = vmatpush.msrb.mxu1 %v2842_v3  ;;  %3600 = vst [vmem:[#allocation132_spill] sm:$0xff] %v2860_v17  ;;  %v2866_v3 = vld [vmem:[%s3318_s6 + $0x160] sm:$0xff] }
 0x2e8   :  { %805 = vmatpush.msrb.mxu0 %v2860_v17  ;;  %3601 = vst [vmem:[#allocation133_spill] sm:$0xff] %v2866_v3  ;;  %v2884_v17 = vld [vmem:[%s3318_s6 + $0xd8] sm:$0xff] }
 0x2e9   :  { %828 = vmatpush.msrb.mxu1 %v2866_v3  ;;  %3602 = vst [vmem:[#allocation134_spill] sm:$0xff] %v2872_v61  ;;  %v2890_v3 = vld [vmem:[%s3318_s6 + $0x158] sm:$0xff] }
 0x2ea   :  { %3603 = vst [vmem:[#allocation135_spill] sm:$0xff] %v2878_v13  ;;  %806 = vmatpush.msrb.mxu0 %v2884_v17  ;;  %v2896_v61 = vld [vmem:[%s3318_s6 + $0x58] sm:$0xff] }
 0x2eb   :  { %3604 = vst [vmem:[#allocation136_spill] sm:$0xff] %v2884_v17  ;;  %829 = vmatpush.msrb.mxu1 %v2890_v3  ;;  %783 = vmatpush.msra.mxu3 %v2896_v61  ;;  %v2902_v13 = vld [vmem:[%s3318_s6 + $0x1d8] sm:$0xff]  ;;  %v2910_v17 = vld [vmem:[%s3318_s6 + $0x50] sm:$0xff] }
 0x2ec   :  { %852 = vmatpush.msrb.mxu2 %v2902_v13  ;;  %807 = vmatpush.msrb.mxu0 %v1672_v21 }
 0x2ed   :  { %830 = vmatpush.msrb.mxu1 %v1677_v22  ;;  %784 = vmatpush.msra.mxu3 %v2910_v17 }
 0x2ee   :  { %853 = vmatpush.msrb.mxu2 %v1682_v23  ;;  %808 = vmatpush.msrb.mxu0 %v1692_v25 }
 0x2ef   :  { %831 = vmatpush.msrb.mxu1 %v1698_v26  ;;  %785 = vmatpush.msra.mxu3 %v1687_v24  ;;  %v3605_v26 = vld [vmem:[#allocation9_spill] sm:$0xff] }
 0x2f0   :  { %854 = vmatpush.msrb.mxu2 %v1703_v27  ;;  %809 = vmatpush.msrb.mxu0 %v1715_v29  ;;  %v3607_v29 = vld [vmem:[#allocation13_spill] sm:$0xff] }
 0x2f1   :  { %832 = vmatpush.msrb.mxu1 %v1722_v30  ;;  %786 = vmatpush.msra.mxu3 %v1710_v28  ;;  %v3606_v28 = vld [vmem:[#allocation2_spill] sm:$0xff]  ;;  %v3608_v30 = vld [vmem:[#allocation12_spill] sm:$0xff] }
 0x2f2   :  { %855 = vmatpush.msrb.mxu2 %v1727_v31  ;;  %810 = vmatpush.msrb.mxu0 %v1739_v33  ;;  %v3609_v31 = vld [vmem:[#allocation3_spill] sm:$0xff]  ;;  %v3611_v33 = vld [vmem:[#allocation16_spill] sm:$0xff] }
 0x2f3   :  { %833 = vmatpush.msrb.mxu1 %v1746_v34  ;;  %787 = vmatpush.msra.mxu3 %v1734_v32  ;;  %v3610_v32 = vld [vmem:[#allocation17_spill] sm:$0xff]  ;;  %v3612_v34 = vld [vmem:[#allocation4_spill] sm:$0xff] }
 0x2f4   :  { %856 = vmatpush.msrb.mxu2 %v1751_v35  ;;  %811 = vmatpush.msrb.mxu0 %v1763_v37  ;;  %v3613_v35 = vld [vmem:[#allocation21_spill] sm:$0xff] }
 0x2f5   :  { %834 = vmatpush.msrb.mxu1 %v1770_v38  ;;  %788 = vmatpush.msra.mxu3 %v1758_v36  ;;  %v3614_v36 = vld [vmem:[#allocation20_spill] sm:$0xff]  ;;  %v3615_v37 = vld [vmem:[#allocation5_spill] sm:$0xff] }
 0x2f6   :  { %857 = vmatpush.msrb.mxu2 %v1775_v39  ;;  %812 = vmatpush.msrb.mxu0 %v1787_v41  ;;  %v3616_v38 = vld [vmem:[#allocation25_spill] sm:$0xff]  ;;  %v3617_v39 = vld [vmem:[#allocation24_spill] sm:$0xff] }
 0x2f7   :  { %835 = vmatpush.msrb.mxu1 %v1794_v42  ;;  %789 = vmatpush.msra.mxu3 %v1782_v40  ;;  %v3618_v40 = vld [vmem:[#allocation6_spill] sm:$0xff]  ;;  %v3619_v41 = vld [vmem:[#allocation29_spill] sm:$0xff]  ;;  %v3620_v42 = vld [vmem:[#allocation28_spill] sm:$0xff] }
 0x2f8   :  { %858 = vmatpush.msrb.mxu2 %v1799_v43  ;;  %813 = vmatpush.msrb.mxu0 %v1811_v45  ;;  %v3621_v43 = vld [vmem:[#allocation7_spill] sm:$0xff]  ;;  %v3623_v45 = vld [vmem:[#allocation32_spill] sm:$0xff] }
 0x2f9   :  { %836 = vmatpush.msrb.mxu1 %v1818_v46  ;;  %790 = vmatpush.msra.mxu3 %v1806_v44  ;;  %v3622_v44 = vld [vmem:[#allocation33_spill] sm:$0xff]  ;;  %v3624_v46 = vld [vmem:[#allocation8_spill] sm:$0xff] }
 0x2fa   :  { %859 = vmatpush.msrb.mxu2 %v1823_v47  ;;  %814 = vmatpush.msrb.mxu0 %v1835_v49  ;;  %v3625_v47 = vld [vmem:[#allocation37_spill] sm:$0xff] }
 0x2fb   :  { %837 = vmatpush.msrb.mxu1 %v1840_v50  ;;  %791 = vmatpush.msra.mxu3 %v1828_v48  ;;  %v3626_v48 = vld [vmem:[#allocation36_spill] sm:$0xff] }
 0x2fc   :  { %860 = vmatpush.msrb.mxu2 %v1845_v51  ;;  %815 = vmatpush.msrb.mxu0 %v1857_v53 }
 0x2fd   :  { %838 = vmatpush.msrb.mxu1 %v1862_v54  ;;  %792 = vmatpush.msra.mxu3 %v1852_v52  ;;  %v3627_v52 = vld [vmem:[#allocation104_spill] sm:$0xff]  ;;  %v3628_v54 = vld [vmem:[#allocation11_spill] sm:$0xff] }
 0x2fe   :  { %861 = vmatpush.msrb.mxu2 %v1869_v55  ;;  %816 = vmatpush.msrb.mxu0 %v1879_v57  ;;  %v3629_v55 = vld [vmem:[#allocation46_spill] sm:$0xff]  ;;  %v3630_v57 = vld [vmem:[#allocation15_spill] sm:$0xff] }
 0x2ff   :  { %839 = vmatpush.msrb.mxu1 %v1886_v58  ;;  %793 = vmatpush.msra.mxu3 %v1874_v56  ;;  %v3631_v58 = vld [vmem:[#allocation106_spill] sm:$0xff] }
 0x300   :  { %862 = vmatpush.msrb.mxu2 %v1891_v59  ;;  %817 = vmatpush.msrb.mxu0 %v1931_v5  ;;  %v3632_v5 = vld [vmem:[#allocation48_spill] sm:$0xff] }
 0x301   :  { %840 = vmatpush.msrb.mxu1 %v1938_v6  ;;  %794 = vmatpush.msra.mxu3 %v1926_v4  ;;  %v3633_v6 = vld [vmem:[#allocation105_spill] sm:$0xff] }
 0x302   :  { %863 = vmatpush.msrb.mxu2 %v1943_v7 }
 0x360   :  { %v663_v21 = vpop.f32.mrf.mxu2 }
 0x361   :  { %1474 = vrcp.f32 %v663_v21  ;;  %v3636_v21 = vld [vmem:[#allocation52_spill] sm:$0xff] }
 0x367   :  { %v1475_v22 = vpop.eup %1474 }
 0x368   :  { %v671_v23 = vmul.f32 %v1475_v22, %v2699_v9  ;;  %v666_v24 = vpop.f32.mrf.mxu2  ;;  %v3637_v22 = vld [vmem:[#allocation107_spill] sm:$0xff] }
 0x369   :  { %1476 = vrcp.f32 %v666_v24  ;;  %v3638_v24 = vld [vmem:[#allocation10_spill] sm:$0xff] }
 0x36a   :  { %1431 = vmatmul.msk.f32.vlgmr.msrb.gmra.mxu3 %vm639_vm9, %v671_v23  ;;  %1433 = vmatmul.msk.f32.vlgmr.msra.gmra.mxu0 %vm639_vm9, %v671_v23 }
 0x36b   :  { %1435 = vmatmul.msk.f32.vlgmr.msra.gmra.mxu1 %vm639_vm9, %v671_v23  ;;  %1437 = vmatmul.msk.f32.vlgmr.msra.gmra.mxu2 %vm639_vm9, %v671_v23 }
 0x36c   :  { %889 = vmatpush.msrb.mxu3 %v1954_v12  ;;  %1441 = vmatpush.msk.msra.mxu0 %vm378_vm0, %v2002_v20  ;;  %v3634_v20 = vld [vmem:[#allocation19_spill] sm:$0xff] }
 0x36d   :  { %994 = vmatpush.msra.mxu2 %v2032_v16  ;;  %971 = vmatpush.msra.mxu1 %v3605_v26  ;;  %v3635_v16 = vld [vmem:[#allocation110_spill] sm:$0xff] }
 0x36e   :  { %890 = vmatpush.msrb.mxu3 %v3606_v28  ;;  %v3640_v26 = vld [vmem:[#allocation14_spill] sm:$0xff]  ;;  %v3642_v28 = vld [vmem:[#allocation47_spill] sm:$0xff] }
 0x36f   :  { %v1477_v25 = vpop.eup %1476  ;;  %995 = vmatpush.msra.mxu2 %v3607_v29  ;;  %972 = vmatpush.msra.mxu1 %v3608_v30  ;;  %v3643_v30 = vld [vmem:[#allocation18_spill] sm:$0xff] }
 0x370   :  { %v672_v27 = vmul.f32 %v1477_v25, %v2703_v63  ;;  %891 = vmatpush.msrb.mxu3 %v3609_v31  ;;  %v3639_v25 = vld [vmem:[#allocation56_spill] sm:$0xff] }
 0x371   :  { %996 = vmatpush.msra.mxu2 %v3610_v32  ;;  %973 = vmatpush.msra.mxu1 %v3611_v33  ;;  %v3644_v31 = vld [vmem:[#allocation60_spill] sm:$0xff]  ;;  %v3645_v32 = vld [vmem:[#allocation109_spill] sm:$0xff] }
 0x372   :  { %1432 = vmatmul.msk.f32.gmra.mxu3 %vm639_vm9, %v672_v27  ;;  %1434 = vmatmul.msk.f32.gmra.mxu0 %vm639_vm9, %v672_v27 }
 0x373   :  { %1436 = vmatmul.msk.f32.gmra.mxu1 %vm639_vm9, %v672_v27  ;;  %1438 = vmatmul.msk.f32.gmra.mxu2 %vm639_vm9, %v672_v27  ;;  %v3641_v27 = vld [vmem:[#allocation23_spill] sm:$0xff] }
 0x374   :  { %892 = vmatpush.msrb.mxu3 %v3612_v34  ;;  %997 = vmatpush.msra.mxu2 %v3613_v35  ;;  %v3646_v35 = vld [vmem:[#allocation27_spill] sm:$0xff] }
 0x375   :  { %974 = vmatpush.msra.mxu1 %v3614_v36  ;;  %v3647_v36 = vld [vmem:[#allocation49_spill] sm:$0xff] }
 0x376   :  { %893 = vmatpush.msrb.mxu3 %v3615_v37  ;;  %998 = vmatpush.msra.mxu2 %v3616_v38  ;;  %v3648_v37 = vld [vmem:[#allocation108_spill] sm:$0xff] }
 0x377   :  { %975 = vmatpush.msra.mxu1 %v3617_v39  ;;  %v3649_v39 = vld [vmem:[#allocation22_spill] sm:$0xff] }
 0x378   :  { %894 = vmatpush.msrb.mxu3 %v3618_v40  ;;  %999 = vmatpush.msra.mxu2 %v3619_v41  ;;  %v3650_v40 = vld [vmem:[#allocation64_spill] sm:$0xff]  ;;  %v3651_v41 = vld [vmem:[#allocation31_spill] sm:$0xff] }
 0x379   :  { %976 = vmatpush.msra.mxu1 %v3620_v42  ;;  %v3652_v42 = vld [vmem:[#allocation26_spill] sm:$0xff] }
 0x37a   :  { %895 = vmatpush.msrb.mxu3 %v3621_v43  ;;  %1000 = vmatpush.msra.mxu2 %v3622_v44  ;;  %v3653_v43 = vld [vmem:[#allocation35_spill] sm:$0xff]  ;;  %v3654_v44 = vld [vmem:[#allocation53_spill] sm:$0xff] }
 0x37b   :  { %977 = vmatpush.msra.mxu1 %v3623_v45  ;;  %v3655_v45 = vld [vmem:[#allocation30_spill] sm:$0xff] }
 0x37c   :  { %896 = vmatpush.msrb.mxu3 %v3624_v46  ;;  %1001 = vmatpush.msra.mxu2 %v3625_v47  ;;  %v3656_v46 = vld [vmem:[#allocation68_spill] sm:$0xff]  ;;  %v3657_v47 = vld [vmem:[#allocation39_spill] sm:$0xff] }
 0x37d   :  { %978 = vmatpush.msra.mxu1 %v3626_v48  ;;  %v3658_v48 = vld [vmem:[#allocation57_spill] sm:$0xff] }
 0x3e7   :  { %v719_v49 = vpop.f32.mrf.mxu0 }
 0x3e8   :  { %v772_v50 = vmul.f32 %v719_v49, %v2635_v8  ;;  %v742_v51 = vpop.f32.mrf.mxu1  ;;  %v3659_v49 = vld [vmem:[#allocation34_spill] sm:$0xff] }
 0x3e9   :  { %v773_v53 = vmul.f32 %v742_v51, %v3627_v52  ;;  %v3661_v51 = vld [vmem:[#allocation61_spill] sm:$0xff] }
 0x3ea   :  { %818 = vmatmul.f32.vlgmr.msrb.gmra.mxu0 %v772_v50  ;;  %v3660_v50 = vld [vmem:[#allocation72_spill] sm:$0xff] }
 0x3eb   :  { %841 = vmatmul.f32.vlgmr.msrb.gmra.mxu1 %v773_v53  ;;  %1040 = vmatpush.msrb.mxu0 %v3628_v54  ;;  %v3662_v53 = vld [vmem:[#allocation38_spill] sm:$0xff]  ;;  %v3663_v54 = vld [vmem:[#allocation76_spill] sm:$0xff] }
 0x3ec   :  { %1063 = vmatpush.msrb.mxu1 %v3629_v55  ;;  %v3664_v55 = vld [vmem:[#allocation65_spill] sm:$0xff] }
 0x3ed   :  { %v696_v56 = vpop.f32.mrf.mxu3  ;;  %1041 = vmatpush.msrb.mxu0 %v3630_v57  ;;  %v3666_v57 = vld [vmem:[#allocation69_spill] sm:$0xff] }
 0x3ee   :  { %v771_v59 = vmul.f32 %v696_v56, %v3631_v58  ;;  %v765_v4 = vpop.f32.mrf.mxu2  ;;  %1064 = vmatpush.msrb.mxu1 %v3632_v5  ;;  %v3665_v56 = vld [vmem:[#allocation80_spill] sm:$0xff]  ;;  %v3669_v5 = vld [vmem:[#allocation90_spill] sm:$0xff] }
 0x3ef   :  { %v774_v7 = vmul.f32 %v765_v4, %v3633_v6  ;;  %v722_v12 = vpop.f32.mrf.mxu0  ;;  %1042 = vmatpush.msrb.mxu0 %v3634_v20  ;;  %v3668_v4 = vld [vmem:[#allocation73_spill] sm:$0xff] }
 0x3f0   :  { %v776_v9 = vmul.f32 %v722_v12, %v3635_v16  ;;  %v745_v63 = vpop.f32.mrf.mxu1  ;;  %795 = vmatmul.f32.vlgmr.msra.gmra.mxu3 %v771_v59  ;;  %1065 = vmatpush.msrb.mxu1 %v3636_v21  ;;  %v3667_v59 = vld [vmem:[#allocation84_spill] sm:$0xff]  ;;  %v3671_v12 = vld [vmem:[#allocation94_spill] sm:$0xff]  ;;  %v3672_v20 = vld [vmem:[#allocation81_spill] sm:$0xff] }
 0x3f1   :  { %v777_v23 = vmul.f32 %v745_v63, %v3637_v22  ;;  %864 = vmatmul.f32.vlgmr.msrb.gmra.mxu2 %v774_v7  ;;  %1017 = vmatpush.msra.mxu3 %v3638_v24  ;;  %v3670_v7 = vld [vmem:[#allocation77_spill] sm:$0xff]  ;;  %v3675_v21 = vld [vmem:[#allocation100_spill] sm:$0xff]  ;;  %v3677_v24 = vld [vmem:[#allocation102_spill] sm:$0xff] }
 0x3f2   :  { %821 = vmatmul.f32.gmra.mxu0 %v776_v9  ;;  %1066 = vmatpush.msrb.mxu1 %v3639_v25  ;;  %v3673_v9 = vld [vmem:[#allocation98_spill] sm:$0xff]  ;;  %v3674_v63 = vld [vmem:[#allocation85_spill] sm:$0xff]  ;;  %v3678_v25 = vld [vmem:[#allocation95_spill] sm:$0xff] }
 0x3f3   :  { %844 = vmatmul.f32.gmra.mxu1 %v777_v23  ;;  %1018 = vmatpush.msra.mxu3 %v3640_v26  ;;  %v3676_v23 = vld [vmem:[#allocation91_spill] sm:$0xff] }
 0x3f4   :  { %1043 = vmatpush.msrb.mxu0 %v3641_v27  ;;  %1086 = vmatpush.msrb.mxu2 %v3642_v28  ;;  %v3679_v26 = vld [vmem:[#allocation99_spill] sm:$0xff]  ;;  %v3680_v27 = vld [vmem:[#allocation101_spill] sm:$0xff] }
 0x3f5   :  { %v699_v29 = vpop.f32.mrf.mxu3  ;;  %1019 = vmatpush.msra.mxu3 %v3643_v30  ;;  %1067 = vmatpush.msrb.mxu1 %v3644_v31  ;;  %v3681_v28 = vld [vmem:[#allocation103_spill] sm:$0xff] }
 0x3f6   :  { %v775_v33 = vmul.f32 %v699_v29, %v3645_v32  ;;  %v768_v34 = vpop.f32.mrf.mxu2  ;;  %1044 = vmatpush.msrb.mxu0 %v3646_v35  ;;  %1087 = vmatpush.msrb.mxu2 %v3647_v36 }
 0x3f7   :  { %v778_v38 = vmul.f32 %v768_v34, %v3648_v37  ;;  %1020 = vmatpush.msra.mxu3 %v3649_v39  ;;  %1068 = vmatpush.msrb.mxu1 %v3650_v40 }
 0x3f8   :  { %798 = vmatmul.f32.gmra.mxu3 %v775_v33  ;;  %1045 = vmatpush.msrb.mxu0 %v3651_v41 }
 0x3f9   :  { %867 = vmatmul.f32.gmra.mxu2 %v778_v38  ;;  %1021 = vmatpush.msra.mxu3 %v3652_v42  ;;  %v3049_v38 = vld [vmem:[%s3322_s1] sm:$0xff] }
 0x3fa   :  { %1046 = vmatpush.msrb.mxu0 %v3653_v43  ;;  %1088 = vmatpush.msrb.mxu2 %v3654_v44 }
 0x3fb   :  { %1022 = vmatpush.msra.mxu3 %v3655_v45  ;;  %1069 = vmatpush.msrb.mxu1 %v3656_v46 }
 0x3fc   :  { %1047 = vmatpush.msrb.mxu0 %v3657_v47  ;;  %1089 = vmatpush.msrb.mxu2 %v3658_v48  ;;  %v3682_v47 = vld [vmem:[#allocation40_spill] sm:$0xff] }
 0x3fd   :  { %1023 = vmatpush.msra.mxu3 %v3659_v49  ;;  %1070 = vmatpush.msrb.mxu1 %v3660_v50  ;;  %v3683_v49 = vld [vmem:[#allocation42_spill] sm:$0xff]  ;;  %v3062_v50 = vld [vmem:[%s3322_s1 + $0x8] sm:$0xff] }
 0x3fe   :  { %1090 = vmatpush.msrb.mxu2 %v3661_v51 }
 0x3ff   :  { %1024 = vmatpush.msra.mxu3 %v3662_v53  ;;  %1071 = vmatpush.msrb.mxu1 %v3663_v54  ;;  %v3684_v53 = vld [vmem:[#allocation44_spill] sm:$0xff] }
 0x400   :  { %1091 = vmatpush.msrb.mxu2 %v3664_v55  ;;  %v3685_v55 = vld [vmem:[#allocation50_spill] sm:$0xff] }
 0x401   :  { %1072 = vmatpush.msrb.mxu1 %v3665_v56  ;;  %v3686_v56 = vld [vmem:[#allocation54_spill] sm:$0xff] }
 0x402   :  { %1092 = vmatpush.msrb.mxu2 %v3666_v57  ;;  %v3687_v57 = vld [vmem:[#allocation58_spill] sm:$0xff] }
 0x403   :  { %1073 = vmatpush.msrb.mxu1 %v3667_v59  ;;  %v3688_v59 = vld [vmem:[#allocation62_spill] sm:$0xff] }
 0x404   :  { %1093 = vmatpush.msrb.mxu2 %v3668_v4  ;;  %v3689_v4 = vld [vmem:[#allocation66_spill] sm:$0xff] }
 0x405   :  { %1074 = vmatpush.msrb.mxu1 %v3669_v5  ;;  %v3690_v5 = vld [vmem:[#allocation70_spill] sm:$0xff] }
 0x406   :  { %1094 = vmatpush.msrb.mxu2 %v3670_v7  ;;  %v3691_v7 = vld [vmem:[#allocation74_spill] sm:$0xff] }
 0x407   :  { %1075 = vmatpush.msrb.mxu1 %v3671_v12  ;;  %v3692_v12 = vld [vmem:[#allocation78_spill] sm:$0xff] }
 0x408   :  { %1095 = vmatpush.msrb.mxu2 %v3672_v20  ;;  %v3693_v20 = vld [vmem:[#allocation82_spill] sm:$0xff] }
 0x409   :  { %1076 = vmatpush.msrb.mxu1 %v3673_v9  ;;  %v3694_v9 = vld [vmem:[#allocation86_spill] sm:$0xff] }
 0x40a   :  { %1096 = vmatpush.msrb.mxu2 %v3674_v63  ;;  %v3695_v63 = vld [vmem:[#allocation88_spill] sm:$0xff] }
 0x40b   :  { %1077 = vmatpush.msrb.mxu1 %v3675_v21  ;;  %v3696_v21 = vld [vmem:[#allocation92_spill] sm:$0xff] }
 0x40c   :  { %1097 = vmatpush.msrb.mxu2 %v3676_v23  ;;  %v3697_v23 = vld [vmem:[#allocation96_spill] sm:$0xff] }
 0x40d   :  { %1078 = vmatpush.msrb.mxu1 %v3677_v24 }
 0x40e   :  { %1098 = vmatpush.msrb.mxu2 %v3678_v25  ;;  %v3698_v25 = vld [vmem:[#allocation41_spill] sm:$0xff] }
 0x410   :  { %1099 = vmatpush.msrb.mxu2 %v3679_v26  ;;  %v3699_v26 = vld [vmem:[#allocation43_spill] sm:$0xff] }
 0x412   :  { %1100 = vmatpush.msrb.mxu2 %v3680_v27  ;;  %v3700_v27 = vld [vmem:[#allocation45_spill] sm:$0xff] }
 0x414   :  { %1101 = vmatpush.msrb.mxu2 %v3681_v28 }
 0x467   :  { %v819_v29 = vpop.f32.mrf.mxu0 }
 0x468   :  { %v842_v30 = vpop.f32.mrf.mxu1 }
 0x46f   :  { %v822_v40 = vpop.f32.mrf.mxu0 }
 0x470   :  { %v845_v44 = vpop.f32.mrf.mxu1 }
 0x473   :  { %v796_v31 = vpop.f32.mrf.mxu3 }
 0x474   :  { %v820_v33 = vadd.f32 %v819_v29, %v796_v31  ;;  %v865_v34 = vpop.f32.mrf.mxu2  ;;  %v3701_v29 = vld [vmem:[#allocation51_spill] sm:$0xff] }
 0x475   :  { %v3703_v31 = vld [vmem:[#allocation59_spill] sm:$0xff] }
 0x476   :  { %v843_v35 = vadd.f32 %v842_v30, %v820_v33  ;;  %v3702_v30 = vld [vmem:[#allocation55_spill] sm:$0xff] }
 0x477   :  { %v3704_v33 = vld [vmem:[#allocation63_spill] sm:$0xff] }
 0x478   :  { %v866_v36 = vadd.f32 %v865_v34, %v843_v35  ;;  %v3705_v34 = vld [vmem:[#allocation67_spill] sm:$0xff] }
 0x479   :  { %v3706_v35 = vld [vmem:[#allocation71_spill] sm:$0xff] }
 0x47a   :  { %v3052_v39 = vadd.f32 %v3049_v38, %v866_v36  ;;  %v3707_v36 = vld [vmem:[#allocation75_spill] sm:$0xff] }
 0x47b   :  { %v799_v41 = vpop.f32.mrf.mxu3 }
 0x47c   :  { %v873_v42 = vmul.f32 %v3052_v39, %v3052_v39  ;;  %v823_v43 = vadd.f32 %v822_v40, %v799_v41  ;;  %v868_v46 = vpop.f32.mrf.mxu2  ;;  %v3708_v40 = vld [vmem:[#allocation79_spill] sm:$0xff] }
 0x47d   :  { %v3709_v41 = vld [vmem:[#allocation83_spill] sm:$0xff] }
 0x47e   :  { %v846_v45 = vadd.f32 %v845_v44, %v823_v43  ;;  %1439 = vmatmul.msk.f32.vlgmr.msrb.gmra.mxu3 %vm341_vm1, %v873_v42  ;;  %v3710_v42 = vld [vmem:[#allocation87_spill] sm:$0xff]  ;;  %v3711_v43 = vld [vmem:[#allocation89_spill] sm:$0xff] }
 0x47f   :  { %1109 = vmatpush.msrb.mxu3 %v3682_v47  ;;  %v3712_v44 = vld [vmem:[#allocation93_spill] sm:$0xff] }
 0x480   :  { %v869_v48 = vadd.f32 %v868_v46, %v846_v45  ;;  %v3713_v45 = vld [vmem:[#allocation97_spill] sm:$0xff] }
 0x481   :  { %1110 = vmatpush.msrb.mxu3 %v3683_v49 }
 0x482   :  { %v3065_v51 = vadd.f32 %v3062_v50, %v869_v48 }
 0x483   :  { %1111 = vmatpush.msrb.mxu3 %v3684_v53 }
 0x484   :  { %v874_v54 = vmul.f32 %v3065_v51, %v3065_v51 }
 0x485   :  { %1112 = vmatpush.msrb.mxu3 %v3685_v55 }
 0x486   :  { %1440 = vmatmul.msk.f32.gmra.mxu3 %vm341_vm1, %v874_v54 }
 0x487   :  { %1113 = vmatpush.msrb.mxu3 %v3686_v56 }
 0x489   :  { %1114 = vmatpush.msrb.mxu3 %v3687_v57 }
 0x48b   :  { %1115 = vmatpush.msrb.mxu3 %v3688_v59 }
 0x48d   :  { %1116 = vmatpush.msrb.mxu3 %v3689_v4 }
 0x48f   :  { %1117 = vmatpush.msrb.mxu3 %v3690_v5 }
 0x491   :  { %1118 = vmatpush.msrb.mxu3 %v3691_v7 }
 0x493   :  { %1119 = vmatpush.msrb.mxu3 %v3692_v12 }
 0x495   :  { %1120 = vmatpush.msrb.mxu3 %v3693_v20 }
 0x497   :  { %1121 = vmatpush.msrb.mxu3 %v3694_v9 }
 0x499   :  { %1122 = vmatpush.msrb.mxu3 %v3695_v63 }
 0x49b   :  { %1123 = vmatpush.msrb.mxu3 %v3696_v21  ;;  %v3714_v21 = vld [vmem:[#allocation111_spill] sm:$0xff] }
 0x49d   :  { %1124 = vmatpush.msrb.mxu3 %v3697_v23  ;;  %v3715_v23 = vld [vmem:[#allocation115_spill] sm:$0xff] }
 0x501   :  { %v898_v24 = vpop.f32.mrf.mxu3 }
 0x502   :  { %1442 = vmatmul.msk.f32.vlgmr.msra.gmra.mxu0 %vm371_vm2, %v898_v24 }
 0x503   :  { %1132 = vmatpush.msra.mxu0 %v3698_v25  ;;  %v3717_v25 = vld [vmem:[#allocation116_spill] sm:$0xff] }
 0x505   :  { %1133 = vmatpush.msra.mxu0 %v3699_v26 }
 0x507   :  { %1134 = vmatpush.msra.mxu0 %v3700_v27 }
 0x509   :  { %v901_v28 = vpop.f32.mrf.mxu3  ;;  %1135 = vmatpush.msra.mxu0 %v3701_v29  ;;  %v3722_v29 = vld [vmem:[#allocation125_spill] sm:$0xff] }
 0x50a   :  { %1443 = vmatmul.msk.f32.gmra.mxu0 %vm371_vm2, %v901_v28  ;;  %v3718_v28 = vld [vmem:[#allocation113_spill] sm:$0xff] }
 0x50b   :  { %1136 = vmatpush.msra.mxu0 %v3702_v30 }
 0x50d   :  { %1137 = vmatpush.msra.mxu0 %v3703_v31  ;;  %v3723_v31 = vld [vmem:[#allocation119_spill] sm:$0xff] }
 0x50f   :  { %1138 = vmatpush.msra.mxu0 %v3704_v33 }
 0x511   :  { %1139 = vmatpush.msra.mxu0 %v3705_v34 }
 0x513   :  { %1140 = vmatpush.msra.mxu0 %v3706_v35  ;;  %v3724_v35 = vld [vmem:[#allocation129_spill] sm:$0xff] }
 0x515   :  { %1141 = vmatpush.msra.mxu0 %v3707_v36  ;;  %v3725_v36 = vld [vmem:[#allocation120_spill] sm:$0xff] }
 0x517   :  { %1142 = vmatpush.msra.mxu0 %v3708_v40  ;;  %v3726_v40 = vld [vmem:[#allocation122_spill] sm:$0xff] }
 0x519   :  { %1143 = vmatpush.msra.mxu0 %v3709_v41  ;;  %v3727_v41 = vld [vmem:[#allocation121_spill] sm:$0xff] }
 0x51b   :  { %1144 = vmatpush.msra.mxu0 %v3710_v42  ;;  %v3728_v42 = vld [vmem:[#allocation133_spill] sm:$0xff] }
 0x51d   :  { %1145 = vmatpush.msra.mxu0 %v3711_v43  ;;  %v3729_v43 = vld [vmem:[#allocation126_spill] sm:$0xff] }
 0x51f   :  { %1146 = vmatpush.msra.mxu0 %v3712_v44 }
 0x521   :  { %1147 = vmatpush.msra.mxu0 %v3713_v45  ;;  %v3730_v45 = vld [vmem:[#allocation124_spill] sm:$0xff] }
 0x57f   :  { %v927_v46 = vpop.f32.mrf.mxu0 }
 0x580   :  { %v933_v47 = vmax.f32 %v927_v46, 1e-24 }
 0x582   :  { %1478 = vrsqrt.f32 %v933_v47  ;;  %vm941_vm11 = vweird.f32 %v933_v47 }
 0x587   :  { %v930_v48 = vpop.f32.mrf.mxu0 }
 0x588   :  { %v1479_v49 = vpop.eup %1478  ;;  %v934_v53 = vmax.f32 %v930_v48, 1e-24  ;;  %v3731_v48 = vld [vmem:[#allocation130_spill] sm:$0xff] }
 0x589   :  { %v936_v54 = vmul.f32 %v1479_v49, %v933_v47  ;;  %vm942_vm10 = vweird.f32 %v1479_v49 }
 0x58a   :  { %1480 = vrsqrt.f32 %v934_v53  ;;  %vm943_vm12 = vmor %vm941_vm11, %vm942_vm10  ;;  %vm951_vm14 = vweird.f32 %v934_v53 }
 0x58b   :  { %v937_v55 = vmul.f32 %v1479_v49, %v936_v54  ;;  %v1513_v54 = vld [vmem:[%s3318_s6 + $0x150] sm:$0xff] }
 0x58d   :  { %v938_v56 = vmul.f32 0.5, %v937_v55  ;;  %v3733_v55 = vld [vmem:[#allocation134_spill] sm:$0xff] }
 0x58f   :  { %v939_v57 = vsub.f32 1.5, %v938_v56  ;;  %v3734_v56 = vld [vmem:[#allocation132_spill] sm:$0xff] }
 0x590   :  { %v1481_v59 = vpop.eup %1480 }
 0x591   :  { %v940_v4 = vmul.f32 %v1479_v49, %v939_v57  ;;  %v946_v5 = vmul.f32 %v1481_v59, %v934_v53  ;;  %vm952_vm13 = vweird.f32 %v1481_v59  ;;  %v3732_v53 = vld [vmem:[#allocation128_spill] sm:$0xff] }
 0x592   :  { %vm953_vm15 = vmor %vm951_vm14, %vm952_vm13  ;;  %v3735_v57 = vld [vmem:[#allocation136_spill] sm:$0xff] }
 0x593   :  { %v944_v7 = vsel %vm943_vm12, %v1479_v49, %v940_v4  ;;  %v947_v12 = vmul.f32 %v1481_v59, %v946_v5  ;;  %v1516_v4 = vld [vmem:[%s3318_s6 + $0xd0] sm:$0xff]  ;;  %v1517_v5 = vld [vmem:[%s3318_s6 + $0x138] sm:$0xff] }
 0x594   :  { %v955_v20 = vmul.f32 %v944_v7, %v3052_v39  ;;  %v3716_v39 = vld [vmem:[#allocation112_spill] sm:$0xff]  ;;  %v1519_v7 = vld [vmem:[%s3318_s6 + $0xc8] sm:$0xff] }
 0x595   :  { %v948_v9 = vmul.f32 0.5, %v947_v12  ;;  %v1521_v12 = vld [vmem:[%s3318_s6 + $0x40] sm:$0xff] }
 0x596   :  { %1444 = vmatmul.msk.f32.vlgmr.msra.gmra.mxu1 %vm341_vm1, %v955_v20  ;;  %1446 = vmatmul.msk.f32.vlgmr.msra.gmra.mxu2 %vm341_vm1, %v955_v20 }
 0x597   :  { %v949_v63 = vsub.f32 1.5, %v948_v9  ;;  %1448 = vmatmul.msk.f32.vlgmr.msra.gmra.mxu3 %vm341_vm1, %v955_v20  ;;  %1450 = vmatmul.msk.f32.vlgmr.msrb.gmra.mxu0 %vm341_vm1, %v955_v20  ;;  %v1522_v20 = vld [vmem:[%s3318_s6 + $0xc0] sm:$0xff]  ;;  %v1523_v9 = vld [vmem:[%s3318_s6 + $0x128] sm:$0xff] }
 0x598   :  { %1177 = vmatpush.msra.mxu1 %v3714_v21  ;;  %1210 = vmatpush.msra.mxu2 %v3715_v23  ;;  %v1525_v21 = vld [vmem:[%s3318_s6 + $0xb8] sm:$0xff]  ;;  %v1526_v23 = vld [vmem:[%s3318_s6 + $0x120] sm:$0xff] }
 0x599   :  { %v950_v24 = vmul.f32 %v1481_v59, %v949_v63  ;;  %1233 = vmatpush.msra.mxu3 %v2710_v19  ;;  %1256 = vmatpush.msrb.mxu0 %v2715_v18  ;;  %v3719_v19 = vld [vmem:[#allocation114_spill] sm:$0xff]  ;;  %v1524_v63 = vld [vmem:[%s3318_s6 + $0x38] sm:$0xff] }
 0x59a   :  { %1178 = vmatpush.msra.mxu1 %v3716_v39  ;;  %1211 = vmatpush.msra.mxu2 %v3717_v25  ;;  %v1528_v39 = vld [vmem:[%s3318_s6 + $0xb0] sm:$0xff]  ;;  %v1529_v25 = vld [vmem:[%s3318_s6 + $0x118] sm:$0xff] }
 0x59b   :  { %v954_v26 = vsel %vm953_vm15, %v1481_v59, %v950_v24  ;;  %1234 = vmatpush.msra.mxu3 %v2727_v11  ;;  %1257 = vmatpush.msrb.mxu0 %v2732_v14  ;;  %v1515_v59 = vld [vmem:[%s3318_s6 + $0x140] sm:$0xff]  ;;  %v1527_v24 = vld [vmem:[%s3318_s6 + $0x30] sm:$0xff] }
 0x59c   :  { %v956_v27 = vmul.f32 %v954_v26, %v3065_v51  ;;  %1179 = vmatpush.msra.mxu1 %v3718_v28  ;;  %1212 = vmatpush.msra.mxu2 %v2739_v1  ;;  %v3721_v51 = vld [vmem:[#allocation118_spill] sm:$0xff]  ;;  %v1530_v26 = vld [vmem:[%s3318_s6 + $0x28] sm:$0xff]  ;;  %v1532_v28 = vld [vmem:[%s3318_s6 + $0x110] sm:$0xff] }
 0x59d   :  { %1235 = vmatpush.msra.mxu3 %v2750_v15  ;;  %1258 = vmatpush.msrb.mxu0 %v2762_v60  ;;  %v3720_v15 = vld [vmem:[#allocation117_spill] sm:$0xff] }
 0x59e   :  { %1445 = vmatmul.msk.f32.gmra.mxu1 %vm341_vm1, %v956_v27  ;;  %1447 = vmatmul.msk.f32.gmra.mxu2 %vm341_vm1, %v956_v27 }
 0x59f   :  { %1449 = vmatmul.msk.f32.gmra.mxu3 %vm341_vm1, %v956_v27  ;;  %1451 = vmatmul.msk.f32.gmra.mxu0 %vm341_vm1, %v956_v27  ;;  %v1531_v27 = vld [vmem:[%s3318_s6 + $0xa8] sm:$0xff] }
 0x5a0   :  { %1180 = vmatpush.msra.mxu1 %v3719_v19  ;;  %1213 = vmatpush.msra.mxu2 %v2756_v62  ;;  %v1533_v19 = vld [vmem:[%s3318_s6 + $0x20] sm:$0xff] }
 0x5a1   :  { %1236 = vmatpush.msra.mxu3 %v2769_v10  ;;  %1259 = vmatpush.msrb.mxu0 %v2774_v0 }
 0x613   :  { %v980_v18 = vpop.f32.mrf.mxu1 }
 0x614   :  { %v1055_v11 = vmul.f32 %v980_v18, %v3631_v58  ;;  %v1049_v14 = vpop.f32.mrf.mxu0  ;;  %v1534_v18 = vld [vmem:[%s3318_s6 + $0xa0] sm:$0xff] }
 0x615   :  { %v1058_v1 = vmul.f32 %v1049_v14, %v3633_v6  ;;  %v1536_v14 = vld [vmem:[%s3318_s6 + $0x18] sm:$0xff] }
 0x616   :  { %1079 = vmatmul.f32.vlgmr.msrb.gmra.mxu1 %v1055_v11  ;;  %v1535_v11 = vld [vmem:[%s3318_s6 + $0x108] sm:$0xff] }
 0x617   :  { %1148 = vmatmul.f32.vlgmr.msra.gmra.mxu0 %v1058_v1  ;;  %1279 = vmatpush.msrb.mxu1 %v3720_v15  ;;  %v1537_v1 = vld [vmem:[%s3318_s6 + $0x98] sm:$0xff]  ;;  %v1538_v15 = vld [vmem:[%s3318_s6 + $0x100] sm:$0xff] }
 0x618   :  { %1344 = vmatpush.msra.mxu0 %v2794_v2 }
 0x619   :  { %v1003_v60 = vpop.f32.mrf.mxu2  ;;  %1280 = vmatpush.msrb.mxu1 %v3721_v51  ;;  %v1540_v51 = vld [vmem:[%s3318_s6 + $0x90] sm:$0xff] }
 0x61a   :  { %v1056_v62 = vmul.f32 %v1003_v60, %v2635_v8  ;;  %v1026_v10 = vpop.f32.mrf.mxu3  ;;  %1345 = vmatpush.msra.mxu0 %v3722_v29  ;;  %v1539_v60 = vld [vmem:[%s3318_s6 + $0x10] sm:$0xff]  ;;  %v1543_v29 = vld [vmem:[%s3318_s6] sm:$0xff] }
 0x61b   :  { %v1057_v0 = vmul.f32 %v1026_v10, %v3627_v52  ;;  %v983_v30 = vpop.f32.mrf.mxu1  ;;  %1281 = vmatpush.msrb.mxu1 %v3723_v31  ;;  %v1542_v10 = vld [vmem:[%s3318_s6 + $0x88] sm:$0xff] }
 0x61c   :  { %v1059_v33 = vmul.f32 %v983_v30, %v3645_v32  ;;  %v1052_v34 = vpop.f32.mrf.mxu0  ;;  %1102 = vmatmul.f32.vlgmr.msrb.gmra.mxu2 %v1056_v62  ;;  %1346 = vmatpush.msra.mxu0 %v3724_v35  ;;  %v1541_v62 = vld [vmem:[%s3318_s6 + $0x8] sm:$0xff] }
 0x61d   :  { %v1062_v2 = vmul.f32 %v1052_v34, %v3648_v37  ;;  %1125 = vmatmul.f32.vlgmr.msrb.gmra.mxu3 %v1057_v0  ;;  %1282 = vmatpush.msrb.mxu1 %v3725_v36  ;;  %v1544_v0 = vld [vmem:[%s3318_s6 + $0x80] sm:$0xff] }
 0x61e   :  { %1082 = vmatmul.f32.gmra.mxu1 %v1059_v33  ;;  %1298 = vmatpush.msrb.mxu2 %v3726_v40 }
 0x61f   :  { %1151 = vmatmul.f32.gmra.mxu0 %v1062_v2  ;;  %1321 = vmatpush.msrb.mxu3 %v3727_v41 }
 0x620   :  { %1347 = vmatpush.msra.mxu0 %v3728_v42  ;;  %1299 = vmatpush.msrb.mxu2 %v3729_v43 }
 0x621   :  { %v1006_v44 = vpop.f32.mrf.mxu2  ;;  %1322 = vmatpush.msrb.mxu3 %v3730_v45 }
 0x622   :  { %v1060_v46 = vmul.f32 %v1006_v44, %v3635_v16  ;;  %v1029_v47 = vpop.f32.mrf.mxu3  ;;  %1348 = vmatpush.msra.mxu0 %v2890_v3  ;;  %1300 = vmatpush.msrb.mxu2 %v3731_v48  ;;  %v1514_v3 = vld [vmem:[%s3318_s6 + $0x148] sm:$0xff] }
 0x623   :  { %v1061_v49 = vmul.f32 %v1029_v47, %v3637_v22  ;;  %1323 = vmatpush.msrb.mxu3 %v3732_v53  ;;  %v3736_v53 = vld [vmem:[#allocation123_spill] sm:$0xff] }
 0x624   :  { %1105 = vmatmul.f32.gmra.mxu2 %v1060_v46  ;;  %1349 = vmatpush.msra.mxu0 %v1513_v54  ;;  %v3737_v54 = vld [vmem:[#allocation127_spill] sm:$0xff] }
 0x625   :  { %1128 = vmatmul.f32.gmra.mxu3 %v1061_v49  ;;  %1301 = vmatpush.msrb.mxu2 %v3733_v55  ;;  %v3738_v55 = vld [vmem:[#allocation131_spill] sm:$0xff] }
 0x626   :  { %1324 = vmatpush.msrb.mxu3 %v3734_v56  ;;  %1350 = vmatpush.msra.mxu0 %v1514_v3  ;;  %v3739_v3 = vld [vmem:[#allocation135_spill] sm:$0xff] }
 0x627   :  { %1302 = vmatpush.msrb.mxu2 %v2896_v61  ;;  %v1518_v61 = vld [vmem:[%s3318_s6 + $0x48] sm:$0xff] }
 0x628   :  { %1325 = vmatpush.msrb.mxu3 %v3735_v57  ;;  %1351 = vmatpush.msra.mxu0 %v1515_v59  ;;  %v1545_v57 = vld [vmem:[%s3318_s6 + $0x1d0] sm:$0xff]  ;;  %v1546_v59 = vld [vmem:[%s3318_s6 + $0x1c8] sm:$0xff] }
 0x629   :  { %1303 = vmatpush.msrb.mxu2 %v2910_v17  ;;  %v1520_v17 = vld [vmem:[%s3318_s6 + $0x130] sm:$0xff] }
 0x62a   :  { %1326 = vmatpush.msrb.mxu3 %v1516_v4  ;;  %1352 = vmatpush.msra.mxu0 %v1517_v5  ;;  %v1547_v4 = vld [vmem:[%s3318_s6 + $0x1c0] sm:$0xff]  ;;  %v1548_v5 = vld [vmem:[%s3318_s6 + $0x1b8] sm:$0xff] }
 0x62b   :  { %1304 = vmatpush.msrb.mxu2 %v1518_v61  ;;  %v1550_v61 = vld [vmem:[%s3318_s6 + $0x1a8] sm:$0xff] }
 0x62c   :  { %1327 = vmatpush.msrb.mxu3 %v1519_v7  ;;  %1353 = vmatpush.msra.mxu0 %v1520_v17  ;;  %v1551_v7 = vld [vmem:[%s3318_s6 + $0x1a0] sm:$0xff]  ;;  %v1552_v17 = vld [vmem:[%s3318_s6 + $0x198] sm:$0xff] }
 0x62d   :  { %1305 = vmatpush.msrb.mxu2 %v1521_v12  ;;  %v1553_v12 = vld [vmem:[%s3318_s6 + $0x190] sm:$0xff] }
 0x62e   :  { %1328 = vmatpush.msrb.mxu3 %v1522_v20  ;;  %1354 = vmatpush.msra.mxu0 %v1523_v9  ;;  %v1554_v20 = vld [vmem:[%s3318_s6 + $0x188] sm:$0xff]  ;;  %v1555_v9 = vld [vmem:[%s3318_s6 + $0x180] sm:$0xff] }
 0x62f   :  { %1306 = vmatpush.msrb.mxu2 %v1524_v63 }
 0x630   :  { %1329 = vmatpush.msrb.mxu3 %v1525_v21  ;;  %1355 = vmatpush.msra.mxu0 %v1526_v23 }
 0x631   :  { %1307 = vmatpush.msrb.mxu2 %v1527_v24 }
 0x632   :  { %1330 = vmatpush.msrb.mxu3 %v1528_v39  ;;  %1356 = vmatpush.msra.mxu0 %v1529_v25 }
 0x633   :  { %1308 = vmatpush.msrb.mxu2 %v1530_v26 }
 0x634   :  { %1331 = vmatpush.msrb.mxu3 %v1531_v27  ;;  %1357 = vmatpush.msra.mxu0 %v1532_v28 }
 0x635   :  { %1309 = vmatpush.msrb.mxu2 %v1533_v19 }
 0x636   :  { %1332 = vmatpush.msrb.mxu3 %v1534_v18  ;;  %1358 = vmatpush.msra.mxu0 %v1535_v11 }
 0x637   :  { %1310 = vmatpush.msrb.mxu2 %v1536_v14 }
 0x638   :  { %1333 = vmatpush.msrb.mxu3 %v1537_v1  ;;  %1359 = vmatpush.msra.mxu0 %v1538_v15 }
 0x639   :  { %1311 = vmatpush.msrb.mxu2 %v1539_v60 }
 0x63a   :  { %1334 = vmatpush.msrb.mxu3 %v1540_v51 }
 0x63b   :  { %1312 = vmatpush.msrb.mxu2 %v1541_v62 }
 0x63c   :  { %1335 = vmatpush.msrb.mxu3 %v1542_v10 }
 0x63d   :  { %1313 = vmatpush.msrb.mxu2 %v1543_v29 }
 0x63e   :  { %1336 = vmatpush.msrb.mxu3 %v1544_v0 }
 0x693   :  { %v1080_v30 = vpop.f32.mrf.mxu1 }
 0x694   :  { %v1149_v35 = vpop.f32.mrf.mxu0 }
 0x69b   :  { %v1083_v41 = vpop.f32.mrf.mxu1 }
 0x69c   :  { %v1152_v46 = vpop.f32.mrf.mxu0 }
 0x69f   :  { %v1103_v31 = vpop.f32.mrf.mxu2 }
 0x6a0   :  { %v1104_v33 = vadd.f32 %v1103_v31, %v1080_v30  ;;  %v1126_v34 = vpop.f32.mrf.mxu3 }
 0x6a2   :  { %v1127_v2 = vadd.f32 %v1126_v34, %v1104_v33 }
 0x6a4   :  { %v1150_v36 = vadd.f32 %v1149_v35, %v1127_v2 }
 0x6a6   :  { %v1155_v40 = vmul.f32 1.442695, %v1150_v36 }
 0x6a7   :  { %v1106_v42 = vpop.f32.mrf.mxu2 }
 0x6a8   :  { %1482 = vpow2.f32 %v1155_v40  ;;  %v1107_v43 = vadd.f32 %v1106_v42, %v1083_v41  ;;  %v1129_v44 = vpop.f32.mrf.mxu3 }
 0x6aa   :  { %v1130_v45 = vadd.f32 %v1129_v44, %v1107_v43 }
 0x6ac   :  { %v1153_v47 = vadd.f32 %v1152_v46, %v1130_v45 }
 0x6ae   :  { %v1483_v48 = vpop.eup %1482  ;;  %v1157_v49 = vmul.f32 1.442695, %v1153_v47 }
 0x6af   :  { %1452 = vmatmul.msk.f32.vlgmr.msra.gmra.mxu1 %vm639_vm9, %v1483_v48 }
 0x6b0   :  { %1484 = vpow2.f32 %v1157_v49  ;;  %1367 = vmatpush.msra.mxu1 %v3736_v53 }
 0x6b2   :  { %1368 = vmatpush.msra.mxu1 %v3737_v54 }
 0x6b4   :  { %1369 = vmatpush.msra.mxu1 %v3738_v55 }
 0x6b6   :  { %v1485_v56 = vpop.eup %1484  ;;  %1370 = vmatpush.msra.mxu1 %v3739_v3 }
 0x6b7   :  { %1453 = vmatmul.msk.f32.gmra.mxu1 %vm639_vm9, %v1485_v56 }
 0x6b8   :  { %1371 = vmatpush.msra.mxu1 %v2902_v13  ;;  %v1549_v13 = vld [vmem:[%s3318_s6 + $0x1b0] sm:$0xff] }
 0x6ba   :  { %1372 = vmatpush.msra.mxu1 %v1545_v57 }
 0x6bc   :  { %1373 = vmatpush.msra.mxu1 %v1546_v59 }
 0x6be   :  { %1374 = vmatpush.msra.mxu1 %v1547_v4 }
 0x6c0   :  { %1375 = vmatpush.msra.mxu1 %v1548_v5 }
 0x6c2   :  { %1376 = vmatpush.msra.mxu1 %v1549_v13 }
 0x6c4   :  { %1377 = vmatpush.msra.mxu1 %v1550_v61 }
 0x6c6   :  { %1378 = vmatpush.msra.mxu1 %v1551_v7 }
 0x6c8   :  { %1379 = vmatpush.msra.mxu1 %v1552_v17 }
 0x6ca   :  { %1380 = vmatpush.msra.mxu1 %v1553_v12 }
 0x6cc   :  { %1381 = vmatpush.msra.mxu1 %v1554_v20 }
 0x6ce   :  { %1382 = vmatpush.msra.mxu1 %v1555_v9 }
 0x72c   :  { %v1182_v63 = vpop.f32.mrf.mxu1 }
 0x72d   :  { %1486 = vrcp.f32 %v1182_v63 }
 0x733   :  { %v1487_v21 = vpop.eup %1486 }
 0x734   :  { %v1190_v23 = vmul.f32 %v1487_v21, %v1483_v48  ;;  %v1185_v24 = vpop.f32.mrf.mxu1 }
 0x735   :  { %1488 = vrcp.f32 %v1185_v24 }
 0x736   :  { %1454 = vmatmul.msk.f32.vlgmr.msra.gmra.mxu2 %vm639_vm9, %v1190_v23  ;;  %1456 = vmatmul.msk.f32.vlgmr.msra.gmra.mxu3 %vm639_vm9, %v1190_v23 }
 0x737   :  { %1458 = vmatmul.msk.f32.vlgmr.msrb.gmra.mxu0 %vm639_vm9, %v1190_v23  ;;  %1460 = vmatmul.msk.f32.vlgmr.msrb.gmra.mxu1 %vm639_vm9, %v1190_v23 }
 0x73b   :  { %v1489_v39 = vpop.eup %1488 }
 0x73c   :  { %v1191_v25 = vmul.f32 %v1489_v39, %v1485_v56 }
 0x73e   :  { %1455 = vmatmul.msk.f32.gmra.mxu2 %vm639_vm9, %v1191_v25  ;;  %1457 = vmatmul.msk.f32.gmra.mxu3 %vm639_vm9, %v1191_v25 }
 0x73f   :  { %1459 = vmatmul.msk.f32.gmra.mxu0 %vm639_vm9, %v1191_v25  ;;  %1461 = vmatmul.msk.f32.gmra.mxu1 %vm639_vm9, %v1191_v25 }
 0x7b4   :  { %v1261_v26 = vpop.f32.mrf.mxu0  ;;  %v1284_v27 = vpop.f32.mrf.mxu1 }
 0x7b5   :  { %v1292_v28 = vmul.f32 %v1261_v26, %v3627_v52  ;;  %v1293_v19 = vmul.f32 %v1284_v27, %v3633_v6 }
 0x7b7   :  { %1360 = vmatmul.f32.vlgmr.msra.gmra.mxu0 %v1292_v28  ;;  %1383 = vmatmul.f32.vlgmr.msra.gmra.mxu1 %v1293_v19 }
 0x7b9   :  { %v1215_v18 = vpop.f32.mrf.mxu2  ;;  %v1238_v11 = vpop.f32.mrf.mxu3 }
 0x7ba   :  { %v1290_v14 = vmul.f32 %v1215_v18, %v3631_v58  ;;  %v1291_v1 = vmul.f32 %v1238_v11, %v2635_v8 }
 0x7bc   :  { %v1264_v15 = vpop.f32.mrf.mxu0  ;;  %v1287_v60 = vpop.f32.mrf.mxu1  ;;  %1314 = vmatmul.f32.vlgmr.msrb.gmra.mxu2 %v1290_v14  ;;  %1337 = vmatmul.f32.vlgmr.msrb.gmra.mxu3 %v1291_v1 }
 0x7bd   :  { %v1296_v51 = vmul.f32 %v1264_v15, %v3637_v22  ;;  %v1297_v62 = vmul.f32 %v1287_v60, %v3648_v37 }
 0x7bf   :  { %1363 = vmatmul.f32.gmra.mxu0 %v1296_v51  ;;  %1386 = vmatmul.f32.gmra.mxu1 %v1297_v62 }
 0x7c1   :  { %v1218_v52 = vpop.f32.mrf.mxu2  ;;  %v1241_v6 = vpop.f32.mrf.mxu3 }
 0x7c2   :  { %v1294_v10 = vmul.f32 %v1218_v52, %v3645_v32  ;;  %v1295_v29 = vmul.f32 %v1241_v6, %v3635_v16 }
 0x7c4   :  { %1317 = vmatmul.f32.gmra.mxu2 %v1294_v10  ;;  %1340 = vmatmul.f32.gmra.mxu3 %v1295_v29 }
 0x834   :  { %v1361_v58 = vpop.f32.mrf.mxu0  ;;  %v1384_v31 = vpop.f32.mrf.mxu1 }
 0x83c   :  { %v1364_v40 = vpop.f32.mrf.mxu0  ;;  %v1387_v32 = vpop.f32.mrf.mxu1 }
 0x83f   :  { %v1315_v8 = vpop.f32.mrf.mxu2  ;;  %v1338_v0 = vpop.f32.mrf.mxu3 }
 0x840   :  { %v1339_v30 = vadd.f32 %v1338_v0, %v1315_v8 }
 0x842   :  { %v1362_v33 = vadd.f32 %v1361_v58, %v1339_v30 }
 0x844   :  { %v1385_v34 = vadd.f32 %v1384_v31, %v1362_v33 }
 0x846   :  { %v1390_v22 = vadd.f32 %v3049_v38, %v1385_v34 }
 0x847   :  { %v1318_v37 = vpop.f32.mrf.mxu2  ;;  %v1341_v35 = vpop.f32.mrf.mxu3 }
 0x848   :  { %v1392_v2 = vmax.f32 %v1390_v22, 0.0  ;;  %v1342_v36 = vadd.f32 %v1341_v35, %v1318_v37 }
 0x84a   :  { %1394 = vst.msk [vmem:[%s3327_s9] sm:$0xff] %vm341_vm1, %v1392_v2  ;;  %v1365_v16 = vadd.f32 %v1364_v40, %v1342_v36 }
 0x84c   :  { %v1388_v41 = vadd.f32 %v1387_v32, %v1365_v16 }
 0x84e   :  { %v1391_v42 = vadd.f32 %v3062_v50, %v1388_v41 }
 0x850   :  { %v1393_v43 = vmax.f32 %v1391_v42, 0.0 }
 0x852   :  { %1395 = vst.msk [vmem:[%s3327_s9 + $0x8] sm:$0xff] %vm341_vm1, %v1393_v43 }

// kernel: capsule_net_forward.9
= control target key start
LH: loop header
LB: loop body
LE: loop exit
PB: predicated region body
PF: predicated region fallthrough
CT: control target
= control target key end

     0   :  { %s717_s15 = smov 0   ;;  %s719_s16 = smov 0   ;;  %s790_s0 = inlined_call_operand.vmem [shape: f32[4,16,17], index: 0, kind: input, shape index: {}]   ;;  %s791_s1 = inlined_call_operand.vmem [shape: f32[4,17,16], index: 1, kind: input, shape index: {}]   ;;  %s792_s2 = inlined_call_operand.vmem [shape: f32[4,16,1], index: 2, kind: input, shape index: {}]   ;;  %s793_s3 = inlined_call_operand.vmem [shape: f32[4,1,16], index: 3, kind: input, shape index: {}]   ;;  %s794_s4 = inlined_call_operand.vmem [shape: f32[4,16,1], index: 4, kind: output, shape index: {}]  }
   0x1   :  { %s721_s17 = smov 0  }
   0x2 LB: > { %s26_s18 = sadd.s32 1, %s684_s16  ;;  %p612_p0 = scmp.ge.s32.totalorder %s688_s17, 1  ;;  %s688_s17 = sphi %s721_s17, %s14_s17   ;;  %s684_s16 = sphi %s719_s16, %s796_s16   ;;  %s680_s15 = sphi %s717_s15, %s795_s15  }
   0x3   : > { %p28_p1 = scmp.ge.s32.totalorder %s26_s18, 4  ;;  %p218_p2 = scmp.lt.s32.totalorder %s688_s17, 5 }
   0x5   : > { %s798_s18 = smov (%p28_p1, %s26_s18), 0  ;;  %p219_p3 = pnand %p612_p0, %p218_p2 }
   0x6   : > { %p270_p4 = scmp.lt.s32.totalorder (!%p219_p3), %s680_s15, 3 }
   0x7   : > { %222 = sbr.rel (%p219_p3) target bundleno = 647 (0x287), region = 36 }
   0xc   : > { %v690_v0 = vmov 0   ;;  %s800_s15 = smov (!%p270_p4, %s680_s15), 3  ;;  %vm322_vm0 = vcmask 1040384   ;;  %vm315_vm1 = vcmask 138240   ;;  %v372_v13 = vlaneseq }
   0xd   : > { %664 = vset.pattern.permute.xlu0 %v690_v0  ;;  %s637_s19 = smul.u32 24, %s800_s15  ;;  %s735_s20 = sshll.u32 %s800_s15, 4  ;;  %vm385_vm3 = vcmask 130048   ;;  %v691_v37 = vmov 0.0   ;;  %vm479_vm14 = vcmask 7168  }
   0xe   : > { %s292_s23 = scalar_lea.vmem %s792_s2, %s735_s20  ;;  %s277_s29 = scalar_lea.vmem %s790_s0, %s735_s20  ;;  %v380_v17 = vand.u32 127, %v372_v13  ;;  %v373_v21 = vshrl.u32 %v372_v13, 7 }
   0xf   : > { %s283_s26 = scalar_lea.vmem %s791_s1, %s637_s19  ;;  %v312_v1 = vld [vmem:[%s292_s23] sm:$0xff]  ;;  %s296_s6 = scalar_lea.vmem %s793_s3, %s800_s15  ;;  %v308_v6 = vld [vmem:[%s277_s29 + $0x8] sm:$0xff] }
  0x10   : > { %v311_v2 = vld [vmem:[%s283_s26 + $0x10] sm:$0x1]  ;;  %v310_v3 = vld [vmem:[%s283_s26 + $0x8] sm:$0xff]  ;;  %351 = vperm.xlu0 %664, %v312_v1   ;;  %v309_v4 = vld [vmem:[%s283_s26] sm:$0xff]  ;;  %vm381_vm2 = vcmp.eq.s32.totalorder %v373_v21, %v380_v17  ;;  %v374_v25 = vadd.s32 8, %v373_v21  ;;  %s305_s9 = scalar_lea.vmem %s794_s4, %s735_s20 }
  0x11   : > { %620 = vmatpush.msk.msra.mxu0 %vm322_vm0, %v311_v2  ;;  %634 = vmatpush.msk.msra.mxu1 %vm322_vm0, %v311_v2  ;;  %v307_v5 = vld [vmem:[%s277_s29] sm:$0xff]  ;;  %v313_v7 = vld [vmem:[%s292_s23 + $0x8] sm:$0xff] }
  0x12   : > { %v665_v9 = vld [vmem:[%s296_s6] ss:$0 sm:$0xff]  ;;  %vm382_vm4 = vcmp.eq.s32.totalorder %v374_v25, %v380_v17 }
  0x13   : > { %340 = vmatpush.msra.mxu0 %v310_v3  ;;  %635 = vmatpush.msra.mxu1 %v310_v3 }
  0x15   : > { %341 = vmatpush.msra.mxu0 %v309_v4  ;;  %636 = vmatpush.msra.mxu1 %v309_v4 }
  0x16   : > { %621 = vmatmul.msk.f32.vlgmr.msra.gmra.mxu0 %vm315_vm1, %v307_v5  ;;  %622 = vmatmul.msk.f32.vlgmr.msra.gmra.mxu1 %vm315_vm1, %v308_v6 }
  0x18   : > { %356 = vperm.xlu0 %664, %v313_v7  }
  0x82   : > { %v352_v8 = vpop.permute.xlu0 %351 }
  0x83   : > { %v362_v11 = vadd.f32 %v665_v9, %v352_v8 }
  0x85   : > { %v364_v14 = vadd.f32 2.0, %v362_v11 }
  0x8a   : > { %v357_v10 = vpop.permute.xlu0 %356 }
  0x8b   : > { %v363_v12 = vadd.f32 %v665_v9, %v357_v10 }
  0x8d   : > { %v365_v18 = vadd.f32 2.0, %v363_v12 }
  0x93   : > { %v343_v15 = vpop.f32.mrf.mxu0  ;;  %v346_v16 = vpop.f32.mrf.mxu1 }
  0x94   : > { %v366_v19 = vmul.f32 2.0, %v343_v15  ;;  %v367_v20 = vmul.f32 2.0, %v346_v16 }
  0x96   : > { %v368_v22 = vsub.f32 %v364_v14, %v366_v19  ;;  %v369_v24 = vsub.f32 %v365_v18, %v367_v20 }
  0x98   : > { %v370_v23 = vmax.f32 %v368_v22, 0.0  ;;  %v371_v28 = vmax.f32 %v369_v24, 0.0 }
  0x9a   : > { %v383_v26 = vsel %vm381_vm2, 0.0, %v370_v23  ;;  %v384_v29 = vsel %vm382_vm4, 0.0, %v371_v28 }
  0x9b   : > { %v386_v27 = vsel %vm385_vm3, %v383_v26, inf  ;;  %v389_v30 = vsel %vm385_vm3, %v384_v29, inf }
  0x9c   : > { %387 = vmin.xlane.f32.xlu1 %v386_v27 }
  0xa4   : > { %390 = vmin.xlane.f32.xlu1 %v389_v30 }
 0x10f   : > { %v388_v31 = vpop.xlane.xlu1 %387 }
 0x110   : > { %vm392_vm5 = vcmp.le.f32.partialorder %v383_v26, %v388_v31 }
 0x111   : > { %v411_v32 = vsel %vm392_vm5, 3e+38, %v383_v26  ;;  %v623_v38 = vsel %vm392_vm5, 1.0, %v691_v37 }
 0x112   : > { %v413_v33 = vsel %vm385_vm3, %v411_v32, inf  ;;  %v398_v39 = vsel %vm385_vm3, %v623_v38, 0.0 }
 0x113   : > { %414 = vmin.xlane.f32.xlu2 %v413_v33 }
 0x117   : > { %v754_v34 = vpop.xlane.xlu1 %390 }
 0x118   : > { %vm393_vm6 = vcmp.le.f32.partialorder %v384_v29, %v754_v34 }
 0x119   : > { %v412_v35 = vsel %vm393_vm6, 3e+38, %v384_v29  ;;  %v624_v48 = vsel %vm393_vm6, 1.0, %v691_v37 }
 0x11a   : > { %v416_v36 = vsel %vm385_vm3, %v412_v35, inf  ;;  %v401_v49 = vsel %vm385_vm3, %v624_v48, 0.0 }
 0x11b   : > { %417 = vmin.xlane.f32.xlu2 %v416_v36 }
 0x123   : > { %399 = vadd.xlane.f32.xlu2 %v398_v39 }
 0x186   : > { %v415_v40 = vpop.xlane.xlu2 %414 }
 0x187   : > { %vm419_vm7 = vcmp.le.f32.partialorder %v411_v32, %v415_v40 }
 0x188   : > { %v439_v41 = vsel %vm419_vm7, 3e+38, %v411_v32  ;;  %v625_v42 = vsel %vm419_vm7, 1.0, %v691_v37 }
 0x189   : > { %v441_v43 = vsel %vm385_vm3, %v439_v41, inf  ;;  %v425_v44 = vsel %vm385_vm3, %v625_v42, 0.0 }
 0x18a   : > { %442 = vmin.xlane.f32.xlu0 %v441_v43  ;;  %426 = vadd.xlane.f32.xlu2 %v425_v44 }
 0x18e   : > { %v418_v45 = vpop.xlane.xlu2 %417 }
 0x18f   : > { %vm420_vm8 = vcmp.le.f32.partialorder %v412_v35, %v418_v45 }
 0x190   : > { %v440_v46 = vsel %vm420_vm8, 3e+38, %v412_v35  ;;  %v626_v50 = vsel %vm420_vm8, 1.0, %v691_v37 }
 0x191   : > { %v444_v47 = vsel %vm385_vm3, %v440_v46, inf  ;;  %v428_v51 = vsel %vm385_vm3, %v626_v50, 0.0 }
 0x192   : > { %445 = vmin.xlane.f32.xlu1 %v444_v47 }
 0x196   : > { %v400_v52 = vpop.xlane.xlu2 %399 }
 0x197   : > { %vm431_vm9 = vcmp.lt.f32.partialorder %v400_v52, 4.0 }
 0x198   : > { %v433_v59 = vsel %vm431_vm9, %v415_v40, %v388_v31 }
 0x19a   : > { %402 = vadd.xlane.f32.xlu1 %v401_v49 }
 0x1a2   : > { %429 = vadd.xlane.f32.xlu1 %v428_v51 }
 0x1fd   : > { %v443_v53 = vpop.xlane.xlu0 %442  ;;  %v427_v54 = vpop.xlane.xlu2 %426 }
 0x1fe   : > { %vm447_vm10 = vcmp.le.f32.partialorder %v439_v41, %v443_v53  ;;  %v435_v55 = vsel %vm431_vm9, %v427_v54, 0.0 }
 0x1ff   : > { %v437_v56 = vadd.f32 %v435_v55, %v400_v52  ;;  %v627_v57 = vsel %vm447_vm10, 1.0, %v691_v37  ;;  %v467_v62 = vsel %vm447_vm10, 3e+38, %v439_v41 }
 0x200   : > { %v453_v58 = vsel %vm385_vm3, %v627_v57, 0.0  ;;  %v469_v0 = vsel %vm385_vm3, %v467_v62, inf }
 0x201   : > { %454 = vadd.xlane.f32.xlu2 %v453_v58  ;;  %vm459_vm11 = vcmp.lt.f32.partialorder %v437_v56, 4.0 }
 0x202   : > { %v461_v60 = vsel %vm459_vm11, %v443_v53, %v433_v59 }
 0x205   : > { %v446_v61 = vpop.xlane.xlu1 %445 }
 0x206   : > { %vm448_vm12 = vcmp.le.f32.partialorder %v440_v46, %v446_v61 }
 0x207   : > { %v628_v63 = vsel %vm448_vm12, 1.0, %v691_v37  ;;  %v468_v2 = vsel %vm448_vm12, 3e+38, %v440_v46 }
 0x208   : > { %v456_v1 = vsel %vm385_vm3, %v628_v63, 0.0  ;;  %v472_v3 = vsel %vm385_vm3, %v468_v2, inf }
 0x209   : > { %470 = vmin.xlane.f32.xlu2 %v469_v0  ;;  %457 = vadd.xlane.f32.xlu1 %v456_v1 }
 0x20d   : > { %v403_v4 = vpop.xlane.xlu1 %402 }
 0x20e   : > { %vm432_vm13 = vcmp.lt.f32.partialorder %v403_v4, 4.0 }
 0x20f   : > { %v434_v16 = vsel %vm432_vm13, %v418_v45, %v754_v34 }
 0x211   : > { %473 = vmin.xlane.f32.xlu1 %v472_v3 }
 0x215   : > { %v430_v5 = vpop.xlane.xlu1 %429 }
 0x216   : > { %v436_v7 = vsel %vm432_vm13, %v430_v5, 0.0 }
 0x217   : > { %v438_v9 = vadd.f32 %v436_v7, %v403_v4 }
 0x219   : > { %vm460_vm0 = vcmp.lt.f32.partialorder %v438_v9, 4.0 }
 0x21a   : > { %v462_v17 = vsel %vm460_vm0, %v446_v61, %v434_v16 }
 0x274   : > { %v455_v6 = vpop.xlane.xlu2 %454 }
 0x275   : > { %v463_v8 = vsel %vm459_vm11, %v455_v6, 0.0 }
 0x276   : > { %v465_v10 = vadd.f32 %v463_v8, %v437_v56 }
 0x278   : > { %vm475_vm15 = vcmp.lt.f32.partialorder %v465_v10, 4.0 }
 0x27c   : > { %v471_v11 = vpop.xlane.xlu2 %470  ;;  %v458_v12 = vpop.xlane.xlu1 %457 }
 0x27d   : > { %v477_v13 = vsel %vm475_vm15, %v471_v11, %v461_v60  ;;  %v464_v14 = vsel %vm460_vm0, %v458_v12, 0.0 }
 0x27e   : > { %480 = vst.msk [vmem:[%s305_s9] sm:$0xff] %vm479_vm14, %v477_v13  ;;  %v466_v15 = vadd.f32 %v464_v14, %v438_v9 }
 0x280   : > { %vm476_vm1 = vcmp.lt.f32.partialorder %v466_v15, 4.0 }
 0x284   : > { %v474_v18 = vpop.xlane.xlu1 %473 }
 0x285   : > { %v478_v19 = vsel %vm476_vm1, %v474_v18, %v462_v17 }
 0x286   : > { %481 = vst.msk [vmem:[%s305_s9 + $0x8] sm:$0xff] %vm479_vm14, %v478_v19 }
 0x287 PF: > { %s14_s17 = sadd.s32 1, %s688_s17   ;;  %s795_s15 = smov %s684_s16 }
 0x288   : > { %p11_p5 = scmp.ge.s32.totalorder %s14_s17, 6   ;;  %s796_s16 = smov %s798_s18 }
 0x28a   :  { %13 = sbr.rel (!%p11_p5) target bundleno = 2 (0x2), region = 75 }

// kernel: capsule_net_forward.8
= control target key start
LH: loop header
LB: loop body
LE: loop exit
PB: predicated region body
PF: predicated region fallthrough
CT: control target
= control target key end

     0   :  { %vm378_vm0 = vcmask 1043456   ;;  %vm341_vm1 = vcmask 523264   ;;  %vm371_vm2 = vcmask 31744   ;;  %vm639_vm9 = vcmask 261120   ;;  %s3316_s6 = inlined_call_operand.vmem [shape: f32[512,64], index: 6, kind: input, shape index: {}]   ;;  %s3317_s0 = inlined_call_operand.vmem [shape: bf16[16,512], index: 0, kind: input, shape index: {}]   ;;  %s3318_s7 = inlined_call_operand.vmem [shape: f32[64,4], index: 7, kind: input, shape index: {}]   ;;  %s3319_s8 = inlined_call_operand.vmem [shape: f32[4,64], index: 8, kind: input, shape index: {}]   ;;  %s3320_s1 = inlined_call_operand.vmem [shape: f32[16,64], index: 1, kind: input, shape index: {}]   ;;  %s3321_s2 = inlined_call_operand.vmem [shape: f32[64,512], index: 2, kind: input, shape index: {}]   ;;  %s3322_s3 = inlined_call_operand.vmem [shape: f32[512,32], index: 3, kind: input, shape index: {}]   ;;  %s3323_s4 = inlined_call_operand.vmem [shape: f32[32,32], index: 4, kind: input, shape index: {}]   ;;  %s3324_s5 = inlined_call_operand.vmem [shape: f32[32,512], index: 5, kind: input, shape index: {}]   ;;  %s3325_s9 = inlined_call_operand.vmem [shape: f32[16,64], index: 9, kind: output, shape index: {}]  }
   0x1   :  { %v169_v0 = vld [vmem:[%s3316_s6 + $0x78] sm:$0xff]  ;;  %v168_v4 = vld [vmem:[%s3316_s6 + $0x70] sm:$0xff]  ;;  %v167_v8 = vld [vmem:[%s3316_s6 + $0x68] sm:$0xff] }
   0x2   :  { %v185_v1 = vld [vmem:[%s3316_s6 + $0xf8] sm:$0xff]  ;;  %247 = vmatpush.msra.mxu0 %v169_v0  ;;  %v184_v5 = vld [vmem:[%s3316_s6 + $0xf0] sm:$0xff]  ;;  %v183_v9 = vld [vmem:[%s3316_s6 + $0xe8] sm:$0xff] }
   0x3   :  { %v201_v2 = vld [vmem:[%s3316_s6 + $0x178] sm:$0xff]  ;;  %269 = vmatpush.msra.mxu1 %v185_v1  ;;  %v200_v6 = vld [vmem:[%s3316_s6 + $0x170] sm:$0xff]  ;;  %v199_v10 = vld [vmem:[%s3316_s6 + $0x168] sm:$0xff] }
   0x4   :  { %v217_v3 = vld [vmem:[%s3316_s6 + $0x1f8] sm:$0xff]  ;;  %291 = vmatpush.msra.mxu2 %v201_v2  ;;  %v216_v7 = vld [vmem:[%s3316_s6 + $0x1f0] sm:$0xff]  ;;  %248 = vmatpush.msra.mxu0 %v168_v4  ;;  %v215_v11 = vld [vmem:[%s3316_s6 + $0x1e8] sm:$0xff] }
   0x5   :  { %313 = vmatpush.msra.mxu3 %v217_v3  ;;  %270 = vmatpush.msra.mxu1 %v184_v5  ;;  %v166_v12 = vld [vmem:[%s3316_s6 + $0x60] sm:$0xff]  ;;  %v165_v16 = vld [vmem:[%s3316_s6 + $0x58] sm:$0xff]  ;;  %v164_v20 = vld [vmem:[%s3316_s6 + $0x50] sm:$0xff] }
   0x6   :  { %292 = vmatpush.msra.mxu2 %v200_v6  ;;  %v182_v13 = vld [vmem:[%s3316_s6 + $0xe0] sm:$0xff]  ;;  %249 = vmatpush.msra.mxu0 %v167_v8  ;;  %v181_v17 = vld [vmem:[%s3316_s6 + $0xd8] sm:$0xff]  ;;  %v1670_v21 = vld [vmem:[%s3316_s6 + $0xd0] sm:$0xff] }
   0x7   :  { %314 = vmatpush.msra.mxu3 %v216_v7  ;;  %271 = vmatpush.msra.mxu1 %v183_v9  ;;  %v198_v14 = vld [vmem:[%s3316_s6 + $0x160] sm:$0xff]  ;;  %v197_v18 = vld [vmem:[%s3316_s6 + $0x158] sm:$0xff]  ;;  %v1675_v22 = vld [vmem:[%s3316_s6 + $0x150] sm:$0xff] }
   0x8   :  { %v214_v15 = vld [vmem:[%s3316_s6 + $0x1e0] sm:$0xff]  ;;  %293 = vmatpush.msra.mxu2 %v199_v10  ;;  %250 = vmatpush.msra.mxu0 %v166_v12  ;;  %v213_v19 = vld [vmem:[%s3316_s6 + $0x1d8] sm:$0xff]  ;;  %v1680_v23 = vld [vmem:[%s3316_s6 + $0x1d0] sm:$0xff] }
   0x9   :  { %315 = vmatpush.msra.mxu3 %v215_v11  ;;  %272 = vmatpush.msra.mxu1 %v182_v13  ;;  %v1685_v24 = vld [vmem:[%s3316_s6 + $0x48] sm:$0xff]  ;;  %v1708_v28 = vld [vmem:[%s3316_s6 + $0x40] sm:$0xff]  ;;  %v1732_v32 = vld [vmem:[%s3316_s6 + $0x38] sm:$0xff] }
   0xa   :  { %294 = vmatpush.msra.mxu2 %v198_v14  ;;  %251 = vmatpush.msra.mxu0 %v165_v16  ;;  %v1690_v25 = vld [vmem:[%s3316_s6 + $0xc8] sm:$0xff]  ;;  %v1713_v29 = vld [vmem:[%s3316_s6 + $0xc0] sm:$0xff]  ;;  %v1737_v33 = vld [vmem:[%s3316_s6 + $0xb8] sm:$0xff] }
   0xb   :  { %316 = vmatpush.msra.mxu3 %v214_v15  ;;  %273 = vmatpush.msra.mxu1 %v181_v17  ;;  %v1696_v26 = vld [vmem:[%s3316_s6 + $0x148] sm:$0xff]  ;;  %v1720_v30 = vld [vmem:[%s3316_s6 + $0x140] sm:$0xff]  ;;  %v1744_v34 = vld [vmem:[%s3316_s6 + $0x138] sm:$0xff] }
   0xc   :  { %295 = vmatpush.msra.mxu2 %v197_v18  ;;  %252 = vmatpush.msra.mxu0 %v164_v20  ;;  %v1701_v27 = vld [vmem:[%s3316_s6 + $0x1c8] sm:$0xff]  ;;  %v1725_v31 = vld [vmem:[%s3316_s6 + $0x1c0] sm:$0xff]  ;;  %v1749_v35 = vld [vmem:[%s3316_s6 + $0x1b8] sm:$0xff] }
   0xd   :  { %317 = vmatpush.msra.mxu3 %v213_v19  ;;  %274 = vmatpush.msra.mxu1 %v1670_v21  ;;  %v1756_v36 = vld [vmem:[%s3316_s6 + $0x30] sm:$0xff]  ;;  %v1780_v40 = vld [vmem:[%s3316_s6 + $0x28] sm:$0xff]  ;;  %v1804_v44 = vld [vmem:[%s3316_s6 + $0x20] sm:$0xff] }
   0xe   :  { %296 = vmatpush.msra.mxu2 %v1675_v22  ;;  %253 = vmatpush.msra.mxu0 %v1685_v24  ;;  %v1761_v37 = vld [vmem:[%s3316_s6 + $0xb0] sm:$0xff]  ;;  %v1785_v41 = vld [vmem:[%s3316_s6 + $0xa8] sm:$0xff]  ;;  %v1809_v45 = vld [vmem:[%s3316_s6 + $0xa0] sm:$0xff] }
   0xf   :  { %318 = vmatpush.msra.mxu3 %v1680_v23  ;;  %275 = vmatpush.msra.mxu1 %v1690_v25  ;;  %v1768_v38 = vld [vmem:[%s3316_s6 + $0x130] sm:$0xff]  ;;  %v1792_v42 = vld [vmem:[%s3316_s6 + $0x128] sm:$0xff]  ;;  %v1816_v46 = vld [vmem:[%s3316_s6 + $0x120] sm:$0xff] }
  0x10   :  { %297 = vmatpush.msra.mxu2 %v1696_v26  ;;  %254 = vmatpush.msra.mxu0 %v1708_v28  ;;  %v1773_v39 = vld [vmem:[%s3316_s6 + $0x1b0] sm:$0xff]  ;;  %v1797_v43 = vld [vmem:[%s3316_s6 + $0x1a8] sm:$0xff]  ;;  %v1821_v47 = vld [vmem:[%s3316_s6 + $0x1a0] sm:$0xff] }
  0x11   :  { %319 = vmatpush.msra.mxu3 %v1701_v27  ;;  %276 = vmatpush.msra.mxu1 %v1713_v29  ;;  %v1826_v48 = vld [vmem:[%s3316_s6 + $0x18] sm:$0xff]  ;;  %v1850_v52 = vld [vmem:[%s3316_s6 + $0x10] sm:$0xff]  ;;  %v1872_v56 = vld [vmem:[%s3316_s6 + $0x8] sm:$0xff] }
  0x12   :  { %298 = vmatpush.msra.mxu2 %v1720_v30  ;;  %255 = vmatpush.msra.mxu0 %v1732_v32  ;;  %v1833_v49 = vld [vmem:[%s3316_s6 + $0x98] sm:$0xff]  ;;  %v1855_v53 = vld [vmem:[%s3316_s6 + $0x90] sm:$0xff]  ;;  %v1877_v57 = vld [vmem:[%s3316_s6 + $0x88] sm:$0xff] }
  0x13   :  { %320 = vmatpush.msra.mxu3 %v1725_v31  ;;  %277 = vmatpush.msra.mxu1 %v1737_v33  ;;  %v1838_v50 = vld [vmem:[%s3316_s6 + $0x118] sm:$0xff]  ;;  %v1860_v54 = vld [vmem:[%s3316_s6 + $0x110] sm:$0xff]  ;;  %v1884_v58 = vld [vmem:[%s3316_s6 + $0x108] sm:$0xff] }
  0x14   :  { %299 = vmatpush.msra.mxu2 %v1744_v34  ;;  %256 = vmatpush.msra.mxu0 %v1756_v36  ;;  %v1843_v51 = vld [vmem:[%s3316_s6 + $0x198] sm:$0xff]  ;;  %v1867_v55 = vld [vmem:[%s3316_s6 + $0x190] sm:$0xff]  ;;  %v1889_v59 = vld [vmem:[%s3316_s6 + $0x188] sm:$0xff] }
  0x15   :  { %321 = vmatpush.msra.mxu3 %v1749_v35  ;;  %278 = vmatpush.msra.mxu1 %v1761_v37  ;;  %v1400_v60 = vld [vmem:[%s3317_s0] sm:$0xf]  ;;  %v1462_v61 = vld [vmem:[%s3317_s0 + $0xc] sm:$0xf0]  ;;  %v1460_v62 = vld [vmem:[%s3317_s0 + $0x4] sm:$0xf] }
  0x16   :  { %300 = vmatpush.msra.mxu2 %v1768_v38  ;;  %257 = vmatpush.msra.mxu0 %v1780_v40  ;;  %v1402_v63 = vld [vmem:[%s3317_s0 + $0x10] sm:$0xf0]  ;;  %v1408_v0 = vld [vmem:[%s3317_s0 + $0x8] sm:$0xf]  ;;  %v1463_v1 = vld [vmem:[%s3317_s0 + $0x14] sm:$0xf0]  ;;  %v1401_v8 = vor.u32 %v1462_v61, %v1400_v60 }
  0x17   :  { %322 = vmatpush.msra.mxu3 %v1773_v39  ;;  %279 = vmatpush.msra.mxu1 %v1785_v41  ;;  %v1461_v2 = vld [vmem:[%s3317_s0 + $0xc] sm:$0xf]  ;;  %v1410_v3 = vld [vmem:[%s3317_s0 + $0x18] sm:$0xf0]  ;;  %v1924_v4 = vld [vmem:[%s3316_s6] sm:$0xff]  ;;  %v1405_v9 = vor.u32 %v1460_v62, %v1402_v63  ;;  %v1409_v10 = vor.u32 %v1463_v1, %v1408_v0 }
  0x18   :  { %301 = vmatpush.msra.mxu2 %v1792_v42  ;;  %258 = vmatpush.msra.mxu0 %v1804_v44  ;;  %v1929_v5 = vld [vmem:[%s3316_s6 + $0x80] sm:$0xff]  ;;  %v1413_v11 = vor.u32 %v1461_v2, %v1410_v3  ;;  %v1952_v12 = vld [vmem:[%s3318_s7 + $0x38] sm:$0xff]  ;;  %v1957_v13 = vld [vmem:[%s3318_s7 + $0x30] sm:$0xff] }
  0x19   :  { %323 = vmatpush.msra.mxu3 %v1797_v43  ;;  %280 = vmatpush.msra.mxu1 %v1809_v45  ;;  %v1936_v6 = vld [vmem:[%s3316_s6 + $0x100] sm:$0xff]  ;;  %3468 = vst [vmem:[#allocation2_spill] sm:$0xff] %v1957_v13  ;;  %v1963_v14 = vld [vmem:[%s3318_s7 + $0x28] sm:$0xff]  ;;  %v1976_v16 = vld [vmem:[%s3318_s7 + $0x18] sm:$0xff] }
  0x1a   :  { %302 = vmatpush.msra.mxu2 %v1816_v46  ;;  %259 = vmatpush.msra.mxu0 %v1826_v48  ;;  %v1941_v7 = vld [vmem:[%s3316_s6 + $0x180] sm:$0xff]  ;;  %3469 = vst [vmem:[#allocation3_spill] sm:$0xff] %v1963_v14  ;;  %v1982_v17 = vld [vmem:[%s3318_s7 + $0x10] sm:$0xff]  ;;  %v1988_v18 = vld [vmem:[%s3318_s7 + $0x8] sm:$0xff] }
  0x1b   :  { %324 = vmatpush.msra.mxu3 %v1821_v47  ;;  %281 = vmatpush.msra.mxu1 %v1833_v49  ;;  %v1970_v15 = vld [vmem:[%s3318_s7 + $0x20] sm:$0xff]  ;;  %3471 = vst [vmem:[#allocation5_spill] sm:$0xff] %v1976_v16 }
  0x1c   :  { %303 = vmatpush.msra.mxu2 %v1838_v50  ;;  %260 = vmatpush.msra.mxu0 %v1850_v52  ;;  %3470 = vst [vmem:[#allocation4_spill] sm:$0xff] %v1970_v15  ;;  %v1994_v19 = vld [vmem:[%s3318_s7] sm:$0xff] }
  0x1d   :  { %325 = vmatpush.msra.mxu3 %v1843_v51  ;;  %282 = vmatpush.msra.mxu1 %v1855_v53  ;;  %3472 = vst [vmem:[#allocation6_spill] sm:$0xff] %v1982_v17  ;;  %v2000_v20 = vld [vmem:[%s3319_s8] sm:$0xf] }
  0x1e   :  { %304 = vmatpush.msra.mxu2 %v1860_v54  ;;  %261 = vmatpush.msra.mxu0 %v1872_v56  ;;  %3473 = vst [vmem:[#allocation7_spill] sm:$0xff] %v1988_v18  ;;  %v36_v3 = vld [vmem:[%s3320_s1] sm:$0xff] }
  0x1f   :  { %326 = vmatpush.msra.mxu3 %v1867_v55  ;;  %283 = vmatpush.msra.mxu1 %v1877_v57  ;;  %3474 = vst [vmem:[#allocation8_spill] sm:$0xff] %v1994_v19 }
  0x20   :  { %305 = vmatpush.msra.mxu2 %v1884_v58  ;;  %262 = vmatpush.msra.mxu0 %v1924_v4 }
  0x21   :  { %327 = vmatpush.msra.mxu3 %v1889_v59  ;;  %284 = vmatpush.msra.mxu1 %v1929_v5 }
  0x22   :  { %306 = vmatpush.msra.mxu2 %v1936_v6  ;;  %263 = vmatmul.bf16.vlgmr.msra.gmra.mxu0 %v1401_v8 }
  0x23   :  { %328 = vmatpush.msra.mxu3 %v1941_v7  ;;  %285 = vmatmul.bf16.vlgmr.msra.gmra.mxu1 %v1405_v9 }
  0x24   :  { %307 = vmatmul.bf16.vlgmr.msra.gmra.mxu2 %v1409_v10  ;;  %329 = vmatmul.bf16.vlgmr.msra.gmra.mxu3 %v1413_v11 }
  0x25   :  { %356 = vmatpush.msrb.mxu0 %v1952_v12  ;;  %1416 = vmatpush.msk.msrb.mxu1 %vm378_vm0, %v2000_v20 }
  0x27   :  { %357 = vmatpush.msrb.mxu0 %v1957_v13 }
  0x29   :  { %358 = vmatpush.msrb.mxu0 %v1963_v14 }
  0x2b   :  { %359 = vmatpush.msrb.mxu0 %v1970_v15  ;;  %v2269_v15 = vld [vmem:[%s3322_s3 + $0xf0] sm:$0xff] }
  0x2c   :  { %3515 = vst [vmem:[#allocation49_spill] sm:$0xff] %v2269_v15 }
  0x2d   :  { %360 = vmatpush.msrb.mxu0 %v1976_v16 }
  0x2f   :  { %361 = vmatpush.msrb.mxu0 %v1982_v17 }
  0x31   :  { %362 = vmatpush.msrb.mxu0 %v1988_v18 }
  0x33   :  { %363 = vmatpush.msrb.mxu0 %v1994_v19 }
  0x9f   :  { %v264_v60 = vpop.f32.mrf.mxu0 }
  0xa0   :  { %v286_v61 = vpop.f32.mrf.mxu1 }
  0xa1   :  { %v287_v62 = vadd.f32 %v286_v61, %v264_v60 }
  0xa7   :  { %v308_v63 = vpop.f32.mrf.mxu2  ;;  %v330_v0 = vpop.f32.mrf.mxu3 }
  0xa8   :  { %v309_v1 = vadd.f32 %v308_v63, %v287_v62  ;;  %v266_v8 = vpop.f32.mrf.mxu0  ;;  %v288_v9 = vpop.f32.mrf.mxu1  ;;  %v37_v62 = vld [vmem:[%s3320_s1 + $0x8] sm:$0xff] }
  0xa9   :  { %v289_v19 = vadd.f32 %v288_v9, %v266_v8  ;;  %v2049_v8 = vld [vmem:[%s3321_s2 + $0xc0] sm:$0xff]  ;;  %v2054_v9 = vld [vmem:[%s3321_s2 + $0xc8] sm:$0xff] }
  0xaa   :  { %v331_v2 = vadd.f32 %v330_v0, %v309_v1  ;;  %3478 = vst [vmem:[#allocation12_spill] sm:$0xff] %v2049_v8 }
  0xab   :  { %3479 = vst [vmem:[#allocation13_spill] sm:$0xff] %v2054_v9 }
  0xac   :  { %v335_v10 = vmul.f32 0.25, %v331_v2 }
  0xae   :  { %v2007_v11 = vadd.f32 %v335_v10, %v36_v3  ;;  %v2042_v3 = vld [vmem:[%s3321_s2 + $0xf8] sm:$0xff]  ;;  %v2059_v10 = vld [vmem:[%s3321_s2 + $0xd0] sm:$0xff] }
  0xaf   :  { %v310_v18 = vpop.f32.mrf.mxu2  ;;  %v332_v61 = vpop.f32.mrf.mxu3  ;;  %3477 = vst [vmem:[#allocation11_spill] sm:$0xff] %v2042_v3  ;;  %512 = vmatpush.msra.mxu1 %v2042_v3  ;;  %v2150_v3 = vld [vmem:[%s3321_s2 + $0x48] sm:$0xff] }
  0xb0   :  { %v339_v17 = vmul.f32 %v2007_v11, %v2007_v11  ;;  %v311_v60 = vadd.f32 %v310_v18, %v289_v19  ;;  %v2035_v19 = vld [vmem:[%s3321_s2 + $0xf0] sm:$0xff]  ;;  %3480 = vst [vmem:[#allocation14_spill] sm:$0xff] %v2059_v10 }
  0xb1   :  { %3476 = vst [vmem:[#allocation10_spill] sm:$0xff] %v2035_v19  ;;  %489 = vmatpush.msra.mxu0 %v2035_v19  ;;  %v2121_v19 = vld [vmem:[%s3321_s2 + $0x60] sm:$0xff] }
  0xb2   :  { %v333_v16 = vadd.f32 %v332_v61, %v311_v60  ;;  %1414 = vmatmul.msk.f32.vlgmr.msrb.gmra.mxu0 %vm341_vm1, %v339_v17  ;;  %v2025_v17 = vld [vmem:[%s3321_s2 + $0xe0] sm:$0xff]  ;;  %v2066_v60 = vld [vmem:[%s3321_s2 + $0xd8] sm:$0xff]  ;;  %3490 = vst [vmem:[#allocation24_spill] sm:$0xff] %v2121_v19 }
  0xb3   :  { %3475 = vst [vmem:[#allocation9_spill] sm:$0xff] %v2025_v17  ;;  %443 = vmatpush.msrb.mxu2 %v2025_v17  ;;  %490 = vmatpush.msra.mxu0 %v2059_v10  ;;  %v2073_v61 = vld [vmem:[%s3321_s2 + $0xa0] sm:$0xff]  ;;  %v2107_v10 = vld [vmem:[%s3321_s2 + $0x90] sm:$0xff] }
  0xb4   :  { %v336_v63 = vmul.f32 0.25, %v333_v16  ;;  %v2030_v16 = vld [vmem:[%s3321_s2 + $0xe8] sm:$0xff]  ;;  %3481 = vst [vmem:[#allocation15_spill] sm:$0xff] %v2066_v60  ;;  %513 = vmatpush.msra.mxu1 %v2066_v60  ;;  %v2131_v60 = vld [vmem:[%s3321_s2 + $0x70] sm:$0xff]  ;;  %v2478_v17 = vld [vmem:[%s3322_s3 + $0x120] sm:$0xff] }
  0xb5   :  { %466 = vmatpush.msrb.mxu3 %v2030_v16  ;;  %444 = vmatpush.msrb.mxu2 %v2049_v8  ;;  %3482 = vst [vmem:[#allocation16_spill] sm:$0xff] %v2073_v61 }
  0xb6   :  { %v2015_v0 = vadd.f32 %v336_v63, %v37_v62  ;;  %v2078_v62 = vld [vmem:[%s3321_s2 + $0xa8] sm:$0xff]  ;;  %v2083_v63 = vld [vmem:[%s3321_s2 + $0xb0] sm:$0xff]  ;;  %3488 = vst [vmem:[#allocation22_spill] sm:$0xff] %v2107_v10 }
  0xb7   :  { %467 = vmatpush.msrb.mxu3 %v2054_v9  ;;  %3483 = vst [vmem:[#allocation17_spill] sm:$0xff] %v2078_v62  ;;  %445 = vmatpush.msrb.mxu2 %v2073_v61 }
  0xb8   :  { %v340_v1 = vmul.f32 %v2015_v0, %v2015_v0  ;;  %3484 = vst [vmem:[#allocation18_spill] sm:$0xff] %v2083_v63  ;;  %491 = vmatpush.msra.mxu0 %v2083_v63  ;;  %v2114_v63 = vld [vmem:[%s3321_s2 + $0x98] sm:$0xff] }
  0xb9   :  { %468 = vmatpush.msrb.mxu3 %v2078_v62  ;;  %3489 = vst [vmem:[#allocation23_spill] sm:$0xff] %v2114_v63 }
  0xba   :  { %1415 = vmatmul.msk.f32.gmra.mxu0 %vm341_vm1, %v340_v1  ;;  %v2090_v1 = vld [vmem:[%s3321_s2 + $0xb8] sm:$0xff]  ;;  %3492 = vst [vmem:[#allocation26_spill] sm:$0xff] %v2131_v60 }
  0xbb   :  { %3485 = vst [vmem:[#allocation19_spill] sm:$0xff] %v2090_v1  ;;  %514 = vmatpush.msra.mxu1 %v2090_v1  ;;  %492 = vmatpush.msra.mxu0 %v2107_v10  ;;  %v2126_v1 = vld [vmem:[%s3321_s2 + $0x68] sm:$0xff]  ;;  %v2138_v10 = vld [vmem:[%s3321_s2 + $0x78] sm:$0xff] }
  0xbc   :  { %3491 = vst [vmem:[#allocation25_spill] sm:$0xff] %v2126_v1 }
  0xbd   :  { %515 = vmatpush.msra.mxu1 %v2114_v63  ;;  %3493 = vst [vmem:[#allocation27_spill] sm:$0xff] %v2138_v10  ;;  %493 = vmatpush.msra.mxu0 %v2131_v60  ;;  %v2145_v63 = vld [vmem:[%s3321_s2 + $0x40] sm:$0xff]  ;;  %v2162_v60 = vld [vmem:[%s3321_s2 + $0x58] sm:$0xff] }
  0xbe   :  { %3494 = vst [vmem:[#allocation28_spill] sm:$0xff] %v2145_v63 }
  0xbf   :  { %516 = vmatpush.msra.mxu1 %v2138_v10  ;;  %3495 = vst [vmem:[#allocation29_spill] sm:$0xff] %v2150_v3  ;;  %v2169_v10 = vld [vmem:[%s3321_s2 + $0x20] sm:$0xff] }
  0xc0   :  { %3497 = vst [vmem:[#allocation31_spill] sm:$0xff] %v2162_v60 }
  0xc1   :  { %517 = vmatpush.msra.mxu1 %v2162_v60  ;;  %3498 = vst [vmem:[#allocation32_spill] sm:$0xff] %v2169_v10  ;;  %v2193_v60 = vld [vmem:[%s3321_s2] sm:$0xff] }
  0xc2   :  { %3502 = vst [vmem:[#allocation36_spill] sm:$0xff] %v2193_v60 }
  0xc3   :  { %3548 = vst [vmem:[#allocation82_spill] sm:$0xff] %v2478_v17 }
 0x12f   :  { %v365_v2 = vpop.f32.mrf.mxu0 }
 0x130   :  { %1417 = vmatmul.msk.f32.vlgmr.msrb.gmra.mxu1 %vm371_vm2, %v365_v2  ;;  %v2097_v2 = vld [vmem:[%s3321_s2 + $0x80] sm:$0xff] }
 0x131   :  { %3486 = vst [vmem:[#allocation20_spill] sm:$0xff] %v2097_v2  ;;  %446 = vmatpush.msrb.mxu2 %v2097_v2 }
 0x133   :  { %447 = vmatpush.msrb.mxu2 %v2121_v19  ;;  %v2155_v19 = vld [vmem:[%s3321_s2 + $0x50] sm:$0xff] }
 0x134   :  { %3496 = vst [vmem:[#allocation30_spill] sm:$0xff] %v2155_v19  ;;  %494 = vmatpush.msra.mxu0 %v2155_v19  ;;  %v2186_v19 = vld [vmem:[%s3321_s2 + $0x38] sm:$0xff] }
 0x135   :  { %448 = vmatpush.msrb.mxu2 %v2145_v63  ;;  %v2174_v63 = vld [vmem:[%s3321_s2 + $0x28] sm:$0xff]  ;;  %3501 = vst [vmem:[#allocation35_spill] sm:$0xff] %v2186_v19  ;;  %518 = vmatpush.msra.mxu1 %v2186_v19 }
 0x136   :  { %3499 = vst [vmem:[#allocation33_spill] sm:$0xff] %v2174_v63 }
 0x137   :  { %v368_v18 = vpop.f32.mrf.mxu0  ;;  %449 = vmatpush.msrb.mxu2 %v2169_v10  ;;  %v2198_v10 = vld [vmem:[%s3321_s2 + $0x8] sm:$0xff] }
 0x138   :  { %1418 = vmatmul.msk.f32.gmra.mxu1 %vm371_vm2, %v368_v18  ;;  %v2102_v18 = vld [vmem:[%s3321_s2 + $0x88] sm:$0xff]  ;;  %3503 = vst [vmem:[#allocation37_spill] sm:$0xff] %v2198_v10 }
 0x139   :  { %3487 = vst [vmem:[#allocation21_spill] sm:$0xff] %v2102_v18  ;;  %469 = vmatpush.msrb.mxu3 %v2102_v18  ;;  %450 = vmatpush.msrb.mxu2 %v2193_v60  ;;  %v2222_v60 = vld [vmem:[%s3322_s3 + $0x1f8] sm:$0xff]  ;;  %v2246_v18 = vld [vmem:[%s3322_s3 + $0x1e8] sm:$0xff] }
 0x13a   :  { %3507 = vst [vmem:[#allocation41_spill] sm:$0xff] %v2222_v60 }
 0x13b   :  { %470 = vmatpush.msrb.mxu3 %v2126_v1  ;;  %v2217_v1 = vld [vmem:[%s3322_s3 + $0x178] sm:$0xff]  ;;  %3511 = vst [vmem:[#allocation45_spill] sm:$0xff] %v2246_v18 }
 0x13c   :  { %3506 = vst [vmem:[#allocation40_spill] sm:$0xff] %v2217_v1 }
 0x13d   :  { %471 = vmatpush.msrb.mxu3 %v2150_v3  ;;  %v2179_v3 = vld [vmem:[%s3321_s2 + $0x30] sm:$0xff] }
 0x13e   :  { %3500 = vst [vmem:[#allocation34_spill] sm:$0xff] %v2179_v3  ;;  %495 = vmatpush.msra.mxu0 %v2179_v3  ;;  %v2210_v3 = vld [vmem:[%s3321_s2 + $0x18] sm:$0xff] }
 0x13f   :  { %472 = vmatpush.msrb.mxu3 %v2174_v63  ;;  %v2203_v63 = vld [vmem:[%s3321_s2 + $0x10] sm:$0xff]  ;;  %3505 = vst [vmem:[#allocation39_spill] sm:$0xff] %v2210_v3  ;;  %519 = vmatpush.msra.mxu1 %v2210_v3  ;;  %v2241_v3 = vld [vmem:[%s3322_s3 + $0x168] sm:$0xff] }
 0x140   :  { %3504 = vst [vmem:[#allocation38_spill] sm:$0xff] %v2203_v63  ;;  %496 = vmatpush.msra.mxu0 %v2203_v63  ;;  %v2236_v63 = vld [vmem:[%s3322_s3 + $0x1f0] sm:$0xff] }
 0x141   :  { %473 = vmatpush.msrb.mxu3 %v2198_v10  ;;  %v2227_v10 = vld [vmem:[%s3322_s3 + $0x170] sm:$0xff]  ;;  %612 = vmatpush.msrb.mxu1 %v2222_v60  ;;  %3509 = vst [vmem:[#allocation43_spill] sm:$0xff] %v2236_v63  ;;  %v2256_v60 = vld [vmem:[%s3322_s3 + $0xf8] sm:$0xff] }
 0x142   :  { %3508 = vst [vmem:[#allocation42_spill] sm:$0xff] %v2227_v10  ;;  %589 = vmatpush.msrb.mxu0 %v2217_v1  ;;  %v2264_v1 = vld [vmem:[%s3322_s3 + $0x70] sm:$0xff] }
 0x143   :  { %3510 = vst [vmem:[#allocation44_spill] sm:$0xff] %v2241_v3  ;;  %613 = vmatpush.msrb.mxu1 %v2236_v63  ;;  %566 = vmatpush.msra.mxu3 %v2256_v60  ;;  %v2281_v63 = vld [vmem:[%s3322_s3 + $0x1e0] sm:$0xff] }
 0x144   :  { %3513 = vst [vmem:[#allocation47_spill] sm:$0xff] %v2256_v60  ;;  %590 = vmatpush.msrb.mxu0 %v2227_v10  ;;  %v2276_v10 = vld [vmem:[%s3322_s3 + $0x160] sm:$0xff]  ;;  %v2293_v60 = vld [vmem:[%s3322_s3 + $0xe8] sm:$0xff] }
 0x145   :  { %3514 = vst [vmem:[#allocation48_spill] sm:$0xff] %v2264_v1  ;;  %614 = vmatpush.msrb.mxu1 %v2246_v18  ;;  %567 = vmatpush.msra.mxu3 %v2269_v15  ;;  %v2305_v18 = vld [vmem:[%s3322_s3 + $0x1d8] sm:$0xff]  ;;  %v2317_v15 = vld [vmem:[%s3322_s3 + $0xe0] sm:$0xff] }
 0x146   :  { %3516 = vst [vmem:[#allocation50_spill] sm:$0xff] %v2276_v10  ;;  %591 = vmatpush.msrb.mxu0 %v2241_v3  ;;  %v2300_v3 = vld [vmem:[%s3322_s3 + $0x158] sm:$0xff] }
 0x147   :  { %3517 = vst [vmem:[#allocation51_spill] sm:$0xff] %v2281_v63  ;;  %615 = vmatpush.msrb.mxu1 %v2281_v63  ;;  %568 = vmatpush.msra.mxu3 %v2293_v60  ;;  %v2329_v63 = vld [vmem:[%s3322_s3 + $0x1d0] sm:$0xff] }
 0x148   :  { %3519 = vst [vmem:[#allocation53_spill] sm:$0xff] %v2293_v60  ;;  %592 = vmatpush.msrb.mxu0 %v2276_v10  ;;  %v2324_v10 = vld [vmem:[%s3322_s3 + $0x150] sm:$0xff]  ;;  %v2338_v60 = vld [vmem:[%s3322_s3 + $0x58] sm:$0xff] }
 0x149   :  { %3520 = vst [vmem:[#allocation54_spill] sm:$0xff] %v2300_v3  ;;  %616 = vmatpush.msrb.mxu1 %v2305_v18  ;;  %569 = vmatpush.msra.mxu3 %v2317_v15 }
 0x14a   :  { %3521 = vst [vmem:[#allocation55_spill] sm:$0xff] %v2305_v18  ;;  %593 = vmatpush.msrb.mxu0 %v2300_v3  ;;  %v2356_v18 = vld [vmem:[%s3322_s3 + $0x1c8] sm:$0xff]  ;;  %v2364_v3 = vld [vmem:[%s3322_s3 + $0x50] sm:$0xff] }
 0x14b   :  { %3523 = vst [vmem:[#allocation57_spill] sm:$0xff] %v2317_v15  ;;  %617 = vmatpush.msrb.mxu1 %v2329_v63  ;;  %v2369_v15 = vld [vmem:[%s3322_s3 + $0xd0] sm:$0xff] }
 0x14c   :  { %3524 = vst [vmem:[#allocation58_spill] sm:$0xff] %v2324_v10  ;;  %594 = vmatpush.msrb.mxu0 %v2324_v10  ;;  %v2376_v10 = vld [vmem:[%s3322_s3 + $0x140] sm:$0xff] }
 0x14d   :  { %3525 = vst [vmem:[#allocation59_spill] sm:$0xff] %v2329_v63  ;;  %v2381_v63 = vld [vmem:[%s3322_s3 + $0x1c0] sm:$0xff]  ;;  %618 = vmatpush.msrb.mxu1 %v2356_v18 }
 0x14e   :  { %3526 = vst [vmem:[#allocation60_spill] sm:$0xff] %v2338_v60 }
 0x14f   :  { %3529 = vst [vmem:[#allocation63_spill] sm:$0xff] %v2356_v18  ;;  %v2405_v18 = vld [vmem:[%s3322_s3 + $0x1b8] sm:$0xff]  ;;  %619 = vmatpush.msrb.mxu1 %v2381_v63 }
 0x150   :  { %3530 = vst [vmem:[#allocation64_spill] sm:$0xff] %v2364_v3 }
 0x151   :  { %3531 = vst [vmem:[#allocation65_spill] sm:$0xff] %v2369_v15  ;;  %620 = vmatpush.msrb.mxu1 %v2405_v18 }
 0x152   :  { %3532 = vst [vmem:[#allocation66_spill] sm:$0xff] %v2376_v10 }
 0x153   :  { %3533 = vst [vmem:[#allocation67_spill] sm:$0xff] %v2381_v63  ;;  %v2424_v63 = vld [vmem:[%s3322_s3 + $0x130] sm:$0xff] }
 0x154   :  { %3537 = vst [vmem:[#allocation71_spill] sm:$0xff] %v2405_v18  ;;  %v2450_v18 = vld [vmem:[%s3322_s3 + $0x128] sm:$0xff] }
 0x155   :  { %3540 = vst [vmem:[#allocation74_spill] sm:$0xff] %v2424_v63 }
 0x156   :  { %3544 = vst [vmem:[#allocation78_spill] sm:$0xff] %v2450_v18 }
 0x1ad   :  { %v399_v19 = vpop.f32.mrf.mxu1 }
 0x1ae   :  { %v2229_v2 = vmax.f32 %v399_v19, 1e-24  ;;  %v2251_v19 = vld [vmem:[%s3322_s3 + $0x78] sm:$0xff] }
 0x1af   :  { %3512 = vst [vmem:[#allocation46_spill] sm:$0xff] %v2251_v19  ;;  %543 = vmatpush.msra.mxu2 %v2251_v19  ;;  %v2288_v19 = vld [vmem:[%s3322_s3 + $0x68] sm:$0xff] }
 0x1b0   :  { %1464 = vrsqrt.f32 %v2229_v2  ;;  %3518 = vst [vmem:[#allocation52_spill] sm:$0xff] %v2288_v19  ;;  %vm413_vm4 = vweird.f32 %v2229_v2 }
 0x1b1   :  { %544 = vmatpush.msra.mxu2 %v2264_v1  ;;  %v2312_v1 = vld [vmem:[%s3322_s3 + $0x60] sm:$0xff] }
 0x1b2   :  { %3522 = vst [vmem:[#allocation56_spill] sm:$0xff] %v2312_v1 }
 0x1b3   :  { %545 = vmatpush.msra.mxu2 %v2288_v19  ;;  %v2343_v19 = vld [vmem:[%s3322_s3 + $0xd8] sm:$0xff] }
 0x1b4   :  { %3527 = vst [vmem:[#allocation61_spill] sm:$0xff] %v2343_v19  ;;  %570 = vmatpush.msra.mxu3 %v2343_v19  ;;  %v2393_v19 = vld [vmem:[%s3322_s3 + $0xc8] sm:$0xff] }
 0x1b5   :  { %v402_v61 = vpop.f32.mrf.mxu1  ;;  %546 = vmatpush.msra.mxu2 %v2312_v1  ;;  %3535 = vst [vmem:[#allocation69_spill] sm:$0xff] %v2393_v19 }
 0x1b6   :  { %v1465_v62 = vpop.eup %1464  ;;  %v2331_v14 = vmax.f32 %v402_v61, 1e-24  ;;  %v2351_v61 = vld [vmem:[%s3322_s3 + $0x148] sm:$0xff]  ;;  %571 = vmatpush.msra.mxu3 %v2369_v15  ;;  %v2417_v15 = vld [vmem:[%s3322_s3 + $0xc0] sm:$0xff] }
 0x1b7   :  { %v408_v8 = vmul.f32 %v1465_v62, %v2229_v2  ;;  %3528 = vst [vmem:[#allocation62_spill] sm:$0xff] %v2351_v61  ;;  %547 = vmatpush.msra.mxu2 %v2338_v60  ;;  %595 = vmatpush.msrb.mxu0 %v2351_v61  ;;  %v2400_v61 = vld [vmem:[%s3322_s3 + $0x138] sm:$0xff]  ;;  %vm414_vm3 = vweird.f32 %v1465_v62  ;;  %v2468_v2 = vld [vmem:[%s3322_s3 + $0xb0] sm:$0xff] }
 0x1b8   :  { %1466 = vrsqrt.f32 %v2331_v14  ;;  %3536 = vst [vmem:[#allocation70_spill] sm:$0xff] %v2400_v61  ;;  %572 = vmatpush.msra.mxu3 %v2393_v19  ;;  %v2441_v19 = vld [vmem:[%s3322_s3 + $0xb8] sm:$0xff]  ;;  %vm415_vm5 = vmor %vm413_vm4, %vm414_vm3  ;;  %vm423_vm7 = vweird.f32 %v2331_v14 }
 0x1b9   :  { %v409_v1 = vmul.f32 %v1465_v62, %v408_v8  ;;  %v2388_v8 = vld [vmem:[%s3322_s3 + $0x48] sm:$0xff]  ;;  %548 = vmatpush.msra.mxu2 %v2364_v3  ;;  %596 = vmatpush.msrb.mxu0 %v2376_v10  ;;  %3539 = vst [vmem:[#allocation73_spill] sm:$0xff] %v2417_v15  ;;  %v2429_v10 = vld [vmem:[%s3322_s3 + $0x1b0] sm:$0xff] }
 0x1ba   :  { %3534 = vst [vmem:[#allocation68_spill] sm:$0xff] %v2388_v8  ;;  %573 = vmatpush.msra.mxu3 %v2417_v15  ;;  %621 = vmatpush.msrb.mxu1 %v2429_v10 }
 0x1bb   :  { %v410_v60 = vmul.f32 0.5, %v409_v1  ;;  %v2412_v1 = vld [vmem:[%s3322_s3 + $0x40] sm:$0xff]  ;;  %549 = vmatpush.msra.mxu2 %v2388_v8  ;;  %3541 = vst [vmem:[#allocation75_spill] sm:$0xff] %v2429_v10  ;;  %597 = vmatpush.msrb.mxu0 %v2400_v61  ;;  %v2455_v61 = vld [vmem:[%s3322_s3 + $0x1a8] sm:$0xff] }
 0x1bc   :  { %3538 = vst [vmem:[#allocation72_spill] sm:$0xff] %v2412_v1  ;;  %574 = vmatpush.msra.mxu3 %v2441_v19  ;;  %622 = vmatpush.msrb.mxu1 %v2455_v61 }
 0x1bd   :  { %v411_v3 = vsub.f32 1.5, %v410_v60  ;;  %v2436_v60 = vld [vmem:[%s3322_s3 + $0x38] sm:$0xff]  ;;  %3543 = vst [vmem:[#allocation77_spill] sm:$0xff] %v2441_v19  ;;  %550 = vmatpush.msra.mxu2 %v2412_v1  ;;  %598 = vmatpush.msrb.mxu0 %v2424_v63 }
 0x1be   :  { %v1467_v9 = vpop.eup %1466  ;;  %3542 = vst [vmem:[#allocation76_spill] sm:$0xff] %v2436_v60  ;;  %575 = vmatpush.msra.mxu3 %v2468_v2 }
 0x1bf   :  { %v412_v8 = vmul.f32 %v1465_v62, %v411_v3  ;;  %v418_v13 = vmul.f32 %v1467_v9, %v2331_v14  ;;  %3545 = vst [vmem:[#allocation79_spill] sm:$0xff] %v2455_v61  ;;  %v2463_v3 = vld [vmem:[%s3322_s3 + $0x30] sm:$0xff]  ;;  %551 = vmatpush.msra.mxu2 %v2436_v60  ;;  %599 = vmatpush.msrb.mxu0 %v2450_v18  ;;  %vm424_vm6 = vweird.f32 %v1467_v9 }
 0x1c0   :  { %3546 = vst [vmem:[#allocation80_spill] sm:$0xff] %v2463_v3  ;;  %v2524_v61 = vld [vmem:[%s3322_s3 + $0x190] sm:$0xff]  ;;  %vm425_vm8 = vmor %vm423_vm7, %vm424_vm6 }
 0x1c1   :  { %3547 = vst [vmem:[#allocation81_spill] sm:$0xff] %v2468_v2  ;;  %v416_v15 = vsel %vm415_vm5, %v1465_v62, %v412_v8  ;;  %v419_v1 = vmul.f32 %v1467_v9, %v418_v13  ;;  %v2483_v13 = vld [vmem:[%s3322_s3 + $0x1a0] sm:$0xff]  ;;  %552 = vmatpush.msra.mxu2 %v2463_v3  ;;  %v2504_v8 = vld [vmem:[%s3322_s3 + $0x118] sm:$0xff]  ;;  %600 = vmatpush.msrb.mxu0 %v2478_v17  ;;  %v33_v17 = vld [vmem:[%s3317_s0 + $0x8] sm:$0xff] }
 0x1c2   :  { %v427_v63 = vmul.f32 %v416_v15, %v2007_v11  ;;  %3549 = vst [vmem:[#allocation83_spill] sm:$0xff] %v2483_v13  ;;  %v2492_v15 = vld [vmem:[%s3322_s3 + $0x28] sm:$0xff]  ;;  %623 = vmatpush.msrb.mxu1 %v2483_v13  ;;  %v2538_v13 = vld [vmem:[%s3322_s3 + $0x20] sm:$0xff]  ;;  %v2622_v18 = vunpack.c.l.bf16 %v33_v17 }
 0x1c3   :  { %v420_v10 = vmul.f32 0.5, %v419_v1  ;;  %3550 = vst [vmem:[#allocation84_spill] sm:$0xff] %v2492_v15  ;;  %v2497_v11 = vld [vmem:[%s3322_s3 + $0xa8] sm:$0xff]  ;;  %v2509_v1 = vld [vmem:[%s3322_s3 + $0x198] sm:$0xff]  ;;  %553 = vmatpush.msra.mxu2 %v2492_v15  ;;  %601 = vmatpush.msrb.mxu0 %v2504_v8 }
 0x1c4   :  { %1419 = vmatmul.msk.f32.vlgmr.msrb.gmra.mxu2 %vm341_vm1, %v427_v63  ;;  %1421 = vmatmul.msk.f32.vlgmr.msrb.gmra.mxu3 %vm341_vm1, %v427_v63  ;;  %3551 = vst [vmem:[#allocation85_spill] sm:$0xff] %v2497_v11 }
 0x1c5   :  { %v421_v62 = vsub.f32 1.5, %v420_v10  ;;  %1423 = vmatmul.msk.f32.vlgmr.msra.gmra.mxu0 %vm341_vm1, %v427_v63  ;;  %1425 = vmatmul.msk.f32.vlgmr.msra.gmra.mxu1 %vm341_vm1, %v427_v63  ;;  %3552 = vst [vmem:[#allocation86_spill] sm:$0xff] %v2504_v8  ;;  %v2519_v63 = vld [vmem:[%s3322_s3 + $0x110] sm:$0xff]  ;;  %v2615_v8 = vld [vmem:[%s3322_s3 + $0x80] sm:$0xff] }
 0x1c6   :  { %3553 = vst [vmem:[#allocation87_spill] sm:$0xff] %v2509_v1  ;;  %576 = vmatpush.msra.mxu3 %v2497_v11  ;;  %624 = vmatpush.msrb.mxu1 %v2509_v1  ;;  %v2586_v1 = vld [vmem:[%s3322_s3 + $0x10] sm:$0xff] }
 0x1c7   :  { %v422_v10 = vmul.f32 %v1467_v9, %v421_v62  ;;  %3554 = vst [vmem:[#allocation88_spill] sm:$0xff] %v2519_v63  ;;  %602 = vmatpush.msrb.mxu0 %v2519_v63  ;;  %554 = vmatpush.msra.mxu2 %v2538_v13  ;;  %v2610_v63 = vld [vmem:[%s3322_s3] sm:$0xff] }
 0x1c8   :  { %3555 = vst [vmem:[#allocation89_spill] sm:$0xff] %v2524_v61  ;;  %625 = vmatpush.msrb.mxu1 %v2524_v61  ;;  %v2572_v61 = vld [vmem:[%s3322_s3 + $0x100] sm:$0xff] }
 0x1c9   :  { %v426_v14 = vsel %vm425_vm8, %v1467_v9, %v422_v10  ;;  %3556 = vst [vmem:[#allocation90_spill] sm:$0xff] %v2538_v13  ;;  %v2548_v9 = vld [vmem:[%s3322_s3 + $0x108] sm:$0xff] }
 0x1ca   :  { %v428_v62 = vmul.f32 %v426_v14, %v2015_v0  ;;  %v2543_v0 = vld [vmem:[%s3322_s3 + $0xa0] sm:$0xff]  ;;  %3558 = vst [vmem:[#allocation92_spill] sm:$0xff] %v2548_v9  ;;  %v2555_v10 = vld [vmem:[%s3322_s3 + $0x188] sm:$0xff]  ;;  %603 = vmatpush.msrb.mxu0 %v2548_v9  ;;  %v2562_v14 = vld [vmem:[%s3322_s3 + $0x18] sm:$0xff] }
 0x1cb   :  { %3557 = vst [vmem:[#allocation91_spill] sm:$0xff] %v2543_v0  ;;  %577 = vmatpush.msra.mxu3 %v2543_v0  ;;  %626 = vmatpush.msrb.mxu1 %v2555_v10  ;;  %v2591_v9 = vld [vmem:[%s3322_s3 + $0x90] sm:$0xff] }
 0x1cc   :  { %1420 = vmatmul.msk.f32.gmra.mxu2 %vm341_vm1, %v428_v62  ;;  %1422 = vmatmul.msk.f32.gmra.mxu3 %vm341_vm1, %v428_v62  ;;  %3559 = vst [vmem:[#allocation93_spill] sm:$0xff] %v2555_v10  ;;  %v2579_v10 = vld [vmem:[%s3322_s3 + $0x180] sm:$0xff] }
 0x1cd   :  { %1424 = vmatmul.msk.f32.gmra.mxu0 %vm341_vm1, %v428_v62  ;;  %1426 = vmatmul.msk.f32.gmra.mxu1 %vm341_vm1, %v428_v62  ;;  %3560 = vst [vmem:[#allocation94_spill] sm:$0xff] %v2562_v14  ;;  %v2567_v62 = vld [vmem:[%s3322_s3 + $0x98] sm:$0xff] }
 0x1ce   :  { %3561 = vst [vmem:[#allocation95_spill] sm:$0xff] %v2567_v62  ;;  %555 = vmatpush.msra.mxu2 %v2562_v14  ;;  %578 = vmatpush.msra.mxu3 %v2567_v62 }
 0x1cf   :  { %3562 = vst [vmem:[#allocation96_spill] sm:$0xff] %v2572_v61  ;;  %604 = vmatpush.msrb.mxu0 %v2572_v61  ;;  %627 = vmatpush.msrb.mxu1 %v2579_v10  ;;  %v2598_v61 = vld [vmem:[%s3322_s3 + $0x8] sm:$0xff] }
 0x1d0   :  { %3563 = vst [vmem:[#allocation97_spill] sm:$0xff] %v2579_v10  ;;  %556 = vmatpush.msra.mxu2 %v2586_v1  ;;  %579 = vmatpush.msra.mxu3 %v2591_v9  ;;  %v2603_v10 = vld [vmem:[%s3322_s3 + $0x88] sm:$0xff] }
 0x1d1   :  { %3564 = vst [vmem:[#allocation98_spill] sm:$0xff] %v2586_v1  ;;  %v35_v1 = vld [vmem:[%s3317_s0 + $0x18] sm:$0xff] }
 0x1d2   :  { %3565 = vst [vmem:[#allocation99_spill] sm:$0xff] %v2591_v9  ;;  %557 = vmatpush.msra.mxu2 %v2598_v61  ;;  %580 = vmatpush.msra.mxu3 %v2603_v10  ;;  %v32_v9 = vld [vmem:[%s3317_s0] sm:$0xff]  ;;  %v2638_v14 = vunpack.c.l.bf16 %v35_v1  ;;  %v2640_v19 = vunpack.c.h.bf16 %v35_v1 }
 0x1d3   :  { %3566 = vst [vmem:[#allocation100_spill] sm:$0xff] %v2598_v61  ;;  %v2631_v11 = vunpack.c.l.bf16 %v32_v9 }
 0x1d4   :  { %3567 = vst [vmem:[#allocation101_spill] sm:$0xff] %v2603_v10  ;;  %558 = vmatpush.msra.mxu2 %v2610_v63  ;;  %581 = vmatpush.msra.mxu3 %v2615_v8  ;;  %v2624_v10 = vunpack.c.h.bf16 %v33_v17 }
 0x1d5   :  { %3568 = vst [vmem:[#allocation102_spill] sm:$0xff] %v2610_v63 }
 0x1d6   :  { %3569 = vst [vmem:[#allocation103_spill] sm:$0xff] %v2615_v8  ;;  %v2633_v8 = vunpack.c.h.bf16 %v32_v9  ;;  %v34_v9 = vld [vmem:[%s3317_s0 + $0x10] sm:$0xff] }
 0x1d7   :  { %3570 = vst [vmem:[#allocation104_spill] sm:$0xff] %v2622_v18  ;;  %v2649_v3 = vunpack.c.l.bf16 %v34_v9  ;;  %v2651_v1 = vunpack.c.h.bf16 %v34_v9  ;;  %v2692_v9 = vld [vmem:[%s3324_s5 + $0x78] sm:$0xff] }
 0x1d8   :  { %3571 = vst [vmem:[#allocation105_spill] sm:$0xff] %v2624_v10 }
 0x1d9   :  { %3572 = vst [vmem:[#allocation106_spill] sm:$0xff] %v2631_v11 }
 0x1da   :  { %3573 = vst [vmem:[#allocation107_spill] sm:$0xff] %v2638_v14 }
 0x1db   :  { %3574 = vst [vmem:[#allocation108_spill] sm:$0xff] %v2640_v19 }
 0x1dc   :  { %3575 = vst [vmem:[#allocation109_spill] sm:$0xff] %v2649_v3 }
 0x1dd   :  { %3576 = vst [vmem:[#allocation110_spill] sm:$0xff] %v2651_v1 }
 0x1de   :  { %3583 = vst [vmem:[#allocation117_spill] sm:$0xff] %v2692_v9 }
 0x242   :  { %v498_v62 = vpop.f32.mrf.mxu0  ;;  %v521_v0 = vpop.f32.mrf.mxu1 }
 0x243   :  { %v537_v61 = vmul.f32 %v2622_v18, %v498_v62  ;;  %v538_v63 = vmul.f32 %v2624_v10, %v521_v0 }
 0x245   :  { %605 = vmatmul.f32.vlgmr.msrb.gmra.mxu0 %v537_v61  ;;  %628 = vmatmul.f32.vlgmr.msrb.gmra.mxu1 %v538_v63 }
 0x247   :  { %v452_v17 = vpop.f32.mrf.mxu2  ;;  %v475_v2 = vpop.f32.mrf.mxu3 }
 0x248   :  { %v535_v62 = vmul.f32 %v2631_v11, %v452_v17  ;;  %v536_v0 = vmul.f32 %v2633_v8, %v475_v2 }
 0x24a   :  { %v501_v13 = vpop.f32.mrf.mxu0  ;;  %v524_v15 = vpop.f32.mrf.mxu1  ;;  %559 = vmatmul.f32.vlgmr.msra.gmra.mxu2 %v535_v62  ;;  %582 = vmatmul.f32.vlgmr.msra.gmra.mxu3 %v536_v0  ;;  %v2670_v62 = vld [vmem:[%s3323_s4 + $0x8] sm:$0xff]  ;;  %v2687_v0 = vld [vmem:[%s3324_s5 + $0x40] sm:$0xff] }
 0x24b   :  { %v541_v61 = vmul.f32 %v2638_v14, %v501_v13  ;;  %v542_v63 = vmul.f32 %v2640_v19, %v524_v15  ;;  %v2658_v13 = vld [vmem:[%s3323_s4 + $0x18] sm:$0xff]  ;;  %v2663_v15 = vld [vmem:[%s3323_s4 + $0x10] sm:$0xff]  ;;  %3579 = vst [vmem:[#allocation113_spill] sm:$0xff] %v2670_v62 }
 0x24c   :  { %3577 = vst [vmem:[#allocation111_spill] sm:$0xff] %v2658_v13  ;;  %658 = vmatpush.msrb.mxu2 %v2658_v13 }
 0x24d   :  { %608 = vmatmul.f32.gmra.mxu0 %v541_v61  ;;  %631 = vmatmul.f32.gmra.mxu1 %v542_v63  ;;  %3578 = vst [vmem:[#allocation112_spill] sm:$0xff] %v2663_v15 }
 0x24e   :  { %659 = vmatpush.msrb.mxu2 %v2663_v15  ;;  %3582 = vst [vmem:[#allocation116_spill] sm:$0xff] %v2687_v0 }
 0x24f   :  { %v455_v17 = vpop.f32.mrf.mxu2  ;;  %v478_v2 = vpop.f32.mrf.mxu3 }
 0x250   :  { %v539_v60 = vmul.f32 %v2649_v3, %v455_v17  ;;  %v540_v10 = vmul.f32 %v2651_v1, %v478_v2  ;;  %660 = vmatpush.msrb.mxu2 %v2670_v62 }
 0x252   :  { %562 = vmatmul.f32.gmra.mxu2 %v539_v60  ;;  %585 = vmatmul.f32.gmra.mxu3 %v540_v10  ;;  %v2676_v60 = vld [vmem:[%s3323_s4] sm:$0xff] }
 0x253   :  { %3580 = vst [vmem:[#allocation114_spill] sm:$0xff] %v2676_v60  ;;  %661 = vmatpush.msrb.mxu2 %v2676_v60  ;;  %v2682_v10 = vld [vmem:[%s3324_s5 + $0x60] sm:$0xff] }
 0x254   :  { %3581 = vst [vmem:[#allocation115_spill] sm:$0xff] %v2682_v10  ;;  %691 = vmatpush.msrb.mxu3 %v2682_v10 }
 0x255   :  { %760 = vmatpush.msra.mxu2 %v2692_v9 }
 0x256   :  { %692 = vmatpush.msrb.mxu3 %v2687_v0 }
 0x2c2   :  { %v606_v61 = vpop.f32.mrf.mxu0  ;;  %v629_v60 = vpop.f32.mrf.mxu1 }
 0x2ca   :  { %v609_v1 = vpop.f32.mrf.mxu0  ;;  %v632_v18 = vpop.f32.mrf.mxu1 }
 0x2cd   :  { %v560_v63 = vpop.f32.mrf.mxu2  ;;  %v583_v17 = vpop.f32.mrf.mxu3 }
 0x2ce   :  { %v584_v2 = vadd.f32 %v583_v17, %v560_v63  ;;  %v2786_v17 = vld [vmem:[%s3316_s6 + $0xf8] sm:$0xff] }
 0x2cf   :  { %3587 = vst [vmem:[#allocation121_spill] sm:$0xff] %v2786_v17 }
 0x2d0   :  { %v607_v62 = vadd.f32 %v606_v61, %v584_v2  ;;  %v2777_v61 = vld [vmem:[%s3324_s5 + $0x18] sm:$0xff] }
 0x2d1   :  { %3586 = vst [vmem:[#allocation120_spill] sm:$0xff] %v2777_v61  ;;  %v2792_v2 = vld [vmem:[%s3316_s6 + $0x178] sm:$0xff] }
 0x2d2   :  { %v630_v15 = vadd.f32 %v629_v60, %v607_v62  ;;  %v2754_v62 = vld [vmem:[%s3324_s5] sm:$0xff]  ;;  %v2760_v60 = vld [vmem:[%s3324_s5 + $0x30] sm:$0xff] }
 0x2d4   :  { %v635_v13 = vmul.f32 1.442695, %v630_v15  ;;  %v2748_v15 = vld [vmem:[%s3324_s5 + $0x28] sm:$0xff] }
 0x2d5   :  { %v563_v19 = vpop.f32.mrf.mxu2  ;;  %v586_v3 = vpop.f32.mrf.mxu3 }
 0x2d6   :  { %1468 = vpow2.f32 %v635_v13  ;;  %v587_v14 = vadd.f32 %v586_v3, %v563_v19  ;;  %v2708_v19 = vld [vmem:[%s3324_s5 + $0x68] sm:$0xff]  ;;  %v2720_v3 = vld [vmem:[%s3324_s5 + $0x58] sm:$0xff] }
 0x2d7   :  { %714 = vmatpush.msra.mxu0 %v2708_v19  ;;  %3584 = vst [vmem:[#allocation118_spill] sm:$0xff] %v2720_v3  ;;  %761 = vmatpush.msra.mxu2 %v2720_v3  ;;  %v2743_v13 = vld [vmem:[%s3324_s5 + $0x38] sm:$0xff]  ;;  %v2816_v3 = vld [vmem:[%s3316_s6 + $0x170] sm:$0xff] }
 0x2d8   :  { %v610_v11 = vadd.f32 %v609_v1, %v587_v14  ;;  %v2730_v14 = vld [vmem:[%s3324_s5 + $0x50] sm:$0xff]  ;;  %v2737_v1 = vld [vmem:[%s3324_s5 + $0x20] sm:$0xff]  ;;  %3585 = vst [vmem:[#allocation119_spill] sm:$0xff] %v2743_v13 }
 0x2d9   :  { %693 = vmatpush.msrb.mxu3 %v2737_v1  ;;  %762 = vmatpush.msra.mxu2 %v2743_v13  ;;  %v2804_v13 = vld [vmem:[%s3316_s6 + $0x1f8] sm:$0xff]  ;;  %3591 = vst [vmem:[#allocation125_spill] sm:$0xff] %v2816_v3 }
 0x2da   :  { %v633_v10 = vadd.f32 %v632_v18, %v610_v11  ;;  %v2713_v18 = vld [vmem:[%s3324_s5 + $0x70] sm:$0xff]  ;;  %v2725_v11 = vld [vmem:[%s3324_s5 + $0x48] sm:$0xff]  ;;  %3589 = vst [vmem:[#allocation123_spill] sm:$0xff] %v2804_v13 }
 0x2db   :  { %737 = vmatpush.msra.mxu1 %v2713_v18  ;;  %715 = vmatpush.msra.mxu0 %v2725_v11 }
 0x2dc   :  { %v2697_v9 = vpop.eup %1468  ;;  %v637_v0 = vmul.f32 1.442695, %v633_v10  ;;  %v2767_v10 = vld [vmem:[%s3324_s5 + $0x8] sm:$0xff]  ;;  %694 = vmatpush.msrb.mxu3 %v2754_v62  ;;  %763 = vmatpush.msra.mxu2 %v2777_v61  ;;  %v2798_v61 = vld [vmem:[%s3316_s6 + $0x78] sm:$0xff] }
 0x2dd   :  { %1427 = vmatmul.msk.f32.vlgmr.msrb.gmra.mxu2 %vm639_vm9, %v2697_v9  ;;  %738 = vmatpush.msra.mxu1 %v2730_v14  ;;  %3588 = vst [vmem:[#allocation122_spill] sm:$0xff] %v2798_v61 }
 0x2de   :  { %1470 = vpow2.f32 %v637_v0  ;;  %716 = vmatpush.msra.mxu0 %v2748_v15  ;;  %v2772_v0 = vld [vmem:[%s3324_s5 + $0x10] sm:$0xff]  ;;  %779 = vmatpush.msra.mxu3 %v2798_v61 }
 0x2df   :  { %739 = vmatpush.msra.mxu1 %v2760_v60  ;;  %848 = vmatpush.msrb.mxu2 %v2804_v13  ;;  %v2822_v61 = vld [vmem:[%s3316_s6 + $0x70] sm:$0xff] }
 0x2e0   :  { %717 = vmatpush.msra.mxu0 %v2767_v10  ;;  %3592 = vst [vmem:[#allocation126_spill] sm:$0xff] %v2822_v61  ;;  %780 = vmatpush.msra.mxu3 %v2822_v61  ;;  %v2828_v13 = vld [vmem:[%s3316_s6 + $0x1f0] sm:$0xff]  ;;  %v2846_v61 = vld [vmem:[%s3316_s6 + $0x68] sm:$0xff] }
 0x2e1   :  { %740 = vmatpush.msra.mxu1 %v2772_v0  ;;  %3593 = vst [vmem:[#allocation127_spill] sm:$0xff] %v2828_v13  ;;  %849 = vmatpush.msrb.mxu2 %v2828_v13  ;;  %v2852_v13 = vld [vmem:[%s3316_s6 + $0x1e8] sm:$0xff] }
 0x2e2   :  { %802 = vmatpush.msrb.mxu0 %v2786_v17  ;;  %v2810_v17 = vld [vmem:[%s3316_s6 + $0xf0] sm:$0xff]  ;;  %3596 = vst [vmem:[#allocation130_spill] sm:$0xff] %v2846_v61  ;;  %781 = vmatpush.msra.mxu3 %v2846_v61  ;;  %v2870_v61 = vld [vmem:[%s3316_s6 + $0x60] sm:$0xff] }
 0x2e3   :  { %825 = vmatpush.msrb.mxu1 %v2792_v2  ;;  %3590 = vst [vmem:[#allocation124_spill] sm:$0xff] %v2810_v17  ;;  %850 = vmatpush.msrb.mxu2 %v2852_v13 }
 0x2e4   :  { %v2701_v63 = vpop.eup %1470  ;;  %803 = vmatpush.msrb.mxu0 %v2810_v17  ;;  %v2834_v17 = vld [vmem:[%s3316_s6 + $0xe8] sm:$0xff]  ;;  %3597 = vst [vmem:[#allocation131_spill] sm:$0xff] %v2852_v13  ;;  %782 = vmatpush.msra.mxu3 %v2870_v61  ;;  %v2876_v13 = vld [vmem:[%s3316_s6 + $0x1e0] sm:$0xff] }
 0x2e5   :  { %1428 = vmatmul.msk.f32.gmra.mxu2 %vm639_vm9, %v2701_v63  ;;  %826 = vmatpush.msrb.mxu1 %v2816_v3  ;;  %3594 = vst [vmem:[#allocation128_spill] sm:$0xff] %v2834_v17  ;;  %v2840_v3 = vld [vmem:[%s3316_s6 + $0x168] sm:$0xff] }
 0x2e6   :  { %804 = vmatpush.msrb.mxu0 %v2834_v17  ;;  %3595 = vst [vmem:[#allocation129_spill] sm:$0xff] %v2840_v3  ;;  %v2858_v17 = vld [vmem:[%s3316_s6 + $0xe0] sm:$0xff]  ;;  %851 = vmatpush.msrb.mxu2 %v2876_v13 }
 0x2e7   :  { %827 = vmatpush.msrb.mxu1 %v2840_v3  ;;  %3598 = vst [vmem:[#allocation132_spill] sm:$0xff] %v2858_v17  ;;  %v2864_v3 = vld [vmem:[%s3316_s6 + $0x160] sm:$0xff] }
 0x2e8   :  { %805 = vmatpush.msrb.mxu0 %v2858_v17  ;;  %3599 = vst [vmem:[#allocation133_spill] sm:$0xff] %v2864_v3  ;;  %v2882_v17 = vld [vmem:[%s3316_s6 + $0xd8] sm:$0xff] }
 0x2e9   :  { %828 = vmatpush.msrb.mxu1 %v2864_v3  ;;  %3600 = vst [vmem:[#allocation134_spill] sm:$0xff] %v2870_v61  ;;  %v2888_v3 = vld [vmem:[%s3316_s6 + $0x158] sm:$0xff] }
 0x2ea   :  { %3601 = vst [vmem:[#allocation135_spill] sm:$0xff] %v2876_v13  ;;  %806 = vmatpush.msrb.mxu0 %v2882_v17  ;;  %v2894_v61 = vld [vmem:[%s3316_s6 + $0x58] sm:$0xff] }
 0x2eb   :  { %3602 = vst [vmem:[#allocation136_spill] sm:$0xff] %v2882_v17  ;;  %829 = vmatpush.msrb.mxu1 %v2888_v3  ;;  %783 = vmatpush.msra.mxu3 %v2894_v61  ;;  %v2900_v13 = vld [vmem:[%s3316_s6 + $0x1d8] sm:$0xff]  ;;  %v2908_v17 = vld [vmem:[%s3316_s6 + $0x50] sm:$0xff] }
 0x2ec   :  { %852 = vmatpush.msrb.mxu2 %v2900_v13  ;;  %807 = vmatpush.msrb.mxu0 %v1670_v21 }
 0x2ed   :  { %830 = vmatpush.msrb.mxu1 %v1675_v22  ;;  %784 = vmatpush.msra.mxu3 %v2908_v17 }
 0x2ee   :  { %853 = vmatpush.msrb.mxu2 %v1680_v23  ;;  %808 = vmatpush.msrb.mxu0 %v1690_v25 }
 0x2ef   :  { %831 = vmatpush.msrb.mxu1 %v1696_v26  ;;  %785 = vmatpush.msra.mxu3 %v1685_v24  ;;  %v3603_v26 = vld [vmem:[#allocation9_spill] sm:$0xff] }
 0x2f0   :  { %854 = vmatpush.msrb.mxu2 %v1701_v27  ;;  %809 = vmatpush.msrb.mxu0 %v1713_v29  ;;  %v3605_v29 = vld [vmem:[#allocation13_spill] sm:$0xff] }
 0x2f1   :  { %832 = vmatpush.msrb.mxu1 %v1720_v30  ;;  %786 = vmatpush.msra.mxu3 %v1708_v28  ;;  %v3604_v28 = vld [vmem:[#allocation2_spill] sm:$0xff]  ;;  %v3606_v30 = vld [vmem:[#allocation12_spill] sm:$0xff] }
 0x2f2   :  { %855 = vmatpush.msrb.mxu2 %v1725_v31  ;;  %810 = vmatpush.msrb.mxu0 %v1737_v33  ;;  %v3607_v31 = vld [vmem:[#allocation3_spill] sm:$0xff]  ;;  %v3609_v33 = vld [vmem:[#allocation16_spill] sm:$0xff] }
 0x2f3   :  { %833 = vmatpush.msrb.mxu1 %v1744_v34  ;;  %787 = vmatpush.msra.mxu3 %v1732_v32  ;;  %v3608_v32 = vld [vmem:[#allocation17_spill] sm:$0xff]  ;;  %v3610_v34 = vld [vmem:[#allocation4_spill] sm:$0xff] }
 0x2f4   :  { %856 = vmatpush.msrb.mxu2 %v1749_v35  ;;  %811 = vmatpush.msrb.mxu0 %v1761_v37  ;;  %v3611_v35 = vld [vmem:[#allocation21_spill] sm:$0xff] }
 0x2f5   :  { %834 = vmatpush.msrb.mxu1 %v1768_v38  ;;  %788 = vmatpush.msra.mxu3 %v1756_v36  ;;  %v3612_v36 = vld [vmem:[#allocation20_spill] sm:$0xff]  ;;  %v3613_v37 = vld [vmem:[#allocation5_spill] sm:$0xff] }
 0x2f6   :  { %857 = vmatpush.msrb.mxu2 %v1773_v39  ;;  %812 = vmatpush.msrb.mxu0 %v1785_v41  ;;  %v3614_v38 = vld [vmem:[#allocation25_spill] sm:$0xff]  ;;  %v3615_v39 = vld [vmem:[#allocation24_spill] sm:$0xff] }
 0x2f7   :  { %835 = vmatpush.msrb.mxu1 %v1792_v42  ;;  %789 = vmatpush.msra.mxu3 %v1780_v40  ;;  %v3616_v40 = vld [vmem:[#allocation6_spill] sm:$0xff]  ;;  %v3617_v41 = vld [vmem:[#allocation29_spill] sm:$0xff]  ;;  %v3618_v42 = vld [vmem:[#allocation28_spill] sm:$0xff] }
 0x2f8   :  { %858 = vmatpush.msrb.mxu2 %v1797_v43  ;;  %813 = vmatpush.msrb.mxu0 %v1809_v45  ;;  %v3619_v43 = vld [vmem:[#allocation7_spill] sm:$0xff]  ;;  %v3621_v45 = vld [vmem:[#allocation32_spill] sm:$0xff] }
 0x2f9   :  { %836 = vmatpush.msrb.mxu1 %v1816_v46  ;;  %790 = vmatpush.msra.mxu3 %v1804_v44  ;;  %v3620_v44 = vld [vmem:[#allocation33_spill] sm:$0xff]  ;;  %v3622_v46 = vld [vmem:[#allocation8_spill] sm:$0xff] }
 0x2fa   :  { %859 = vmatpush.msrb.mxu2 %v1821_v47  ;;  %814 = vmatpush.msrb.mxu0 %v1833_v49  ;;  %v3623_v47 = vld [vmem:[#allocation37_spill] sm:$0xff] }
 0x2fb   :  { %837 = vmatpush.msrb.mxu1 %v1838_v50  ;;  %791 = vmatpush.msra.mxu3 %v1826_v48  ;;  %v3624_v48 = vld [vmem:[#allocation36_spill] sm:$0xff] }
 0x2fc   :  { %860 = vmatpush.msrb.mxu2 %v1843_v51  ;;  %815 = vmatpush.msrb.mxu0 %v1855_v53 }
 0x2fd   :  { %838 = vmatpush.msrb.mxu1 %v1860_v54  ;;  %792 = vmatpush.msra.mxu3 %v1850_v52  ;;  %v3625_v52 = vld [vmem:[#allocation104_spill] sm:$0xff]  ;;  %v3626_v54 = vld [vmem:[#allocation11_spill] sm:$0xff] }
 0x2fe   :  { %861 = vmatpush.msrb.mxu2 %v1867_v55  ;;  %816 = vmatpush.msrb.mxu0 %v1877_v57  ;;  %v3627_v55 = vld [vmem:[#allocation46_spill] sm:$0xff]  ;;  %v3628_v57 = vld [vmem:[#allocation15_spill] sm:$0xff] }
 0x2ff   :  { %839 = vmatpush.msrb.mxu1 %v1884_v58  ;;  %793 = vmatpush.msra.mxu3 %v1872_v56  ;;  %v3629_v58 = vld [vmem:[#allocation106_spill] sm:$0xff] }
 0x300   :  { %862 = vmatpush.msrb.mxu2 %v1889_v59  ;;  %817 = vmatpush.msrb.mxu0 %v1929_v5  ;;  %v3630_v5 = vld [vmem:[#allocation48_spill] sm:$0xff] }
 0x301   :  { %840 = vmatpush.msrb.mxu1 %v1936_v6  ;;  %794 = vmatpush.msra.mxu3 %v1924_v4  ;;  %v3631_v6 = vld [vmem:[#allocation105_spill] sm:$0xff] }
 0x302   :  { %863 = vmatpush.msrb.mxu2 %v1941_v7 }
 0x360   :  { %v663_v21 = vpop.f32.mrf.mxu2 }
 0x361   :  { %1472 = vrcp.f32 %v663_v21  ;;  %v3634_v21 = vld [vmem:[#allocation52_spill] sm:$0xff] }
 0x367   :  { %v1473_v22 = vpop.eup %1472 }
 0x368   :  { %v671_v23 = vmul.f32 %v1473_v22, %v2697_v9  ;;  %v666_v24 = vpop.f32.mrf.mxu2  ;;  %v3635_v22 = vld [vmem:[#allocation107_spill] sm:$0xff] }
 0x369   :  { %1474 = vrcp.f32 %v666_v24  ;;  %v3636_v24 = vld [vmem:[#allocation10_spill] sm:$0xff] }
 0x36a   :  { %1429 = vmatmul.msk.f32.vlgmr.msrb.gmra.mxu3 %vm639_vm9, %v671_v23  ;;  %1431 = vmatmul.msk.f32.vlgmr.msra.gmra.mxu0 %vm639_vm9, %v671_v23 }
 0x36b   :  { %1433 = vmatmul.msk.f32.vlgmr.msra.gmra.mxu1 %vm639_vm9, %v671_v23  ;;  %1435 = vmatmul.msk.f32.vlgmr.msra.gmra.mxu2 %vm639_vm9, %v671_v23 }
 0x36c   :  { %889 = vmatpush.msrb.mxu3 %v1952_v12  ;;  %1439 = vmatpush.msk.msra.mxu0 %vm378_vm0, %v2000_v20  ;;  %v3632_v20 = vld [vmem:[#allocation19_spill] sm:$0xff] }
 0x36d   :  { %994 = vmatpush.msra.mxu2 %v2030_v16  ;;  %971 = vmatpush.msra.mxu1 %v3603_v26  ;;  %v3633_v16 = vld [vmem:[#allocation110_spill] sm:$0xff] }
 0x36e   :  { %890 = vmatpush.msrb.mxu3 %v3604_v28  ;;  %v3638_v26 = vld [vmem:[#allocation14_spill] sm:$0xff]  ;;  %v3640_v28 = vld [vmem:[#allocation47_spill] sm:$0xff] }
 0x36f   :  { %v1475_v25 = vpop.eup %1474  ;;  %995 = vmatpush.msra.mxu2 %v3605_v29  ;;  %972 = vmatpush.msra.mxu1 %v3606_v30  ;;  %v3641_v30 = vld [vmem:[#allocation18_spill] sm:$0xff] }
 0x370   :  { %v672_v27 = vmul.f32 %v1475_v25, %v2701_v63  ;;  %891 = vmatpush.msrb.mxu3 %v3607_v31  ;;  %v3637_v25 = vld [vmem:[#allocation56_spill] sm:$0xff] }
 0x371   :  { %996 = vmatpush.msra.mxu2 %v3608_v32  ;;  %973 = vmatpush.msra.mxu1 %v3609_v33  ;;  %v3642_v31 = vld [vmem:[#allocation60_spill] sm:$0xff]  ;;  %v3643_v32 = vld [vmem:[#allocation109_spill] sm:$0xff] }
 0x372   :  { %1430 = vmatmul.msk.f32.gmra.mxu3 %vm639_vm9, %v672_v27  ;;  %1432 = vmatmul.msk.f32.gmra.mxu0 %vm639_vm9, %v672_v27 }
 0x373   :  { %1434 = vmatmul.msk.f32.gmra.mxu1 %vm639_vm9, %v672_v27  ;;  %1436 = vmatmul.msk.f32.gmra.mxu2 %vm639_vm9, %v672_v27  ;;  %v3639_v27 = vld [vmem:[#allocation23_spill] sm:$0xff] }
 0x374   :  { %892 = vmatpush.msrb.mxu3 %v3610_v34  ;;  %997 = vmatpush.msra.mxu2 %v3611_v35  ;;  %v3644_v35 = vld [vmem:[#allocation27_spill] sm:$0xff] }
 0x375   :  { %974 = vmatpush.msra.mxu1 %v3612_v36  ;;  %v3645_v36 = vld [vmem:[#allocation49_spill] sm:$0xff] }
 0x376   :  { %893 = vmatpush.msrb.mxu3 %v3613_v37  ;;  %998 = vmatpush.msra.mxu2 %v3614_v38  ;;  %v3646_v37 = vld [vmem:[#allocation108_spill] sm:$0xff] }
 0x377   :  { %975 = vmatpush.msra.mxu1 %v3615_v39  ;;  %v3647_v39 = vld [vmem:[#allocation22_spill] sm:$0xff] }
 0x378   :  { %894 = vmatpush.msrb.mxu3 %v3616_v40  ;;  %999 = vmatpush.msra.mxu2 %v3617_v41  ;;  %v3648_v40 = vld [vmem:[#allocation64_spill] sm:$0xff]  ;;  %v3649_v41 = vld [vmem:[#allocation31_spill] sm:$0xff] }
 0x379   :  { %976 = vmatpush.msra.mxu1 %v3618_v42  ;;  %v3650_v42 = vld [vmem:[#allocation26_spill] sm:$0xff] }
 0x37a   :  { %895 = vmatpush.msrb.mxu3 %v3619_v43  ;;  %1000 = vmatpush.msra.mxu2 %v3620_v44  ;;  %v3651_v43 = vld [vmem:[#allocation35_spill] sm:$0xff]  ;;  %v3652_v44 = vld [vmem:[#allocation53_spill] sm:$0xff] }
 0x37b   :  { %977 = vmatpush.msra.mxu1 %v3621_v45  ;;  %v3653_v45 = vld [vmem:[#allocation30_spill] sm:$0xff] }
 0x37c   :  { %896 = vmatpush.msrb.mxu3 %v3622_v46  ;;  %1001 = vmatpush.msra.mxu2 %v3623_v47  ;;  %v3654_v46 = vld [vmem:[#allocation68_spill] sm:$0xff]  ;;  %v3655_v47 = vld [vmem:[#allocation39_spill] sm:$0xff] }
 0x37d   :  { %978 = vmatpush.msra.mxu1 %v3624_v48  ;;  %v3656_v48 = vld [vmem:[#allocation57_spill] sm:$0xff] }
 0x3e7   :  { %v719_v49 = vpop.f32.mrf.mxu0 }
 0x3e8   :  { %v772_v50 = vmul.f32 %v719_v49, %v2633_v8  ;;  %v742_v51 = vpop.f32.mrf.mxu1  ;;  %v3657_v49 = vld [vmem:[#allocation34_spill] sm:$0xff] }
 0x3e9   :  { %v773_v53 = vmul.f32 %v742_v51, %v3625_v52  ;;  %v3659_v51 = vld [vmem:[#allocation61_spill] sm:$0xff] }
 0x3ea   :  { %818 = vmatmul.f32.vlgmr.msrb.gmra.mxu0 %v772_v50  ;;  %v3658_v50 = vld [vmem:[#allocation72_spill] sm:$0xff] }
 0x3eb   :  { %841 = vmatmul.f32.vlgmr.msrb.gmra.mxu1 %v773_v53  ;;  %1040 = vmatpush.msrb.mxu0 %v3626_v54  ;;  %v3660_v53 = vld [vmem:[#allocation38_spill] sm:$0xff]  ;;  %v3661_v54 = vld [vmem:[#allocation76_spill] sm:$0xff] }
 0x3ec   :  { %1063 = vmatpush.msrb.mxu1 %v3627_v55  ;;  %v3662_v55 = vld [vmem:[#allocation65_spill] sm:$0xff] }
 0x3ed   :  { %v696_v56 = vpop.f32.mrf.mxu3  ;;  %1041 = vmatpush.msrb.mxu0 %v3628_v57  ;;  %v3664_v57 = vld [vmem:[#allocation69_spill] sm:$0xff] }
 0x3ee   :  { %v771_v59 = vmul.f32 %v696_v56, %v3629_v58  ;;  %v765_v4 = vpop.f32.mrf.mxu2  ;;  %1064 = vmatpush.msrb.mxu1 %v3630_v5  ;;  %v3663_v56 = vld [vmem:[#allocation80_spill] sm:$0xff]  ;;  %v3667_v5 = vld [vmem:[#allocation90_spill] sm:$0xff] }
 0x3ef   :  { %v774_v7 = vmul.f32 %v765_v4, %v3631_v6  ;;  %v722_v12 = vpop.f32.mrf.mxu0  ;;  %1042 = vmatpush.msrb.mxu0 %v3632_v20  ;;  %v3666_v4 = vld [vmem:[#allocation73_spill] sm:$0xff] }
 0x3f0   :  { %v776_v9 = vmul.f32 %v722_v12, %v3633_v16  ;;  %v745_v63 = vpop.f32.mrf.mxu1  ;;  %795 = vmatmul.f32.vlgmr.msra.gmra.mxu3 %v771_v59  ;;  %1065 = vmatpush.msrb.mxu1 %v3634_v21  ;;  %v3665_v59 = vld [vmem:[#allocation84_spill] sm:$0xff]  ;;  %v3669_v12 = vld [vmem:[#allocation94_spill] sm:$0xff]  ;;  %v3670_v20 = vld [vmem:[#allocation81_spill] sm:$0xff] }
 0x3f1   :  { %v777_v23 = vmul.f32 %v745_v63, %v3635_v22  ;;  %864 = vmatmul.f32.vlgmr.msrb.gmra.mxu2 %v774_v7  ;;  %1017 = vmatpush.msra.mxu3 %v3636_v24  ;;  %v3668_v7 = vld [vmem:[#allocation77_spill] sm:$0xff]  ;;  %v3673_v21 = vld [vmem:[#allocation100_spill] sm:$0xff]  ;;  %v3675_v24 = vld [vmem:[#allocation102_spill] sm:$0xff] }
 0x3f2   :  { %821 = vmatmul.f32.gmra.mxu0 %v776_v9  ;;  %1066 = vmatpush.msrb.mxu1 %v3637_v25  ;;  %v3671_v9 = vld [vmem:[#allocation98_spill] sm:$0xff]  ;;  %v3672_v63 = vld [vmem:[#allocation85_spill] sm:$0xff]  ;;  %v3676_v25 = vld [vmem:[#allocation95_spill] sm:$0xff] }
 0x3f3   :  { %844 = vmatmul.f32.gmra.mxu1 %v777_v23  ;;  %1018 = vmatpush.msra.mxu3 %v3638_v26  ;;  %v3674_v23 = vld [vmem:[#allocation91_spill] sm:$0xff] }
 0x3f4   :  { %1043 = vmatpush.msrb.mxu0 %v3639_v27  ;;  %1086 = vmatpush.msrb.mxu2 %v3640_v28  ;;  %v3677_v26 = vld [vmem:[#allocation99_spill] sm:$0xff]  ;;  %v3678_v27 = vld [vmem:[#allocation101_spill] sm:$0xff] }
 0x3f5   :  { %v699_v29 = vpop.f32.mrf.mxu3  ;;  %1019 = vmatpush.msra.mxu3 %v3641_v30  ;;  %1067 = vmatpush.msrb.mxu1 %v3642_v31  ;;  %v3679_v28 = vld [vmem:[#allocation103_spill] sm:$0xff] }
 0x3f6   :  { %v775_v33 = vmul.f32 %v699_v29, %v3643_v32  ;;  %v768_v34 = vpop.f32.mrf.mxu2  ;;  %1044 = vmatpush.msrb.mxu0 %v3644_v35  ;;  %1087 = vmatpush.msrb.mxu2 %v3645_v36 }
 0x3f7   :  { %v778_v38 = vmul.f32 %v768_v34, %v3646_v37  ;;  %1020 = vmatpush.msra.mxu3 %v3647_v39  ;;  %1068 = vmatpush.msrb.mxu1 %v3648_v40 }
 0x3f8   :  { %798 = vmatmul.f32.gmra.mxu3 %v775_v33  ;;  %1045 = vmatpush.msrb.mxu0 %v3649_v41 }
 0x3f9   :  { %867 = vmatmul.f32.gmra.mxu2 %v778_v38  ;;  %1021 = vmatpush.msra.mxu3 %v3650_v42  ;;  %v3047_v38 = vld [vmem:[%s3320_s1] sm:$0xff] }
 0x3fa   :  { %1046 = vmatpush.msrb.mxu0 %v3651_v43  ;;  %1088 = vmatpush.msrb.mxu2 %v3652_v44 }
 0x3fb   :  { %1022 = vmatpush.msra.mxu3 %v3653_v45  ;;  %1069 = vmatpush.msrb.mxu1 %v3654_v46 }
 0x3fc   :  { %1047 = vmatpush.msrb.mxu0 %v3655_v47  ;;  %1089 = vmatpush.msrb.mxu2 %v3656_v48  ;;  %v3680_v47 = vld [vmem:[#allocation40_spill] sm:$0xff] }
 0x3fd   :  { %1023 = vmatpush.msra.mxu3 %v3657_v49  ;;  %1070 = vmatpush.msrb.mxu1 %v3658_v50  ;;  %v3681_v49 = vld [vmem:[#allocation42_spill] sm:$0xff]  ;;  %v3060_v50 = vld [vmem:[%s3320_s1 + $0x8] sm:$0xff] }
 0x3fe   :  { %1090 = vmatpush.msrb.mxu2 %v3659_v51 }
 0x3ff   :  { %1024 = vmatpush.msra.mxu3 %v3660_v53  ;;  %1071 = vmatpush.msrb.mxu1 %v3661_v54  ;;  %v3682_v53 = vld [vmem:[#allocation44_spill] sm:$0xff] }
 0x400   :  { %1091 = vmatpush.msrb.mxu2 %v3662_v55  ;;  %v3683_v55 = vld [vmem:[#allocation50_spill] sm:$0xff] }
 0x401   :  { %1072 = vmatpush.msrb.mxu1 %v3663_v56  ;;  %v3684_v56 = vld [vmem:[#allocation54_spill] sm:$0xff] }
 0x402   :  { %1092 = vmatpush.msrb.mxu2 %v3664_v57  ;;  %v3685_v57 = vld [vmem:[#allocation58_spill] sm:$0xff] }
 0x403   :  { %1073 = vmatpush.msrb.mxu1 %v3665_v59  ;;  %v3686_v59 = vld [vmem:[#allocation62_spill] sm:$0xff] }
 0x404   :  { %1093 = vmatpush.msrb.mxu2 %v3666_v4  ;;  %v3687_v4 = vld [vmem:[#allocation66_spill] sm:$0xff] }
 0x405   :  { %1074 = vmatpush.msrb.mxu1 %v3667_v5  ;;  %v3688_v5 = vld [vmem:[#allocation70_spill] sm:$0xff] }
 0x406   :  { %1094 = vmatpush.msrb.mxu2 %v3668_v7  ;;  %v3689_v7 = vld [vmem:[#allocation74_spill] sm:$0xff] }
 0x407   :  { %1075 = vmatpush.msrb.mxu1 %v3669_v12  ;;  %v3690_v12 = vld [vmem:[#allocation78_spill] sm:$0xff] }
 0x408   :  { %1095 = vmatpush.msrb.mxu2 %v3670_v20  ;;  %v3691_v20 = vld [vmem:[#allocation82_spill] sm:$0xff] }
 0x409   :  { %1076 = vmatpush.msrb.mxu1 %v3671_v9  ;;  %v3692_v9 = vld [vmem:[#allocation86_spill] sm:$0xff] }
 0x40a   :  { %1096 = vmatpush.msrb.mxu2 %v3672_v63  ;;  %v3693_v63 = vld [vmem:[#allocation88_spill] sm:$0xff] }
 0x40b   :  { %1077 = vmatpush.msrb.mxu1 %v3673_v21  ;;  %v3694_v21 = vld [vmem:[#allocation92_spill] sm:$0xff] }
 0x40c   :  { %1097 = vmatpush.msrb.mxu2 %v3674_v23  ;;  %v3695_v23 = vld [vmem:[#allocation96_spill] sm:$0xff] }
 0x40d   :  { %1078 = vmatpush.msrb.mxu1 %v3675_v24 }
 0x40e   :  { %1098 = vmatpush.msrb.mxu2 %v3676_v25  ;;  %v3696_v25 = vld [vmem:[#allocation41_spill] sm:$0xff] }
 0x410   :  { %1099 = vmatpush.msrb.mxu2 %v3677_v26  ;;  %v3697_v26 = vld [vmem:[#allocation43_spill] sm:$0xff] }
 0x412   :  { %1100 = vmatpush.msrb.mxu2 %v3678_v27  ;;  %v3698_v27 = vld [vmem:[#allocation45_spill] sm:$0xff] }
 0x414   :  { %1101 = vmatpush.msrb.mxu2 %v3679_v28 }
 0x467   :  { %v819_v29 = vpop.f32.mrf.mxu0 }
 0x468   :  { %v842_v30 = vpop.f32.mrf.mxu1 }
 0x46f   :  { %v822_v40 = vpop.f32.mrf.mxu0 }
 0x470   :  { %v845_v44 = vpop.f32.mrf.mxu1 }
 0x473   :  { %v796_v31 = vpop.f32.mrf.mxu3 }
 0x474   :  { %v820_v33 = vadd.f32 %v819_v29, %v796_v31  ;;  %v865_v34 = vpop.f32.mrf.mxu2  ;;  %v3699_v29 = vld [vmem:[#allocation51_spill] sm:$0xff] }
 0x475   :  { %v3701_v31 = vld [vmem:[#allocation59_spill] sm:$0xff] }
 0x476   :  { %v843_v35 = vadd.f32 %v842_v30, %v820_v33  ;;  %v3700_v30 = vld [vmem:[#allocation55_spill] sm:$0xff] }
 0x477   :  { %v3702_v33 = vld [vmem:[#allocation63_spill] sm:$0xff] }
 0x478   :  { %v866_v36 = vadd.f32 %v865_v34, %v843_v35  ;;  %v3703_v34 = vld [vmem:[#allocation67_spill] sm:$0xff] }
 0x479   :  { %v3704_v35 = vld [vmem:[#allocation71_spill] sm:$0xff] }
 0x47a   :  { %v3050_v39 = vadd.f32 %v3047_v38, %v866_v36  ;;  %v3705_v36 = vld [vmem:[#allocation75_spill] sm:$0xff] }
 0x47b   :  { %v799_v41 = vpop.f32.mrf.mxu3 }
 0x47c   :  { %v873_v42 = vmul.f32 %v3050_v39, %v3050_v39  ;;  %v823_v43 = vadd.f32 %v822_v40, %v799_v41  ;;  %v868_v46 = vpop.f32.mrf.mxu2  ;;  %v3706_v40 = vld [vmem:[#allocation79_spill] sm:$0xff] }
 0x47d   :  { %v3707_v41 = vld [vmem:[#allocation83_spill] sm:$0xff] }
 0x47e   :  { %v846_v45 = vadd.f32 %v845_v44, %v823_v43  ;;  %1437 = vmatmul.msk.f32.vlgmr.msrb.gmra.mxu3 %vm341_vm1, %v873_v42  ;;  %v3708_v42 = vld [vmem:[#allocation87_spill] sm:$0xff]  ;;  %v3709_v43 = vld [vmem:[#allocation89_spill] sm:$0xff] }
 0x47f   :  { %1109 = vmatpush.msrb.mxu3 %v3680_v47  ;;  %v3710_v44 = vld [vmem:[#allocation93_spill] sm:$0xff] }
 0x480   :  { %v869_v48 = vadd.f32 %v868_v46, %v846_v45  ;;  %v3711_v45 = vld [vmem:[#allocation97_spill] sm:$0xff] }
 0x481   :  { %1110 = vmatpush.msrb.mxu3 %v3681_v49 }
 0x482   :  { %v3063_v51 = vadd.f32 %v3060_v50, %v869_v48 }
 0x483   :  { %1111 = vmatpush.msrb.mxu3 %v3682_v53 }
 0x484   :  { %v874_v54 = vmul.f32 %v3063_v51, %v3063_v51 }
 0x485   :  { %1112 = vmatpush.msrb.mxu3 %v3683_v55 }
 0x486   :  { %1438 = vmatmul.msk.f32.gmra.mxu3 %vm341_vm1, %v874_v54 }
 0x487   :  { %1113 = vmatpush.msrb.mxu3 %v3684_v56 }
 0x489   :  { %1114 = vmatpush.msrb.mxu3 %v3685_v57 }
 0x48b   :  { %1115 = vmatpush.msrb.mxu3 %v3686_v59 }
 0x48d   :  { %1116 = vmatpush.msrb.mxu3 %v3687_v4 }
 0x48f   :  { %1117 = vmatpush.msrb.mxu3 %v3688_v5 }
 0x491   :  { %1118 = vmatpush.msrb.mxu3 %v3689_v7 }
 0x493   :  { %1119 = vmatpush.msrb.mxu3 %v3690_v12 }
 0x495   :  { %1120 = vmatpush.msrb.mxu3 %v3691_v20 }
 0x497   :  { %1121 = vmatpush.msrb.mxu3 %v3692_v9 }
 0x499   :  { %1122 = vmatpush.msrb.mxu3 %v3693_v63 }
 0x49b   :  { %1123 = vmatpush.msrb.mxu3 %v3694_v21  ;;  %v3712_v21 = vld [vmem:[#allocation111_spill] sm:$0xff] }
 0x49d   :  { %1124 = vmatpush.msrb.mxu3 %v3695_v23  ;;  %v3713_v23 = vld [vmem:[#allocation115_spill] sm:$0xff] }
 0x501   :  { %v898_v24 = vpop.f32.mrf.mxu3 }
 0x502   :  { %1440 = vmatmul.msk.f32.vlgmr.msra.gmra.mxu0 %vm371_vm2, %v898_v24 }
 0x503   :  { %1132 = vmatpush.msra.mxu0 %v3696_v25  ;;  %v3715_v25 = vld [vmem:[#allocation116_spill] sm:$0xff] }
 0x505   :  { %1133 = vmatpush.msra.mxu0 %v3697_v26 }
 0x507   :  { %1134 = vmatpush.msra.mxu0 %v3698_v27 }
 0x509   :  { %v901_v28 = vpop.f32.mrf.mxu3  ;;  %1135 = vmatpush.msra.mxu0 %v3699_v29  ;;  %v3720_v29 = vld [vmem:[#allocation125_spill] sm:$0xff] }
 0x50a   :  { %1441 = vmatmul.msk.f32.gmra.mxu0 %vm371_vm2, %v901_v28  ;;  %v3716_v28 = vld [vmem:[#allocation113_spill] sm:$0xff] }
 0x50b   :  { %1136 = vmatpush.msra.mxu0 %v3700_v30 }
 0x50d   :  { %1137 = vmatpush.msra.mxu0 %v3701_v31  ;;  %v3721_v31 = vld [vmem:[#allocation119_spill] sm:$0xff] }
 0x50f   :  { %1138 = vmatpush.msra.mxu0 %v3702_v33 }
 0x511   :  { %1139 = vmatpush.msra.mxu0 %v3703_v34 }
 0x513   :  { %1140 = vmatpush.msra.mxu0 %v3704_v35  ;;  %v3722_v35 = vld [vmem:[#allocation129_spill] sm:$0xff] }
 0x515   :  { %1141 = vmatpush.msra.mxu0 %v3705_v36  ;;  %v3723_v36 = vld [vmem:[#allocation120_spill] sm:$0xff] }
 0x517   :  { %1142 = vmatpush.msra.mxu0 %v3706_v40  ;;  %v3724_v40 = vld [vmem:[#allocation122_spill] sm:$0xff] }
 0x519   :  { %1143 = vmatpush.msra.mxu0 %v3707_v41  ;;  %v3725_v41 = vld [vmem:[#allocation121_spill] sm:$0xff] }
 0x51b   :  { %1144 = vmatpush.msra.mxu0 %v3708_v42  ;;  %v3726_v42 = vld [vmem:[#allocation133_spill] sm:$0xff] }
 0x51d   :  { %1145 = vmatpush.msra.mxu0 %v3709_v43  ;;  %v3727_v43 = vld [vmem:[#allocation126_spill] sm:$0xff] }
 0x51f   :  { %1146 = vmatpush.msra.mxu0 %v3710_v44 }
 0x521   :  { %1147 = vmatpush.msra.mxu0 %v3711_v45  ;;  %v3728_v45 = vld [vmem:[#allocation124_spill] sm:$0xff] }
 0x57f   :  { %v927_v46 = vpop.f32.mrf.mxu0 }
 0x580   :  { %v933_v47 = vmax.f32 %v927_v46, 1e-24 }
 0x582   :  { %1476 = vrsqrt.f32 %v933_v47  ;;  %vm941_vm11 = vweird.f32 %v933_v47 }
 0x587   :  { %v930_v48 = vpop.f32.mrf.mxu0 }
 0x588   :  { %v1477_v49 = vpop.eup %1476  ;;  %v934_v53 = vmax.f32 %v930_v48, 1e-24  ;;  %v3729_v48 = vld [vmem:[#allocation130_spill] sm:$0xff] }
 0x589   :  { %v936_v54 = vmul.f32 %v1477_v49, %v933_v47  ;;  %vm942_vm10 = vweird.f32 %v1477_v49 }
 0x58a   :  { %1478 = vrsqrt.f32 %v934_v53  ;;  %vm943_vm12 = vmor %vm941_vm11, %vm942_vm10  ;;  %vm951_vm14 = vweird.f32 %v934_v53 }
 0x58b   :  { %v937_v55 = vmul.f32 %v1477_v49, %v936_v54  ;;  %v1511_v54 = vld [vmem:[%s3316_s6 + $0x150] sm:$0xff] }
 0x58d   :  { %v938_v56 = vmul.f32 0.5, %v937_v55  ;;  %v3731_v55 = vld [vmem:[#allocation134_spill] sm:$0xff] }
 0x58f   :  { %v939_v57 = vsub.f32 1.5, %v938_v56  ;;  %v3732_v56 = vld [vmem:[#allocation132_spill] sm:$0xff] }
 0x590   :  { %v1479_v59 = vpop.eup %1478 }
 0x591   :  { %v940_v4 = vmul.f32 %v1477_v49, %v939_v57  ;;  %v946_v5 = vmul.f32 %v1479_v59, %v934_v53  ;;  %vm952_vm13 = vweird.f32 %v1479_v59  ;;  %v3730_v53 = vld [vmem:[#allocation128_spill] sm:$0xff] }
 0x592   :  { %vm953_vm15 = vmor %vm951_vm14, %vm952_vm13  ;;  %v3733_v57 = vld [vmem:[#allocation136_spill] sm:$0xff] }
 0x593   :  { %v944_v7 = vsel %vm943_vm12, %v1477_v49, %v940_v4  ;;  %v947_v12 = vmul.f32 %v1479_v59, %v946_v5  ;;  %v1514_v4 = vld [vmem:[%s3316_s6 + $0xd0] sm:$0xff]  ;;  %v1515_v5 = vld [vmem:[%s3316_s6 + $0x138] sm:$0xff] }
 0x594   :  { %v955_v20 = vmul.f32 %v944_v7, %v3050_v39  ;;  %v3714_v39 = vld [vmem:[#allocation112_spill] sm:$0xff]  ;;  %v1517_v7 = vld [vmem:[%s3316_s6 + $0xc8] sm:$0xff] }
 0x595   :  { %v948_v9 = vmul.f32 0.5, %v947_v12  ;;  %v1519_v12 = vld [vmem:[%s3316_s6 + $0x40] sm:$0xff] }
 0x596   :  { %1442 = vmatmul.msk.f32.vlgmr.msra.gmra.mxu1 %vm341_vm1, %v955_v20  ;;  %1444 = vmatmul.msk.f32.vlgmr.msra.gmra.mxu2 %vm341_vm1, %v955_v20 }
 0x597   :  { %v949_v63 = vsub.f32 1.5, %v948_v9  ;;  %1446 = vmatmul.msk.f32.vlgmr.msra.gmra.mxu3 %vm341_vm1, %v955_v20  ;;  %1448 = vmatmul.msk.f32.vlgmr.msrb.gmra.mxu0 %vm341_vm1, %v955_v20  ;;  %v1520_v20 = vld [vmem:[%s3316_s6 + $0xc0] sm:$0xff]  ;;  %v1521_v9 = vld [vmem:[%s3316_s6 + $0x128] sm:$0xff] }
 0x598   :  { %1177 = vmatpush.msra.mxu1 %v3712_v21  ;;  %1210 = vmatpush.msra.mxu2 %v3713_v23  ;;  %v1523_v21 = vld [vmem:[%s3316_s6 + $0xb8] sm:$0xff]  ;;  %v1524_v23 = vld [vmem:[%s3316_s6 + $0x120] sm:$0xff] }
 0x599   :  { %v950_v24 = vmul.f32 %v1479_v59, %v949_v63  ;;  %1233 = vmatpush.msra.mxu3 %v2708_v19  ;;  %1256 = vmatpush.msrb.mxu0 %v2713_v18  ;;  %v3717_v19 = vld [vmem:[#allocation114_spill] sm:$0xff]  ;;  %v1522_v63 = vld [vmem:[%s3316_s6 + $0x38] sm:$0xff] }
 0x59a   :  { %1178 = vmatpush.msra.mxu1 %v3714_v39  ;;  %1211 = vmatpush.msra.mxu2 %v3715_v25  ;;  %v1526_v39 = vld [vmem:[%s3316_s6 + $0xb0] sm:$0xff]  ;;  %v1527_v25 = vld [vmem:[%s3316_s6 + $0x118] sm:$0xff] }
 0x59b   :  { %v954_v26 = vsel %vm953_vm15, %v1479_v59, %v950_v24  ;;  %1234 = vmatpush.msra.mxu3 %v2725_v11  ;;  %1257 = vmatpush.msrb.mxu0 %v2730_v14  ;;  %v1513_v59 = vld [vmem:[%s3316_s6 + $0x140] sm:$0xff]  ;;  %v1525_v24 = vld [vmem:[%s3316_s6 + $0x30] sm:$0xff] }
 0x59c   :  { %v956_v27 = vmul.f32 %v954_v26, %v3063_v51  ;;  %1179 = vmatpush.msra.mxu1 %v3716_v28  ;;  %1212 = vmatpush.msra.mxu2 %v2737_v1  ;;  %v3719_v51 = vld [vmem:[#allocation118_spill] sm:$0xff]  ;;  %v1528_v26 = vld [vmem:[%s3316_s6 + $0x28] sm:$0xff]  ;;  %v1530_v28 = vld [vmem:[%s3316_s6 + $0x110] sm:$0xff] }
 0x59d   :  { %1235 = vmatpush.msra.mxu3 %v2748_v15  ;;  %1258 = vmatpush.msrb.mxu0 %v2760_v60  ;;  %v3718_v15 = vld [vmem:[#allocation117_spill] sm:$0xff] }
 0x59e   :  { %1443 = vmatmul.msk.f32.gmra.mxu1 %vm341_vm1, %v956_v27  ;;  %1445 = vmatmul.msk.f32.gmra.mxu2 %vm341_vm1, %v956_v27 }
 0x59f   :  { %1447 = vmatmul.msk.f32.gmra.mxu3 %vm341_vm1, %v956_v27  ;;  %1449 = vmatmul.msk.f32.gmra.mxu0 %vm341_vm1, %v956_v27  ;;  %v1529_v27 = vld [vmem:[%s3316_s6 + $0xa8] sm:$0xff] }
 0x5a0   :  { %1180 = vmatpush.msra.mxu1 %v3717_v19  ;;  %1213 = vmatpush.msra.mxu2 %v2754_v62  ;;  %v1531_v19 = vld [vmem:[%s3316_s6 + $0x20] sm:$0xff] }
 0x5a1   :  { %1236 = vmatpush.msra.mxu3 %v2767_v10  ;;  %1259 = vmatpush.msrb.mxu0 %v2772_v0 }
 0x613   :  { %v980_v18 = vpop.f32.mrf.mxu1 }
 0x614   :  { %v1055_v11 = vmul.f32 %v980_v18, %v3629_v58  ;;  %v1049_v14 = vpop.f32.mrf.mxu0  ;;  %v1532_v18 = vld [vmem:[%s3316_s6 + $0xa0] sm:$0xff] }
 0x615   :  { %v1058_v1 = vmul.f32 %v1049_v14, %v3631_v6  ;;  %v1534_v14 = vld [vmem:[%s3316_s6 + $0x18] sm:$0xff] }
 0x616   :  { %1079 = vmatmul.f32.vlgmr.msrb.gmra.mxu1 %v1055_v11  ;;  %v1533_v11 = vld [vmem:[%s3316_s6 + $0x108] sm:$0xff] }
 0x617   :  { %1148 = vmatmul.f32.vlgmr.msra.gmra.mxu0 %v1058_v1  ;;  %1279 = vmatpush.msrb.mxu1 %v3718_v15  ;;  %v1535_v1 = vld [vmem:[%s3316_s6 + $0x98] sm:$0xff]  ;;  %v1536_v15 = vld [vmem:[%s3316_s6 + $0x100] sm:$0xff] }
 0x618   :  { %1344 = vmatpush.msra.mxu0 %v2792_v2 }
 0x619   :  { %v1003_v60 = vpop.f32.mrf.mxu2  ;;  %1280 = vmatpush.msrb.mxu1 %v3719_v51  ;;  %v1538_v51 = vld [vmem:[%s3316_s6 + $0x90] sm:$0xff] }
 0x61a   :  { %v1056_v62 = vmul.f32 %v1003_v60, %v2633_v8  ;;  %v1026_v10 = vpop.f32.mrf.mxu3  ;;  %1345 = vmatpush.msra.mxu0 %v3720_v29  ;;  %v1537_v60 = vld [vmem:[%s3316_s6 + $0x10] sm:$0xff]  ;;  %v1541_v29 = vld [vmem:[%s3316_s6] sm:$0xff] }
 0x61b   :  { %v1057_v0 = vmul.f32 %v1026_v10, %v3625_v52  ;;  %v983_v30 = vpop.f32.mrf.mxu1  ;;  %1281 = vmatpush.msrb.mxu1 %v3721_v31  ;;  %v1540_v10 = vld [vmem:[%s3316_s6 + $0x88] sm:$0xff] }
 0x61c   :  { %v1059_v33 = vmul.f32 %v983_v30, %v3643_v32  ;;  %v1052_v34 = vpop.f32.mrf.mxu0  ;;  %1102 = vmatmul.f32.vlgmr.msrb.gmra.mxu2 %v1056_v62  ;;  %1346 = vmatpush.msra.mxu0 %v3722_v35  ;;  %v1539_v62 = vld [vmem:[%s3316_s6 + $0x8] sm:$0xff] }
 0x61d   :  { %v1062_v2 = vmul.f32 %v1052_v34, %v3646_v37  ;;  %1125 = vmatmul.f32.vlgmr.msrb.gmra.mxu3 %v1057_v0  ;;  %1282 = vmatpush.msrb.mxu1 %v3723_v36  ;;  %v1542_v0 = vld [vmem:[%s3316_s6 + $0x80] sm:$0xff] }
 0x61e   :  { %1082 = vmatmul.f32.gmra.mxu1 %v1059_v33  ;;  %1298 = vmatpush.msrb.mxu2 %v3724_v40 }
 0x61f   :  { %1151 = vmatmul.f32.gmra.mxu0 %v1062_v2  ;;  %1321 = vmatpush.msrb.mxu3 %v3725_v41 }
 0x620   :  { %1347 = vmatpush.msra.mxu0 %v3726_v42  ;;  %1299 = vmatpush.msrb.mxu2 %v3727_v43 }
 0x621   :  { %v1006_v44 = vpop.f32.mrf.mxu2  ;;  %1322 = vmatpush.msrb.mxu3 %v3728_v45 }
 0x622   :  { %v1060_v46 = vmul.f32 %v1006_v44, %v3633_v16  ;;  %v1029_v47 = vpop.f32.mrf.mxu3  ;;  %1348 = vmatpush.msra.mxu0 %v2888_v3  ;;  %1300 = vmatpush.msrb.mxu2 %v3729_v48  ;;  %v1512_v3 = vld [vmem:[%s3316_s6 + $0x148] sm:$0xff] }
 0x623   :  { %v1061_v49 = vmul.f32 %v1029_v47, %v3635_v22  ;;  %1323 = vmatpush.msrb.mxu3 %v3730_v53  ;;  %v3734_v53 = vld [vmem:[#allocation123_spill] sm:$0xff] }
 0x624   :  { %1105 = vmatmul.f32.gmra.mxu2 %v1060_v46  ;;  %1349 = vmatpush.msra.mxu0 %v1511_v54  ;;  %v3735_v54 = vld [vmem:[#allocation127_spill] sm:$0xff] }
 0x625   :  { %1128 = vmatmul.f32.gmra.mxu3 %v1061_v49  ;;  %1301 = vmatpush.msrb.mxu2 %v3731_v55  ;;  %v3736_v55 = vld [vmem:[#allocation131_spill] sm:$0xff] }
 0x626   :  { %1324 = vmatpush.msrb.mxu3 %v3732_v56  ;;  %1350 = vmatpush.msra.mxu0 %v1512_v3  ;;  %v3737_v3 = vld [vmem:[#allocation135_spill] sm:$0xff] }
 0x627   :  { %1302 = vmatpush.msrb.mxu2 %v2894_v61  ;;  %v1516_v61 = vld [vmem:[%s3316_s6 + $0x48] sm:$0xff] }
 0x628   :  { %1325 = vmatpush.msrb.mxu3 %v3733_v57  ;;  %1351 = vmatpush.msra.mxu0 %v1513_v59  ;;  %v1543_v57 = vld [vmem:[%s3316_s6 + $0x1d0] sm:$0xff]  ;;  %v1544_v59 = vld [vmem:[%s3316_s6 + $0x1c8] sm:$0xff] }
 0x629   :  { %1303 = vmatpush.msrb.mxu2 %v2908_v17  ;;  %v1518_v17 = vld [vmem:[%s3316_s6 + $0x130] sm:$0xff] }
 0x62a   :  { %1326 = vmatpush.msrb.mxu3 %v1514_v4  ;;  %1352 = vmatpush.msra.mxu0 %v1515_v5  ;;  %v1545_v4 = vld [vmem:[%s3316_s6 + $0x1c0] sm:$0xff]  ;;  %v1546_v5 = vld [vmem:[%s3316_s6 + $0x1b8] sm:$0xff] }
 0x62b   :  { %1304 = vmatpush.msrb.mxu2 %v1516_v61  ;;  %v1548_v61 = vld [vmem:[%s3316_s6 + $0x1a8] sm:$0xff] }
 0x62c   :  { %1327 = vmatpush.msrb.mxu3 %v1517_v7  ;;  %1353 = vmatpush.msra.mxu0 %v1518_v17  ;;  %v1549_v7 = vld [vmem:[%s3316_s6 + $0x1a0] sm:$0xff]  ;;  %v1550_v17 = vld [vmem:[%s3316_s6 + $0x198] sm:$0xff] }
 0x62d   :  { %1305 = vmatpush.msrb.mxu2 %v1519_v12  ;;  %v1551_v12 = vld [vmem:[%s3316_s6 + $0x190] sm:$0xff] }
 0x62e   :  { %1328 = vmatpush.msrb.mxu3 %v1520_v20  ;;  %1354 = vmatpush.msra.mxu0 %v1521_v9  ;;  %v1552_v20 = vld [vmem:[%s3316_s6 + $0x188] sm:$0xff]  ;;  %v1553_v9 = vld [vmem:[%s3316_s6 + $0x180] sm:$0xff] }
 0x62f   :  { %1306 = vmatpush.msrb.mxu2 %v1522_v63 }
 0x630   :  { %1329 = vmatpush.msrb.mxu3 %v1523_v21  ;;  %1355 = vmatpush.msra.mxu0 %v1524_v23 }
 0x631   :  { %1307 = vmatpush.msrb.mxu2 %v1525_v24 }
 0x632   :  { %1330 = vmatpush.msrb.mxu3 %v1526_v39  ;;  %1356 = vmatpush.msra.mxu0 %v1527_v25 }
 0x633   :  { %1308 = vmatpush.msrb.mxu2 %v1528_v26 }
 0x634   :  { %1331 = vmatpush.msrb.mxu3 %v1529_v27  ;;  %1357 = vmatpush.msra.mxu0 %v1530_v28 }
 0x635   :  { %1309 = vmatpush.msrb.mxu2 %v1531_v19 }
 0x636   :  { %1332 = vmatpush.msrb.mxu3 %v1532_v18  ;;  %1358 = vmatpush.msra.mxu0 %v1533_v11 }
 0x637   :  { %1310 = vmatpush.msrb.mxu2 %v1534_v14 }
 0x638   :  { %1333 = vmatpush.msrb.mxu3 %v1535_v1  ;;  %1359 = vmatpush.msra.mxu0 %v1536_v15 }
 0x639   :  { %1311 = vmatpush.msrb.mxu2 %v1537_v60 }
 0x63a   :  { %1334 = vmatpush.msrb.mxu3 %v1538_v51 }
 0x63b   :  { %1312 = vmatpush.msrb.mxu2 %v1539_v62 }
 0x63c   :  { %1335 = vmatpush.msrb.mxu3 %v1540_v10 }
 0x63d   :  { %1313 = vmatpush.msrb.mxu2 %v1541_v29 }
 0x63e   :  { %1336 = vmatpush.msrb.mxu3 %v1542_v0 }
 0x693   :  { %v1080_v30 = vpop.f32.mrf.mxu1 }
 0x694   :  { %v1149_v35 = vpop.f32.mrf.mxu0 }
 0x69b   :  { %v1083_v41 = vpop.f32.mrf.mxu1 }
 0x69c   :  { %v1152_v46 = vpop.f32.mrf.mxu0 }
 0x69f   :  { %v1103_v31 = vpop.f32.mrf.mxu2 }
 0x6a0   :  { %v1104_v33 = vadd.f32 %v1103_v31, %v1080_v30  ;;  %v1126_v34 = vpop.f32.mrf.mxu3 }
 0x6a2   :  { %v1127_v2 = vadd.f32 %v1126_v34, %v1104_v33 }
 0x6a4   :  { %v1150_v36 = vadd.f32 %v1149_v35, %v1127_v2 }
 0x6a6   :  { %v1155_v40 = vmul.f32 1.442695, %v1150_v36 }
 0x6a7   :  { %v1106_v42 = vpop.f32.mrf.mxu2 }
 0x6a8   :  { %1480 = vpow2.f32 %v1155_v40  ;;  %v1107_v43 = vadd.f32 %v1106_v42, %v1083_v41  ;;  %v1129_v44 = vpop.f32.mrf.mxu3 }
 0x6aa   :  { %v1130_v45 = vadd.f32 %v1129_v44, %v1107_v43 }
 0x6ac   :  { %v1153_v47 = vadd.f32 %v1152_v46, %v1130_v45 }
 0x6ae   :  { %v1481_v48 = vpop.eup %1480  ;;  %v1157_v49 = vmul.f32 1.442695, %v1153_v47 }
 0x6af   :  { %1450 = vmatmul.msk.f32.vlgmr.msra.gmra.mxu1 %vm639_vm9, %v1481_v48 }
 0x6b0   :  { %1482 = vpow2.f32 %v1157_v49  ;;  %1367 = vmatpush.msra.mxu1 %v3734_v53 }
 0x6b2   :  { %1368 = vmatpush.msra.mxu1 %v3735_v54 }
 0x6b4   :  { %1369 = vmatpush.msra.mxu1 %v3736_v55 }
 0x6b6   :  { %v1483_v56 = vpop.eup %1482  ;;  %1370 = vmatpush.msra.mxu1 %v3737_v3 }
 0x6b7   :  { %1451 = vmatmul.msk.f32.gmra.mxu1 %vm639_vm9, %v1483_v56 }
 0x6b8   :  { %1371 = vmatpush.msra.mxu1 %v2900_v13  ;;  %v1547_v13 = vld [vmem:[%s3316_s6 + $0x1b0] sm:$0xff] }
 0x6ba   :  { %1372 = vmatpush.msra.mxu1 %v1543_v57 }
 0x6bc   :  { %1373 = vmatpush.msra.mxu1 %v1544_v59 }
 0x6be   :  { %1374 = vmatpush.msra.mxu1 %v1545_v4 }
 0x6c0   :  { %1375 = vmatpush.msra.mxu1 %v1546_v5 }
 0x6c2   :  { %1376 = vmatpush.msra.mxu1 %v1547_v13 }
 0x6c4   :  { %1377 = vmatpush.msra.mxu1 %v1548_v61 }
 0x6c6   :  { %1378 = vmatpush.msra.mxu1 %v1549_v7 }
 0x6c8   :  { %1379 = vmatpush.msra.mxu1 %v1550_v17 }
 0x6ca   :  { %1380 = vmatpush.msra.mxu1 %v1551_v12 }
 0x6cc   :  { %1381 = vmatpush.msra.mxu1 %v1552_v20 }
 0x6ce   :  { %1382 = vmatpush.msra.mxu1 %v1553_v9 }
 0x72c   :  { %v1182_v63 = vpop.f32.mrf.mxu1 }
 0x72d   :  { %1484 = vrcp.f32 %v1182_v63 }
 0x733   :  { %v1485_v21 = vpop.eup %1484 }
 0x734   :  { %v1190_v23 = vmul.f32 %v1485_v21, %v1481_v48  ;;  %v1185_v24 = vpop.f32.mrf.mxu1 }
 0x735   :  { %1486 = vrcp.f32 %v1185_v24 }
 0x736   :  { %1452 = vmatmul.msk.f32.vlgmr.msra.gmra.mxu2 %vm639_vm9, %v1190_v23  ;;  %1454 = vmatmul.msk.f32.vlgmr.msra.gmra.mxu3 %vm639_vm9, %v1190_v23 }
 0x737   :  { %1456 = vmatmul.msk.f32.vlgmr.msrb.gmra.mxu0 %vm639_vm9, %v1190_v23  ;;  %1458 = vmatmul.msk.f32.vlgmr.msrb.gmra.mxu1 %vm639_vm9, %v1190_v23 }
 0x73b   :  { %v1487_v39 = vpop.eup %1486 }
 0x73c   :  { %v1191_v25 = vmul.f32 %v1487_v39, %v1483_v56 }
 0x73e   :  { %1453 = vmatmul.msk.f32.gmra.mxu2 %vm639_vm9, %v1191_v25  ;;  %1455 = vmatmul.msk.f32.gmra.mxu3 %vm639_vm9, %v1191_v25 }
 0x73f   :  { %1457 = vmatmul.msk.f32.gmra.mxu0 %vm639_vm9, %v1191_v25  ;;  %1459 = vmatmul.msk.f32.gmra.mxu1 %vm639_vm9, %v1191_v25 }
 0x7b4   :  { %v1261_v26 = vpop.f32.mrf.mxu0  ;;  %v1284_v27 = vpop.f32.mrf.mxu1 }
 0x7b5   :  { %v1292_v28 = vmul.f32 %v1261_v26, %v3625_v52  ;;  %v1293_v19 = vmul.f32 %v1284_v27, %v3631_v6 }
 0x7b7   :  { %1360 = vmatmul.f32.vlgmr.msra.gmra.mxu0 %v1292_v28  ;;  %1383 = vmatmul.f32.vlgmr.msra.gmra.mxu1 %v1293_v19 }
 0x7b9   :  { %v1215_v18 = vpop.f32.mrf.mxu2  ;;  %v1238_v11 = vpop.f32.mrf.mxu3 }
 0x7ba   :  { %v1290_v14 = vmul.f32 %v1215_v18, %v3629_v58  ;;  %v1291_v1 = vmul.f32 %v1238_v11, %v2633_v8 }
 0x7bc   :  { %v1264_v15 = vpop.f32.mrf.mxu0  ;;  %v1287_v60 = vpop.f32.mrf.mxu1  ;;  %1314 = vmatmul.f32.vlgmr.msrb.gmra.mxu2 %v1290_v14  ;;  %1337 = vmatmul.f32.vlgmr.msrb.gmra.mxu3 %v1291_v1 }
 0x7bd   :  { %v1296_v51 = vmul.f32 %v1264_v15, %v3635_v22  ;;  %v1297_v62 = vmul.f32 %v1287_v60, %v3646_v37 }
 0x7bf   :  { %1363 = vmatmul.f32.gmra.mxu0 %v1296_v51  ;;  %1386 = vmatmul.f32.gmra.mxu1 %v1297_v62 }
 0x7c1   :  { %v1218_v52 = vpop.f32.mrf.mxu2  ;;  %v1241_v6 = vpop.f32.mrf.mxu3 }
 0x7c2   :  { %v1294_v10 = vmul.f32 %v1218_v52, %v3643_v32  ;;  %v1295_v29 = vmul.f32 %v1241_v6, %v3633_v16 }
 0x7c4   :  { %1317 = vmatmul.f32.gmra.mxu2 %v1294_v10  ;;  %1340 = vmatmul.f32.gmra.mxu3 %v1295_v29 }
 0x834   :  { %v1361_v58 = vpop.f32.mrf.mxu0  ;;  %v1384_v31 = vpop.f32.mrf.mxu1 }
 0x83c   :  { %v1364_v16 = vpop.f32.mrf.mxu0  ;;  %v1387_v36 = vpop.f32.mrf.mxu1 }
 0x83f   :  { %v1315_v8 = vpop.f32.mrf.mxu2  ;;  %v1338_v0 = vpop.f32.mrf.mxu3 }
 0x840   :  { %v1339_v30 = vadd.f32 %v1338_v0, %v1315_v8 }
 0x842   :  { %v1362_v33 = vadd.f32 %v1361_v58, %v1339_v30 }
 0x844   :  { %v1385_v34 = vadd.f32 %v1384_v31, %v1362_v33 }
 0x846   :  { %v1390_v22 = vadd.f32 %v3047_v38, %v1385_v34 }
 0x847   :  { %v1318_v37 = vpop.f32.mrf.mxu2  ;;  %v1341_v35 = vpop.f32.mrf.mxu3 }
 0x848   :  { %1392 = vst.msk [vmem:[%s3325_s9] sm:$0xff] %vm341_vm1, %v1390_v22  ;;  %v1342_v32 = vadd.f32 %v1341_v35, %v1318_v37 }
 0x84a   :  { %v1365_v2 = vadd.f32 %v1364_v16, %v1342_v32 }
 0x84c   :  { %v1388_v40 = vadd.f32 %v1387_v36, %v1365_v2 }
 0x84e   :  { %v1391_v41 = vadd.f32 %v3060_v50, %v1388_v40 }
 0x850   :  { %1393 = vst.msk [vmem:[%s3325_s9 + $0x8] sm:$0xff] %vm341_vm1, %v1391_v41 }

// kernel: capsule_net_forward.11
= control target key start
LH: loop header
LB: loop body
LE: loop exit
PB: predicated region body
PF: predicated region fallthrough
CT: control target
= control target key end

     0   :  { %vm28_vm0 = vcmask 523264   ;;  %vm58_vm1 = vcmask 56320   ;;  %s173_s1 = inlined_call_operand.vmem [shape: f32[64,7], index: 1, kind: input, shape index: {}]   ;;  %s174_s2 = inlined_call_operand.vmem [shape: f32[1,7], index: 2, kind: input, shape index: {}]   ;;  %s175_s0 = inlined_call_operand.vmem [shape: f32[16,64], index: 0, kind: input, shape index: {}]   ;;  %s176_s3 = inlined_call_operand.vmem [shape: f32[16,7], index: 3, kind: output, shape index: {}]  }
   0x1   :  { %v23_v0 = vld [vmem:[%s173_s1 + $0x38] sm:$0xff]  ;;  %v22_v1 = vld [vmem:[%s173_s1 + $0x30] sm:$0xff]  ;;  %v21_v2 = vld [vmem:[%s173_s1 + $0x28] sm:$0xff] }
   0x2   :  { %43 = vmatpush.msra.mxu0 %v23_v0  ;;  %91 = vmatpush.msra.mxu1 %v23_v0  ;;  %v20_v3 = vld [vmem:[%s173_s1 + $0x20] sm:$0xff]  ;;  %v19_v4 = vld [vmem:[%s173_s1 + $0x18] sm:$0xff]  ;;  %v18_v5 = vld [vmem:[%s173_s1 + $0x10] sm:$0xff] }
   0x3   :  { %v17_v6 = vld [vmem:[%s173_s1 + $0x8] sm:$0xff]  ;;  %v16_v7 = vld [vmem:[%s173_s1] sm:$0xff] }
   0x4   :  { %44 = vmatpush.msra.mxu0 %v22_v1  ;;  %92 = vmatpush.msra.mxu1 %v22_v1  ;;  %v14_v8 = vld [vmem:[%s175_s0] sm:$0xff]  ;;  %v15_v9 = vld [vmem:[%s175_s0 + $0x8] sm:$0xff] }
   0x5   :  { %v99_v10 = vld [vmem:[%s174_s2] ss:$0 sm:$0xff] }
   0x6   :  { %45 = vmatpush.msra.mxu0 %v21_v2  ;;  %93 = vmatpush.msra.mxu1 %v21_v2 }
   0x8   :  { %46 = vmatpush.msra.mxu0 %v20_v3  ;;  %94 = vmatpush.msra.mxu1 %v20_v3 }
   0xa   :  { %47 = vmatpush.msra.mxu0 %v19_v4  ;;  %95 = vmatpush.msra.mxu1 %v19_v4 }
   0xc   :  { %48 = vmatpush.msra.mxu0 %v18_v5  ;;  %96 = vmatpush.msra.mxu1 %v18_v5 }
   0xe   :  { %49 = vmatpush.msra.mxu0 %v17_v6  ;;  %97 = vmatpush.msra.mxu1 %v17_v6 }
  0x10   :  { %50 = vmatpush.msra.mxu0 %v16_v7  ;;  %98 = vmatpush.msra.mxu1 %v16_v7 }
  0x11   :  { %89 = vmatmul.msk.f32.vlgmr.msra.gmra.mxu0 %vm28_vm0, %v14_v8  ;;  %90 = vmatmul.msk.f32.vlgmr.msra.gmra.mxu1 %vm28_vm0, %v15_v9 }
  0x8e   :  { %v52_v11 = vpop.f32.mrf.mxu0  ;;  %v55_v13 = vpop.f32.mrf.mxu1 }
  0x8f   :  { %v53_v12 = vadd.f32 %v99_v10, %v52_v11  ;;  %v56_v15 = vadd.f32 %v99_v10, %v55_v13 }
  0x91   :  { %v59_v14 = vsel %vm58_vm1, %v53_v12, -inf  ;;  %v62_v16 = vsel %vm58_vm1, %v56_v15, -inf }
  0x92   :  { %60 = vmax.xlane.f32.xlu0 %v59_v14 }
  0x9a   :  { %63 = vmax.xlane.f32.xlu0 %v62_v16 }
 0x105   :  { %v61_v17 = vpop.xlane.xlu0 %60 }
 0x106   :  { %v65_v18 = vsub.f32 %v53_v12, %v61_v17 }
 0x108   :  { %v67_v19 = vmul.f32 1.442695, %v65_v18 }
 0x10a   :  { %100 = vpow2.f32 %v67_v19 }
 0x10d   :  { %v64_v20 = vpop.xlane.xlu0 %63 }
 0x10e   :  { %v66_v21 = vsub.f32 %v56_v15, %v64_v20 }
 0x110   :  { %v101_v22 = vpop.eup %100  ;;  %v69_v23 = vmul.f32 1.442695, %v66_v21 }
 0x111   :  { %v71_v24 = vsel %vm58_vm1, %v101_v22, 0.0 }
 0x112   :  { %102 = vpow2.f32 %v69_v23  ;;  %72 = vadd.xlane.f32.xlu1 %v71_v24 }
 0x118   :  { %v103_v25 = vpop.eup %102 }
 0x119   :  { %v74_v26 = vsel %vm58_vm1, %v103_v25, 0.0 }
 0x11a   :  { %75 = vadd.xlane.f32.xlu1 %v74_v26 }
 0x185   :  { %v73_v27 = vpop.xlane.xlu1 %72 }
 0x186   :  { %104 = vlog2.f32 %v73_v27 }
 0x18c   :  { %v105_v28 = vpop.eup %104 }
 0x18d   :  { %v78_v29 = vmul.f32 0.6931472, %v105_v28  ;;  %v76_v30 = vpop.xlane.xlu1 %75 }
 0x18e   :  { %106 = vlog2.f32 %v76_v30 }
 0x18f   :  { %v81_v31 = vsub.f32 %v65_v18, %v78_v29 }
 0x191   :  { %83 = vst.msk [vmem:[%s176_s3] sm:$0xff] %vm58_vm1, %v81_v31 }
 0x194   :  { %v107_v32 = vpop.eup %106 }
 0x195   :  { %v80_v33 = vmul.f32 0.6931472, %v107_v32 }
 0x197   :  { %v82_v34 = vsub.f32 %v66_v21, %v80_v33 }
 0x199   :  { %84 = vst.msk [vmem:[%s176_s3 + $0x8] sm:$0xff] %vm58_vm1, %v82_v34 }

</bundles_post_ra>
